<compile_context>
chip_gen: v5e
topology: v5e:2x2
jax: 0.10.0
libtpu: 0.0.40
codegen_flags: <defaults>
</compile_context>

<pallas_src>
import functools

import jax
import jax.numpy as jnp
from jax.experimental import pallas as pl
from jax.experimental.pallas import tpu as pltpu


# ----------------------------------------------------------------------------
# small helpers
# ----------------------------------------------------------------------------
def _round_up(x, m):
    return ((x + m - 1) // m) * m


def _pick_tile(total, cap, pref=8):
    """Largest divisor of `total` that is <= cap, preferring multiples of `pref`."""
    divs = [d for d in range(1, min(total, cap) + 1) if total % d == 0]
    pref_divs = [d for d in divs if d % pref == 0]
    return max(pref_divs) if pref_divs else max(divs)


def _vmem_limit(block_bytes):
    # double-buffered blocks + compiler scratch margin, clamped so it is safe
    # on every generation (v7x has only 64 MiB physical VMEM).
    need = 2 * block_bytes + (8 << 20)
    return int(min(max(need, 32 << 20), 64 << 20))


# ----------------------------------------------------------------------------
# Pallas kernel 1: fused direct 3x3 conv (+ bias, + optional ReLU).
#
# Input window per (batch, row-block): flattened padded rows (Cin, Lw) in bf16.
# The 9 taps are shifted contiguous views of that flat buffer; each tap is an
# MXU dot (Cout,Cin)x(Cin,L_out) accumulated in f32.  Output lane axis is the
# flattened spatial dim (multiple of 128) -> unmasked, lane-dense stores.
# ----------------------------------------------------------------------------
def _conv3x3_kernel(x_ref, w_ref, b_ref, o_ref, *, relu, Wp, L_out, cin, cout):
    acc = jnp.zeros((cout, L_out), jnp.float32)
    for p in range(9):
        dy, dx = divmod(p, 3)
        off = dy * Wp + dx
        slab = x_ref[0, 0, :, off:off + L_out]          # (Cin, L_out) bf16
        if cin == 1:
            # K=1: use the VPU (broadcast FMA) instead of a degenerate MXU dot.
            acc = acc + w_ref[p].astype(jnp.float32) * slab.astype(jnp.float32)
        else:
            acc = acc + jnp.dot(w_ref[p], slab,
                                preferred_element_type=jnp.float32)
    acc = acc + b_ref[...]                              # (Cout, 1) broadcast
    if relu:
        acc = jnp.maximum(acc, 0.0)
    o_ref[0, 0] = acc


def conv3x3(x, w, b, *, relu, row_cap=64):
    """3x3 same-padding conv, NCHW in/out. w: (3,3,Cin,Cout), b: (Cout,)."""
    B, Cin, H, W = x.shape
    Cout = w.shape[-1]

    TH = _pick_tile(H, cap=row_cap, pref=8)             # output rows per block
    nb = H // TH
    Wp = W + 2                                          # padded row stride
    L_out = _round_up(TH * Wp, 128)                     # lane-dense output
    Lw = _round_up(L_out + 2 * Wp + 2, 128)             # input window length

    # Row windows with a 1-row halo (1.0 .. ~1.1x duplication), flattened so the
    # 9 taps become contiguous shifted views; cast to bf16 for the MXU.
    xp = jnp.pad(x, ((0, 0), (0, 0), (1, 1), (1, 1)))   # (B, Cin, H+2, W+2)
    wins = [xp[:, :, r * TH:r * TH + TH + 2, :].reshape(B, Cin, (TH + 2) * Wp)
            for r in range(nb)]
    xw = jnp.stack(wins, axis=1)                        # (B, nb, Cin, (TH+2)*Wp)
    xw = jnp.pad(xw, ((0, 0), (0, 0), (0, 0), (0, Lw - (TH + 2) * Wp)))
    xw = xw.astype(jnp.bfloat16)

    wt = jnp.transpose(w, (0, 1, 3, 2)).reshape(9, Cout, Cin).astype(jnp.bfloat16)
    bt = b.reshape(Cout, 1).astype(jnp.float32)

    block_bytes = Cin * Lw * 2 + Cout * L_out * 4
    out = pl.pallas_call(
        functools.partial(_conv3x3_kernel, relu=relu, Wp=Wp, L_out=L_out,
                          cin=Cin, cout=Cout),
        out_shape=jax.ShapeDtypeStruct((B, nb, Cout, L_out), jnp.float32),
        grid=(B, nb),
        in_specs=[
            pl.BlockSpec((1, 1, Cin, Lw), lambda bi, r: (bi, r, 0, 0)),
            pl.BlockSpec((9, Cout, Cin), lambda bi, r: (0, 0, 0)),
            pl.BlockSpec((Cout, 1), lambda bi, r: (0, 0)),
        ],
        out_specs=pl.BlockSpec((1, 1, Cout, L_out), lambda bi, r: (bi, r, 0, 0)),
        compiler_params=pltpu.CompilerParams(
            dimension_semantics=("parallel", "parallel"),
            vmem_limit_bytes=_vmem_limit(block_bytes)),
    )(xw, wt, bt)

    # un-flatten: drop the 2 garbage columns per row and the lane padding.
    y = out[:, :, :, :TH * Wp].reshape(B, nb, Cout, TH, Wp)[..., :W]
    y = jnp.transpose(y, (0, 2, 1, 3, 4)).reshape(B, Cout, H, W)
    return y


# ----------------------------------------------------------------------------
# Pallas kernel 2: fused elementwise A update
#   delta_f = (J*t + A*(1-t) - I) * (1-t)
#   delta_g = ((I-A)/clamp(t) + A - J) * (1 - 1/clamp(t))
#   A_new   = A - w * (mean_c(delta_f + delta_g) + A_prior)
# Layout: (B, C, S, 128) so full (8,128) vregs are used; spatially tiled grid.
# ----------------------------------------------------------------------------
def _a_update_kernel(i_ref, a_ref, t_ref, j_ref, ap_ref, o_ref, *, t_clamp, w_prior):
    A = a_ref[0, 0]                         # (T, L)
    t = t_ref[0, 0]
    Ap = ap_ref[0, 0]

    tc = jnp.maximum(t, t_clamp)            # torch.clamp(t, min=t_clamp)
    inv_tc = pl.reciprocal(tc, approx=True)  # EUP, nearly free
    one_m_t = 1.0 - t
    one_m_inv = 1.0 - inv_tc

    dsum = jnp.zeros_like(A)
    for c in range(3):                      # channel reduction as plain VPU adds
        I = i_ref[0, c]
        J = j_ref[0, c]
        delta_f = (J * t + A * one_m_t - I) * one_m_t
        delta_g = ((I - A) * inv_tc + A - J) * one_m_inv
        dsum = dsum + (delta_f + delta_g)

    o_ref[0, 0] = A - w_prior * (dsum * (1.0 / 3.0) + Ap)


def a_update(I, A, t, J, A_prior, t_clamp, weight_A_prior):
    B, _, H, W = I.shape
    HW = H * W
    if HW % 128 == 0:
        L, S = 128, HW // 128
    else:
        L, S = HW, 1                        # fallback: single lane-slab
    T = _pick_tile(S, cap=512, pref=8)
    if T % 8 != 0 and T != S:               # keep the (8,128) block constraint
        T = S

    def rs(z):
        return z.reshape(B, z.shape[1], S, L)

    Ir, Ar, tr, Jr, Apr = map(rs, (I, A, t, J, A_prior))
    block_bytes = 10 * T * L * 4
    out = pl.pallas_call(
        functools.partial(_a_update_kernel, t_clamp=float(t_clamp),
                          w_prior=float(weight_A_prior)),
        out_shape=jax.ShapeDtypeStruct((B, 1, S, L), jnp.float32),
        grid=(B, S // T),
        in_specs=[
            pl.BlockSpec((1, 3, T, L), lambda b, s: (b, 0, s, 0)),
            pl.BlockSpec((1, 1, T, L), lambda b, s: (b, 0, s, 0)),
            pl.BlockSpec((1, 1, T, L), lambda b, s: (b, 0, s, 0)),
            pl.BlockSpec((1, 3, T, L), lambda b, s: (b, 0, s, 0)),
            pl.BlockSpec((1, 1, T, L), lambda b, s: (b, 0, s, 0)),
        ],
        out_specs=pl.BlockSpec((1, 1, T, L), lambda b, s: (b, 0, s, 0)),
        compiler_params=pltpu.CompilerParams(
            dimension_semantics=("parallel", "parallel"),
            vmem_limit_bytes=_vmem_limit(block_bytes)),
    )(Ir, Ar, tr, Jr, Apr)
    return out.reshape(B, 1, H, W)


# ----------------------------------------------------------------------------
# U-Net (1 -> 1 channel, ngf features), NCHW throughout.
# TODO(synk): the exact unet.make_model architecture from the reference repo is
# not provided; this is a small deterministic 2-level encoder/decoder U-Net
# (nearest-neighbour upsample; the reference may use bilinear / transposed conv).
# ----------------------------------------------------------------------------
def avg_pool2(x):
    B, C, H, W = x.shape
    return x.reshape(B, C, H // 2, 2, W // 2, 2).mean(axis=(3, 5))


def upsample2(x):
    return jnp.repeat(jnp.repeat(x, 2, axis=2), 2, axis=3)


def init_unet_params(key, ngf):
    def conv_init(k, cin, cout):
        fan = 9 * cin
        w = jax.random.normal(k, (3, 3, cin, cout), jnp.float32) / jnp.sqrt(fan)
        b = jnp.zeros((cout,), jnp.float32)
        return w, b

    k1, k2, k3, k4 = jax.random.split(key, 4)
    return {
        "conv1": conv_init(k1, 1, ngf),
        "conv2": conv_init(k2, ngf, 2 * ngf),
        "conv3": conv_init(k3, 3 * ngf, ngf),
        "conv4": conv_init(k4, ngf, 1),
    }


def unet_forward(a_nchw, params):
    e1 = conv3x3(a_nchw, *params["conv1"], relu=True)          # (B, ngf,  H,   W)
    p1 = avg_pool2(e1)                                         # (B, ngf,  H/2, W/2)
    e2 = conv3x3(p1, *params["conv2"], relu=True)              # (B, 2ngf, H/2, W/2)
    u1 = upsample2(e2)                                         # (B, 2ngf, H,   W)
    # TODO(synk): the skip concat + conv4 could be fused into the conv3 kernel
    # (two accumulating dot groups, keep d1 in VMEM); kept as plain ops here.
    d1 = conv3x3(jnp.concatenate([e1, u1], axis=1),
                 *params["conv3"], relu=True)                  # (B, ngf,  H,   W)
    out = conv3x3(d1, *params["conv4"], relu=False)            # (B, 1,    H,   W)
    return out


# ----------------------------------------------------------------------------
# A_net forward
# ----------------------------------------------------------------------------
def a_net_forward(I_A_t_J, unet_params, t_clamp, weight_A_prior):
    I = I_A_t_J[:, 0:3, :, :]
    A = I_A_t_J[:, 3:4, :, :]
    t = I_A_t_J[:, 4:5, :, :]
    J = I_A_t_J[:, 5:8, :, :]
    A_prior = unet_forward(A, unet_params)
    return a_update(I, A, t, J, A_prior, t_clamp, weight_A_prior)


if __name__ == "__main__":
    key = jax.random.PRNGKey(0)
    kx, kp = jax.random.split(key)

    B, H, W = 2, 16, 16
    ngf = 8                    # args.n_feats
    t_clamp = 0.05             # args.t_clamp
    weight_A_prior = 0.01      # args.weight_A_prior

    x = jax.random.normal(kx, (B, 8, H, W), jnp.float32)
    params = init_unet_params(kp, ngf)

    fwd = jax.jit(a_net_forward, static_argnames=("t_clamp", "weight_A_prior"))
    out = fwd(x, params, t_clamp=t_clamp, weight_A_prior=weight_A_prior)
    out = jax.block_until_ready(out)
    assert out.shape == (B, 1, H, W) and out.dtype == jnp.float32
    print("KERNEL_OK")
</pallas_src>

<mosaic_0001>
module attributes {stable_mosaic.version = 11 : i64} {
  func.func @_conv3x3_kernel(%arg0: i32, %arg1: i32, %arg2: memref<1x1x1x512xbf16, #tpu.memory_space<vmem>>, %arg3: memref<9x8x1xbf16, #tpu.memory_space<vmem>>, %arg4: memref<8x1xf32, #tpu.memory_space<vmem>>, %arg5: memref<1x1x8x384xf32, #tpu.memory_space<vmem>>) attributes {dimension_semantics = [#tpu.dimension_semantics<parallel>, #tpu.dimension_semantics<parallel>], iteration_bounds = array<i64: 2, 1>, scalar_prefetch = 0 : i64, scratch_operands = 0 : i64, tpu.core_type = #tpu.core_type<tc>, window_params = [{transform_indices = @transform_0, window_bounds = array<i64: 1, 1, 1, 512>}, {pipeline_mode = #tpu.pipeline_mode<synchronous>, transform_indices = @transform_1, window_bounds = array<i64: 9, 8, 1>}, {pipeline_mode = #tpu.pipeline_mode<synchronous>, transform_indices = @transform_2, window_bounds = array<i64: 8, 1>}, {transform_indices = @transform_3, window_bounds = array<i64: 1, 1, 8, 384>}]} {
    %cst = arith.constant 0.000000e+00 : f32
    %0 = vector.broadcast %cst : f32 to vector<8x384xf32>
    %c0 = arith.constant 0 : index
    %c0_0 = arith.constant 0 : index
    %c0_1 = arith.constant 0 : index
    %c0_2 = arith.constant 0 : index
    %1 = vector.load %arg2[%c0, %c0_0, %c0_1, %c0_2] : memref<1x1x1x512xbf16, #tpu.memory_space<vmem>>, vector<1x1x1x384xbf16>
    %2 = vector.shape_cast %1 : vector<1x1x1x384xbf16> to vector<1x384xbf16>
    %c0_3 = arith.constant 0 : index
    %c0_4 = arith.constant 0 : index
    %c0_5 = arith.constant 0 : index
    %3 = vector.load %arg3[%c0_3, %c0_4, %c0_5] : memref<9x8x1xbf16, #tpu.memory_space<vmem>>, vector<1x8x1xbf16>
    %4 = vector.shape_cast %3 : vector<1x8x1xbf16> to vector<8x1xbf16>
    %5 = arith.extf %4 : vector<8x1xbf16> to vector<8x1xf32>
    %6 = arith.extf %2 : vector<1x384xbf16> to vector<1x384xf32>
    %7 = vector.broadcast %5 : vector<8x1xf32> to vector<8x384xf32>
    %8 = vector.broadcast %6 : vector<1x384xf32> to vector<8x384xf32>
    %9 = arith.mulf %7, %8 : vector<8x384xf32>
    %10 = arith.addf %0, %9 : vector<8x384xf32>
    %c0_6 = arith.constant 0 : index
    %c0_7 = arith.constant 0 : index
    %c0_8 = arith.constant 0 : index
    %c1 = arith.constant 1 : index
    %11 = vector.load %arg2[%c0_6, %c0_7, %c0_8, %c1] : memref<1x1x1x512xbf16, #tpu.memory_space<vmem>>, vector<1x1x1x384xbf16>
    %12 = vector.shape_cast %11 : vector<1x1x1x384xbf16> to vector<1x384xbf16>
    %c1_9 = arith.constant 1 : index
    %c0_10 = arith.constant 0 : index
    %c0_11 = arith.constant 0 : index
    %13 = vector.load %arg3[%c1_9, %c0_10, %c0_11] : memref<9x8x1xbf16, #tpu.memory_space<vmem>>, vector<1x8x1xbf16>
    %14 = vector.shape_cast %13 : vector<1x8x1xbf16> to vector<8x1xbf16>
    %15 = arith.extf %14 : vector<8x1xbf16> to vector<8x1xf32>
    %16 = arith.extf %12 : vector<1x384xbf16> to vector<1x384xf32>
    %17 = vector.broadcast %15 : vector<8x1xf32> to vector<8x384xf32>
    %18 = vector.broadcast %16 : vector<1x384xf32> to vector<8x384xf32>
    %19 = arith.mulf %17, %18 : vector<8x384xf32>
    %20 = arith.addf %10, %19 : vector<8x384xf32>
    %c0_12 = arith.constant 0 : index
    %c0_13 = arith.constant 0 : index
    %c0_14 = arith.constant 0 : index
    %c2 = arith.constant 2 : index
    %21 = vector.load %arg2[%c0_12, %c0_13, %c0_14, %c2] : memref<1x1x1x512xbf16, #tpu.memory_space<vmem>>, vector<1x1x1x384xbf16>
    %22 = vector.shape_cast %21 : vector<1x1x1x384xbf16> to vector<1x384xbf16>
    %c2_15 = arith.constant 2 : index
    %c0_16 = arith.constant 0 : index
    %c0_17 = arith.constant 0 : index
    %23 = vector.load %arg3[%c2_15, %c0_16, %c0_17] : memref<9x8x1xbf16, #tpu.memory_space<vmem>>, vector<1x8x1xbf16>
    %24 = vector.shape_cast %23 : vector<1x8x1xbf16> to vector<8x1xbf16>
    %25 = arith.extf %24 : vector<8x1xbf16> to vector<8x1xf32>
    %26 = arith.extf %22 : vector<1x384xbf16> to vector<1x384xf32>
    %27 = vector.broadcast %25 : vector<8x1xf32> to vector<8x384xf32>
    %28 = vector.broadcast %26 : vector<1x384xf32> to vector<8x384xf32>
    %29 = arith.mulf %27, %28 : vector<8x384xf32>
    %30 = arith.addf %20, %29 : vector<8x384xf32>
    %c0_18 = arith.constant 0 : index
    %c0_19 = arith.constant 0 : index
    %c0_20 = arith.constant 0 : index
    %c18 = arith.constant 18 : index
    %31 = vector.load %arg2[%c0_18, %c0_19, %c0_20, %c18] : memref<1x1x1x512xbf16, #tpu.memory_space<vmem>>, vector<1x1x1x384xbf16>
    %32 = vector.shape_cast %31 : vector<1x1x1x384xbf16> to vector<1x384xbf16>
    %c3 = arith.constant 3 : index
    %c0_21 = arith.constant 0 : index
    %c0_22 = arith.constant 0 : index
    %33 = vector.load %arg3[%c3, %c0_21, %c0_22] : memref<9x8x1xbf16, #tpu.memory_space<vmem>>, vector<1x8x1xbf16>
    %34 = vector.shape_cast %33 : vector<1x8x1xbf16> to vector<8x1xbf16>
    %35 = arith.extf %34 : vector<8x1xbf16> to vector<8x1xf32>
    %36 = arith.extf %32 : vector<1x384xbf16> to vector<1x384xf32>
    %37 = vector.broadcast %35 : vector<8x1xf32> to vector<8x384xf32>
    %38 = vector.broadcast %36 : vector<1x384xf32> to vector<8x384xf32>
    %39 = arith.mulf %37, %38 : vector<8x384xf32>
    %40 = arith.addf %30, %39 : vector<8x384xf32>
    %c0_23 = arith.constant 0 : index
    %c0_24 = arith.constant 0 : index
    %c0_25 = arith.constant 0 : index
    %c19 = arith.constant 19 : index
    %41 = vector.load %arg2[%c0_23, %c0_24, %c0_25, %c19] : memref<1x1x1x512xbf16, #tpu.memory_space<vmem>>, vector<1x1x1x384xbf16>
    %42 = vector.shape_cast %41 : vector<1x1x1x384xbf16> to vector<1x384xbf16>
    %c4 = arith.constant 4 : index
    %c0_26 = arith.constant 0 : index
    %c0_27 = arith.constant 0 : index
    %43 = vector.load %arg3[%c4, %c0_26, %c0_27] : memref<9x8x1xbf16, #tpu.memory_space<vmem>>, vector<1x8x1xbf16>
    %44 = vector.shape_cast %43 : vector<1x8x1xbf16> to vector<8x1xbf16>
    %45 = arith.extf %44 : vector<8x1xbf16> to vector<8x1xf32>
    %46 = arith.extf %42 : vector<1x384xbf16> to vector<1x384xf32>
    %47 = vector.broadcast %45 : vector<8x1xf32> to vector<8x384xf32>
    %48 = vector.broadcast %46 : vector<1x384xf32> to vector<8x384xf32>
    %49 = arith.mulf %47, %48 : vector<8x384xf32>
    %50 = arith.addf %40, %49 : vector<8x384xf32>
    %c0_28 = arith.constant 0 : index
    %c0_29 = arith.constant 0 : index
    %c0_30 = arith.constant 0 : index
    %c20 = arith.constant 20 : index
    %51 = vector.load %arg2[%c0_28, %c0_29, %c0_30, %c20] : memref<1x1x1x512xbf16, #tpu.memory_space<vmem>>, vector<1x1x1x384xbf16>
    %52 = vector.shape_cast %51 : vector<1x1x1x384xbf16> to vector<1x384xbf16>
    %c5 = arith.constant 5 : index
    %c0_31 = arith.constant 0 : index
    %c0_32 = arith.constant 0 : index
    %53 = vector.load %arg3[%c5, %c0_31, %c0_32] : memref<9x8x1xbf16, #tpu.memory_space<vmem>>, vector<1x8x1xbf16>
    %54 = vector.shape_cast %53 : vector<1x8x1xbf16> to vector<8x1xbf16>
    %55 = arith.extf %54 : vector<8x1xbf16> to vector<8x1xf32>
    %56 = arith.extf %52 : vector<1x384xbf16> to vector<1x384xf32>
    %57 = vector.broadcast %55 : vector<8x1xf32> to vector<8x384xf32>
    %58 = vector.broadcast %56 : vector<1x384xf32> to vector<8x384xf32>
    %59 = arith.mulf %57, %58 : vector<8x384xf32>
    %60 = arith.addf %50, %59 : vector<8x384xf32>
    %c0_33 = arith.constant 0 : index
    %c0_34 = arith.constant 0 : index
    %c0_35 = arith.constant 0 : index
    %c36 = arith.constant 36 : index
    %61 = vector.load %arg2[%c0_33, %c0_34, %c0_35, %c36] : memref<1x1x1x512xbf16, #tpu.memory_space<vmem>>, vector<1x1x1x384xbf16>
    %62 = vector.shape_cast %61 : vector<1x1x1x384xbf16> to vector<1x384xbf16>
    %c6 = arith.constant 6 : index
    %c0_36 = arith.constant 0 : index
    %c0_37 = arith.constant 0 : index
    %63 = vector.load %arg3[%c6, %c0_36, %c0_37] : memref<9x8x1xbf16, #tpu.memory_space<vmem>>, vector<1x8x1xbf16>
    %64 = vector.shape_cast %63 : vector<1x8x1xbf16> to vector<8x1xbf16>
    %65 = arith.extf %64 : vector<8x1xbf16> to vector<8x1xf32>
    %66 = arith.extf %62 : vector<1x384xbf16> to vector<1x384xf32>
    %67 = vector.broadcast %65 : vector<8x1xf32> to vector<8x384xf32>
    %68 = vector.broadcast %66 : vector<1x384xf32> to vector<8x384xf32>
    %69 = arith.mulf %67, %68 : vector<8x384xf32>
    %70 = arith.addf %60, %69 : vector<8x384xf32>
    %c0_38 = arith.constant 0 : index
    %c0_39 = arith.constant 0 : index
    %c0_40 = arith.constant 0 : index
    %c37 = arith.constant 37 : index
    %71 = vector.load %arg2[%c0_38, %c0_39, %c0_40, %c37] : memref<1x1x1x512xbf16, #tpu.memory_space<vmem>>, vector<1x1x1x384xbf16>
    %72 = vector.shape_cast %71 : vector<1x1x1x384xbf16> to vector<1x384xbf16>
    %c7 = arith.constant 7 : index
    %c0_41 = arith.constant 0 : index
    %c0_42 = arith.constant 0 : index
    %73 = vector.load %arg3[%c7, %c0_41, %c0_42] : memref<9x8x1xbf16, #tpu.memory_space<vmem>>, vector<1x8x1xbf16>
    %74 = vector.shape_cast %73 : vector<1x8x1xbf16> to vector<8x1xbf16>
    %75 = arith.extf %74 : vector<8x1xbf16> to vector<8x1xf32>
    %76 = arith.extf %72 : vector<1x384xbf16> to vector<1x384xf32>
    %77 = vector.broadcast %75 : vector<8x1xf32> to vector<8x384xf32>
    %78 = vector.broadcast %76 : vector<1x384xf32> to vector<8x384xf32>
    %79 = arith.mulf %77, %78 : vector<8x384xf32>
    %80 = arith.addf %70, %79 : vector<8x384xf32>
    %c0_43 = arith.constant 0 : index
    %c0_44 = arith.constant 0 : index
    %c0_45 = arith.constant 0 : index
    %c38 = arith.constant 38 : index
    %81 = vector.load %arg2[%c0_43, %c0_44, %c0_45, %c38] : memref<1x1x1x512xbf16, #tpu.memory_space<vmem>>, vector<1x1x1x384xbf16>
    %82 = vector.shape_cast %81 : vector<1x1x1x384xbf16> to vector<1x384xbf16>
    %c8 = arith.constant 8 : index
    %c0_46 = arith.constant 0 : index
    %c0_47 = arith.constant 0 : index
    %83 = vector.load %arg3[%c8, %c0_46, %c0_47] : memref<9x8x1xbf16, #tpu.memory_space<vmem>>, vector<1x8x1xbf16>
    %84 = vector.shape_cast %83 : vector<1x8x1xbf16> to vector<8x1xbf16>
    %85 = arith.extf %84 : vector<8x1xbf16> to vector<8x1xf32>
    %86 = arith.extf %82 : vector<1x384xbf16> to vector<1x384xf32>
    %87 = vector.broadcast %85 : vector<8x1xf32> to vector<8x384xf32>
    %88 = vector.broadcast %86 : vector<1x384xf32> to vector<8x384xf32>
    %89 = arith.mulf %87, %88 : vector<8x384xf32>
    %90 = arith.addf %80, %89 : vector<8x384xf32>
    %c0_48 = arith.constant 0 : index
    %c0_49 = arith.constant 0 : index
    %91 = vector.load %arg4[%c0_48, %c0_49] : memref<8x1xf32, #tpu.memory_space<vmem>>, vector<8x1xf32>
    %92 = vector.broadcast %91 : vector<8x1xf32> to vector<8x384xf32>
    %93 = arith.addf %90, %92 : vector<8x384xf32>
    %cst_50 = arith.constant 0.000000e+00 : f32
    %94 = vector.broadcast %cst_50 : f32 to vector<8x384xf32>
    %95 = arith.maximumf %93, %94 : vector<8x384xf32>
    %c0_51 = arith.constant 0 : index
    %c0_52 = arith.constant 0 : index
    %c0_53 = arith.constant 0 : index
    %c0_54 = arith.constant 0 : index
    %96 = vector.load %arg5[%c0_51, %c0_52, %c0_53, %c0_54] : memref<1x1x8x384xf32, #tpu.memory_space<vmem>>, vector<1x1x8x384xf32>
    %97 = vector.shape_cast %96 : vector<1x1x8x384xf32> to vector<8x384xf32>
    %98 = vector.shape_cast %95 : vector<8x384xf32> to vector<1x1x8x384xf32>
    tpu.vector_store %arg5[%c0_51, %c0_52, %c0_53, %c0_54], %98 {strides = array<i32>} : memref<1x1x8x384xf32, #tpu.memory_space<vmem>>, vector<1x1x8x384xf32>,
    return
  }
  func.func @transform_0(%arg0: i32, %arg1: i32) -> (i32, i32, i32, i32) {
    %c0_i32 = arith.constant 0 : i32
    %c0_i32_0 = arith.constant 0 : i32
    %c0_i32_1 = arith.constant 0 : i32
    return %arg0, %arg1, %c0_i32, %c0_i32_0 : i32, i32, i32, i32
  }
  func.func @transform_1(%arg0: i32, %arg1: i32) -> (i32, i32, i32) {
    %c0_i32 = arith.constant 0 : i32
    %c0_i32_0 = arith.constant 0 : i32
    %c0_i32_1 = arith.constant 0 : i32
    %c0_i32_2 = arith.constant 0 : i32
    return %c0_i32, %c0_i32_0, %c0_i32_1 : i32, i32, i32
  }
  func.func @transform_2(%arg0: i32, %arg1: i32) -> (i32, i32) {
    %c0_i32 = arith.constant 0 : i32
    %c0_i32_0 = arith.constant 0 : i32
    %c0_i32_1 = arith.constant 0 : i32
    return %c0_i32, %c0_i32_0 : i32, i32
  }
  func.func @transform_3(%arg0: i32, %arg1: i32) -> (i32, i32, i32, i32) {
    %c0_i32 = arith.constant 0 : i32
    %c0_i32_0 = arith.constant 0 : i32
    %c0_i32_1 = arith.constant 0 : i32
    return %arg0, %arg1, %c0_i32, %c0_i32_0 : i32, i32, i32, i32
  }
}

module attributes {stable_mosaic.version = 11 : i64} {
  func.func @_conv3x3_kernel(%arg0: i32, %arg1: i32, %arg2: memref<1x1x8x256xbf16, #tpu.memory_space<vmem>>, %arg3: memref<9x16x8xbf16, #tpu.memory_space<vmem>>, %arg4: memref<16x1xf32, #tpu.memory_space<vmem>>, %arg5: memref<1x1x16x128xf32, #tpu.memory_space<vmem>>) attributes {dimension_semantics = [#tpu.dimension_semantics<parallel>, #tpu.dimension_semantics<parallel>], iteration_bounds = array<i64: 2, 1>, scalar_prefetch = 0 : i64, scratch_operands = 0 : i64, tpu.core_type = #tpu.core_type<tc>, window_params = [{transform_indices = @transform_0, window_bounds = array<i64: 1, 1, 8, 256>}, {pipeline_mode = #tpu.pipeline_mode<synchronous>, transform_indices = @transform_1, window_bounds = array<i64: 9, 16, 8>}, {pipeline_mode = #tpu.pipeline_mode<synchronous>, transform_indices = @transform_2, window_bounds = array<i64: 16, 1>}, {transform_indices = @transform_3, window_bounds = array<i64: 1, 1, 16, 128>}]} {
    %cst = arith.constant 0.000000e+00 : f32
    %0 = vector.broadcast %cst : f32 to vector<16x128xf32>
    %c0 = arith.constant 0 : index
    %c0_0 = arith.constant 0 : index
    %c0_1 = arith.constant 0 : index
    %c0_2 = arith.constant 0 : index
    %1 = vector.load %arg2[%c0, %c0_0, %c0_1, %c0_2] : memref<1x1x8x256xbf16, #tpu.memory_space<vmem>>, vector<1x1x8x128xbf16>
    %2 = vector.shape_cast %1 : vector<1x1x8x128xbf16> to vector<8x128xbf16>
    %c0_3 = arith.constant 0 : index
    %c0_4 = arith.constant 0 : index
    %c0_5 = arith.constant 0 : index
    %3 = vector.load %arg3[%c0_3, %c0_4, %c0_5] : memref<9x16x8xbf16, #tpu.memory_space<vmem>>, vector<1x16x8xbf16>
    %4 = vector.shape_cast %3 : vector<1x16x8xbf16> to vector<16x8xbf16>
    %cst_6 = arith.constant dense<0.000000e+00> : vector<16x128xf32>
    %5 = tpu.matmul %4, %2, %cst_6 {dimension_numbers = #tpu.dot_dimension_numbers<[1], [0], [0], [1], [0, 0, 1, 1], [], []>} : vector<16x8xbf16>, vector<8x128xbf16>, vector<16x128xf32> -> vector<16x128xf32>
    %6 = arith.addf %0, %5 : vector<16x128xf32>
    %c0_7 = arith.constant 0 : index
    %c0_8 = arith.constant 0 : index
    %c0_9 = arith.constant 0 : index
    %c1 = arith.constant 1 : index
    %7 = vector.load %arg2[%c0_7, %c0_8, %c0_9, %c1] : memref<1x1x8x256xbf16, #tpu.memory_space<vmem>>, vector<1x1x8x128xbf16>
    %8 = vector.shape_cast %7 : vector<1x1x8x128xbf16> to vector<8x128xbf16>
    %c1_10 = arith.constant 1 : index
    %c0_11 = arith.constant 0 : index
    %c0_12 = arith.constant 0 : index
    %9 = vector.load %arg3[%c1_10, %c0_11, %c0_12] : memref<9x16x8xbf16, #tpu.memory_space<vmem>>, vector<1x16x8xbf16>
    %10 = vector.shape_cast %9 : vector<1x16x8xbf16> to vector<16x8xbf16>
    %cst_13 = arith.constant dense<0.000000e+00> : vector<16x128xf32>
    %11 = tpu.matmul %10, %8, %cst_13 {dimension_numbers = #tpu.dot_dimension_numbers<[1], [0], [0], [1], [0, 0, 1, 1], [], []>} : vector<16x8xbf16>, vector<8x128xbf16>, vector<16x128xf32> -> vector<16x128xf32>
    %12 = arith.addf %6, %11 : vector<16x128xf32>
    %c0_14 = arith.constant 0 : index
    %c0_15 = arith.constant 0 : index
    %c0_16 = arith.constant 0 : index
    %c2 = arith.constant 2 : index
    %13 = vector.load %arg2[%c0_14, %c0_15, %c0_16, %c2] : memref<1x1x8x256xbf16, #tpu.memory_space<vmem>>, vector<1x1x8x128xbf16>
    %14 = vector.shape_cast %13 : vector<1x1x8x128xbf16> to vector<8x128xbf16>
    %c2_17 = arith.constant 2 : index
    %c0_18 = arith.constant 0 : index
    %c0_19 = arith.constant 0 : index
    %15 = vector.load %arg3[%c2_17, %c0_18, %c0_19] : memref<9x16x8xbf16, #tpu.memory_space<vmem>>, vector<1x16x8xbf16>
    %16 = vector.shape_cast %15 : vector<1x16x8xbf16> to vector<16x8xbf16>
    %cst_20 = arith.constant dense<0.000000e+00> : vector<16x128xf32>
    %17 = tpu.matmul %16, %14, %cst_20 {dimension_numbers = #tpu.dot_dimension_numbers<[1], [0], [0], [1], [0, 0, 1, 1], [], []>} : vector<16x8xbf16>, vector<8x128xbf16>, vector<16x128xf32> -> vector<16x128xf32>
    %18 = arith.addf %12, %17 : vector<16x128xf32>
    %c0_21 = arith.constant 0 : index
    %c0_22 = arith.constant 0 : index
    %c0_23 = arith.constant 0 : index
    %c10 = arith.constant 10 : index
    %19 = vector.load %arg2[%c0_21, %c0_22, %c0_23, %c10] : memref<1x1x8x256xbf16, #tpu.memory_space<vmem>>, vector<1x1x8x128xbf16>
    %20 = vector.shape_cast %19 : vector<1x1x8x128xbf16> to vector<8x128xbf16>
    %c3 = arith.constant 3 : index
    %c0_24 = arith.constant 0 : index
    %c0_25 = arith.constant 0 : index
    %21 = vector.load %arg3[%c3, %c0_24, %c0_25] : memref<9x16x8xbf16, #tpu.memory_space<vmem>>, vector<1x16x8xbf16>
    %22 = vector.shape_cast %21 : vector<1x16x8xbf16> to vector<16x8xbf16>
    %cst_26 = arith.constant dense<0.000000e+00> : vector<16x128xf32>
    %23 = tpu.matmul %22, %20, %cst_26 {dimension_numbers = #tpu.dot_dimension_numbers<[1], [0], [0], [1], [0, 0, 1, 1], [], []>} : vector<16x8xbf16>, vector<8x128xbf16>, vector<16x128xf32> -> vector<16x128xf32>
    %24 = arith.addf %18, %23 : vector<16x128xf32>
    %c0_27 = arith.constant 0 : index
    %c0_28 = arith.constant 0 : index
    %c0_29 = arith.constant 0 : index
    %c11 = arith.constant 11 : index
    %25 = vector.load %arg2[%c0_27, %c0_28, %c0_29, %c11] : memref<1x1x8x256xbf16, #tpu.memory_space<vmem>>, vector<1x1x8x128xbf16>
    %26 = vector.shape_cast %25 : vector<1x1x8x128xbf16> to vector<8x128xbf16>
    %c4 = arith.constant 4 : index
    %c0_30 = arith.constant 0 : index
    %c0_31 = arith.constant 0 : index
    %27 = vector.load %arg3[%c4, %c0_30, %c0_31] : memref<9x16x8xbf16, #tpu.memory_space<vmem>>, vector<1x16x8xbf16>
    %28 = vector.shape_cast %27 : vector<1x16x8xbf16> to vector<16x8xbf16>
    %cst_32 = arith.constant dense<0.000000e+00> : vector<16x128xf32>
    %29 = tpu.matmul %28, %26, %cst_32 {dimension_numbers = #tpu.dot_dimension_numbers<[1], [0], [0], [1], [0, 0, 1, 1], [], []>} : vector<16x8xbf16>, vector<8x128xbf16>, vector<16x128xf32> -> vector<16x128xf32>
    %30 = arith.addf %24, %29 : vector<16x128xf32>
    %c0_33 = arith.constant 0 : index
    %c0_34 = arith.constant 0 : index
    %c0_35 = arith.constant 0 : index
    %c12 = arith.constant 12 : index
    %31 = vector.load %arg2[%c0_33, %c0_34, %c0_35, %c12] : memref<1x1x8x256xbf16, #tpu.memory_space<vmem>>, vector<1x1x8x128xbf16>
    %32 = vector.shape_cast %31 : vector<1x1x8x128xbf16> to vector<8x128xbf16>
    %c5 = arith.constant 5 : index
    %c0_36 = arith.constant 0 : index
    %c0_37 = arith.constant 0 : index
    %33 = vector.load %arg3[%c5, %c0_36, %c0_37] : memref<9x16x8xbf16, #tpu.memory_space<vmem>>, vector<1x16x8xbf16>
    %34 = vector.shape_cast %33 : vector<1x16x8xbf16> to vector<16x8xbf16>
    %cst_38 = arith.constant dense<0.000000e+00> : vector<16x128xf32>
    %35 = tpu.matmul %34, %32, %cst_38 {dimension_numbers = #tpu.dot_dimension_numbers<[1], [0], [0], [1], [0, 0, 1, 1], [], []>} : vector<16x8xbf16>, vector<8x128xbf16>, vector<16x128xf32> -> vector<16x128xf32>
    %36 = arith.addf %30, %35 : vector<16x128xf32>
    %c0_39 = arith.constant 0 : index
    %c0_40 = arith.constant 0 : index
    %c0_41 = arith.constant 0 : index
    %c20 = arith.constant 20 : index
    %37 = vector.load %arg2[%c0_39, %c0_40, %c0_41, %c20] : memref<1x1x8x256xbf16, #tpu.memory_space<vmem>>, vector<1x1x8x128xbf16>
    %38 = vector.shape_cast %37 : vector<1x1x8x128xbf16> to vector<8x128xbf16>
    %c6 = arith.constant 6 : index
    %c0_42 = arith.constant 0 : index
    %c0_43 = arith.constant 0 : index
    %39 = vector.load %arg3[%c6, %c0_42, %c0_43] : memref<9x16x8xbf16, #tpu.memory_space<vmem>>, vector<1x16x8xbf16>
    %40 = vector.shape_cast %39 : vector<1x16x8xbf16> to vector<16x8xbf16>
    %cst_44 = arith.constant dense<0.000000e+00> : vector<16x128xf32>
    %41 = tpu.matmul %40, %38, %cst_44 {dimension_numbers = #tpu.dot_dimension_numbers<[1], [0], [0], [1], [0, 0, 1, 1], [], []>} : vector<16x8xbf16>, vector<8x128xbf16>, vector<16x128xf32> -> vector<16x128xf32>
    %42 = arith.addf %36, %41 : vector<16x128xf32>
    %c0_45 = arith.constant 0 : index
    %c0_46 = arith.constant 0 : index
    %c0_47 = arith.constant 0 : index
    %c21 = arith.constant 21 : index
    %43 = vector.load %arg2[%c0_45, %c0_46, %c0_47, %c21] : memref<1x1x8x256xbf16, #tpu.memory_space<vmem>>, vector<1x1x8x128xbf16>
    %44 = vector.shape_cast %43 : vector<1x1x8x128xbf16> to vector<8x128xbf16>
    %c7 = arith.constant 7 : index
    %c0_48 = arith.constant 0 : index
    %c0_49 = arith.constant 0 : index
    %45 = vector.load %arg3[%c7, %c0_48, %c0_49] : memref<9x16x8xbf16, #tpu.memory_space<vmem>>, vector<1x16x8xbf16>
    %46 = vector.shape_cast %45 : vector<1x16x8xbf16> to vector<16x8xbf16>
    %cst_50 = arith.constant dense<0.000000e+00> : vector<16x128xf32>
    %47 = tpu.matmul %46, %44, %cst_50 {dimension_numbers = #tpu.dot_dimension_numbers<[1], [0], [0], [1], [0, 0, 1, 1], [], []>} : vector<16x8xbf16>, vector<8x128xbf16>, vector<16x128xf32> -> vector<16x128xf32>
    %48 = arith.addf %42, %47 : vector<16x128xf32>
    %c0_51 = arith.constant 0 : index
    %c0_52 = arith.constant 0 : index
    %c0_53 = arith.constant 0 : index
    %c22 = arith.constant 22 : index
    %49 = vector.load %arg2[%c0_51, %c0_52, %c0_53, %c22] : memref<1x1x8x256xbf16, #tpu.memory_space<vmem>>, vector<1x1x8x128xbf16>
    %50 = vector.shape_cast %49 : vector<1x1x8x128xbf16> to vector<8x128xbf16>
    %c8 = arith.constant 8 : index
    %c0_54 = arith.constant 0 : index
    %c0_55 = arith.constant 0 : index
    %51 = vector.load %arg3[%c8, %c0_54, %c0_55] : memref<9x16x8xbf16, #tpu.memory_space<vmem>>, vector<1x16x8xbf16>
    %52 = vector.shape_cast %51 : vector<1x16x8xbf16> to vector<16x8xbf16>
    %cst_56 = arith.constant dense<0.000000e+00> : vector<16x128xf32>
    %53 = tpu.matmul %52, %50, %cst_56 {dimension_numbers = #tpu.dot_dimension_numbers<[1], [0], [0], [1], [0, 0, 1, 1], [], []>} : vector<16x8xbf16>, vector<8x128xbf16>, vector<16x128xf32> -> vector<16x128xf32>
    %54 = arith.addf %48, %53 : vector<16x128xf32>
    %c0_57 = arith.constant 0 : index
    %c0_58 = arith.constant 0 : index
    %55 = vector.load %arg4[%c0_57, %c0_58] : memref<16x1xf32, #tpu.memory_space<vmem>>, vector<16x1xf32>
    %56 = vector.broadcast %55 : vector<16x1xf32> to vector<16x128xf32>
    %57 = arith.addf %54, %56 : vector<16x128xf32>
    %cst_59 = arith.constant 0.000000e+00 : f32
    %58 = vector.broadcast %cst_59 : f32 to vector<16x128xf32>
    %59 = arith.maximumf %57, %58 : vector<16x128xf32>
    %c0_60 = arith.constant 0 : index
    %c0_61 = arith.constant 0 : index
    %c0_62 = arith.constant 0 : index
    %c0_63 = arith.constant 0 : index
    %60 = vector.load %arg5[%c0_60, %c0_61, %c0_62, %c0_63] : memref<1x1x16x128xf32, #tpu.memory_space<vmem>>, vector<1x1x16x128xf32>
    %61 = vector.shape_cast %60 : vector<1x1x16x128xf32> to vector<16x128xf32>
    %62 = vector.shape_cast %59 : vector<16x128xf32> to vector<1x1x16x128xf32>
    tpu.vector_store %arg5[%c0_60, %c0_61, %c0_62, %c0_63], %62 {strides = array<i32>} : memref<1x1x16x128xf32, #tpu.memory_space<vmem>>, vector<1x1x16x128xf32>,
    return
  }
  func.func @transform_0(%arg0: i32, %arg1: i32) -> (i32, i32, i32, i32) {
    %c0_i32 = arith.constant 0 : i32
    %c0_i32_0 = arith.constant 0 : i32
    %c0_i32_1 = arith.constant 0 : i32
    return %arg0, %arg1, %c0_i32, %c0_i32_0 : i32, i32, i32, i32
  }
  func.func @transform_1(%arg0: i32, %arg1: i32) -> (i32, i32, i32) {
    %c0_i32 = arith.constant 0 : i32
    %c0_i32_0 = arith.constant 0 : i32
    %c0_i32_1 = arith.constant 0 : i32
    %c0_i32_2 = arith.constant 0 : i32
    return %c0_i32, %c0_i32_0, %c0_i32_1 : i32, i32, i32
  }
  func.func @transform_2(%arg0: i32, %arg1: i32) -> (i32, i32) {
    %c0_i32 = arith.constant 0 : i32
    %c0_i32_0 = arith.constant 0 : i32
    %c0_i32_1 = arith.constant 0 : i32
    return %c0_i32, %c0_i32_0 : i32, i32
  }
  func.func @transform_3(%arg0: i32, %arg1: i32) -> (i32, i32, i32, i32) {
    %c0_i32 = arith.constant 0 : i32
    %c0_i32_0 = arith.constant 0 : i32
    %c0_i32_1 = arith.constant 0 : i32
    return %arg0, %arg1, %c0_i32, %c0_i32_0 : i32, i32, i32, i32
  }
}

module attributes {stable_mosaic.version = 11 : i64} {
  func.func @_conv3x3_kernel(%arg0: i32, %arg1: i32, %arg2: memref<1x1x24x512xbf16, #tpu.memory_space<vmem>>, %arg3: memref<9x8x24xbf16, #tpu.memory_space<vmem>>, %arg4: memref<8x1xf32, #tpu.memory_space<vmem>>, %arg5: memref<1x1x8x384xf32, #tpu.memory_space<vmem>>) attributes {dimension_semantics = [#tpu.dimension_semantics<parallel>, #tpu.dimension_semantics<parallel>], iteration_bounds = array<i64: 2, 1>, scalar_prefetch = 0 : i64, scratch_operands = 0 : i64, tpu.core_type = #tpu.core_type<tc>, window_params = [{transform_indices = @transform_0, window_bounds = array<i64: 1, 1, 24, 512>}, {pipeline_mode = #tpu.pipeline_mode<synchronous>, transform_indices = @transform_1, window_bounds = array<i64: 9, 8, 24>}, {pipeline_mode = #tpu.pipeline_mode<synchronous>, transform_indices = @transform_2, window_bounds = array<i64: 8, 1>}, {transform_indices = @transform_3, window_bounds = array<i64: 1, 1, 8, 384>}]} {
    %cst = arith.constant 0.000000e+00 : f32
    %0 = vector.broadcast %cst : f32 to vector<8x384xf32>
    %c0 = arith.constant 0 : index
    %c0_0 = arith.constant 0 : index
    %c0_1 = arith.constant 0 : index
    %c0_2 = arith.constant 0 : index
    %1 = vector.load %arg2[%c0, %c0_0, %c0_1, %c0_2] : memref<1x1x24x512xbf16, #tpu.memory_space<vmem>>, vector<1x1x24x384xbf16>
    %2 = vector.shape_cast %1 : vector<1x1x24x384xbf16> to vector<24x384xbf16>
    %c0_3 = arith.constant 0 : index
    %c0_4 = arith.constant 0 : index
    %c0_5 = arith.constant 0 : index
    %3 = vector.load %arg3[%c0_3, %c0_4, %c0_5] : memref<9x8x24xbf16, #tpu.memory_space<vmem>>, vector<1x8x24xbf16>
    %4 = vector.shape_cast %3 : vector<1x8x24xbf16> to vector<8x24xbf16>
    %cst_6 = arith.constant dense<0.000000e+00> : vector<8x384xf32>
    %5 = tpu.matmul %4, %2, %cst_6 {dimension_numbers = #tpu.dot_dimension_numbers<[1], [0], [0], [1], [0, 0, 1, 1], [], []>} : vector<8x24xbf16>, vector<24x384xbf16>, vector<8x384xf32> -> vector<8x384xf32>
    %6 = arith.addf %0, %5 : vector<8x384xf32>
    %c0_7 = arith.constant 0 : index
    %c0_8 = arith.constant 0 : index
    %c0_9 = arith.constant 0 : index
    %c1 = arith.constant 1 : index
    %7 = vector.load %arg2[%c0_7, %c0_8, %c0_9, %c1] : memref<1x1x24x512xbf16, #tpu.memory_space<vmem>>, vector<1x1x24x384xbf16>
    %8 = vector.shape_cast %7 : vector<1x1x24x384xbf16> to vector<24x384xbf16>
    %c1_10 = arith.constant 1 : index
    %c0_11 = arith.constant 0 : index
    %c0_12 = arith.constant 0 : index
    %9 = vector.load %arg3[%c1_10, %c0_11, %c0_12] : memref<9x8x24xbf16, #tpu.memory_space<vmem>>, vector<1x8x24xbf16>
    %10 = vector.shape_cast %9 : vector<1x8x24xbf16> to vector<8x24xbf16>
    %cst_13 = arith.constant dense<0.000000e+00> : vector<8x384xf32>
    %11 = tpu.matmul %10, %8, %cst_13 {dimension_numbers = #tpu.dot_dimension_numbers<[1], [0], [0], [1], [0, 0, 1, 1], [], []>} : vector<8x24xbf16>, vector<24x384xbf16>, vector<8x384xf32> -> vector<8x384xf32>
    %12 = arith.addf %6, %11 : vector<8x384xf32>
    %c0_14 = arith.constant 0 : index
    %c0_15 = arith.constant 0 : index
    %c0_16 = arith.constant 0 : index
    %c2 = arith.constant 2 : index
    %13 = vector.load %arg2[%c0_14, %c0_15, %c0_16, %c2] : memref<1x1x24x512xbf16, #tpu.memory_space<vmem>>, vector<1x1x24x384xbf16>
    %14 = vector.shape_cast %13 : vector<1x1x24x384xbf16> to vector<24x384xbf16>
    %c2_17 = arith.constant 2 : index
    %c0_18 = arith.constant 0 : index
    %c0_19 = arith.constant 0 : index
    %15 = vector.load %arg3[%c2_17, %c0_18, %c0_19] : memref<9x8x24xbf16, #tpu.memory_space<vmem>>, vector<1x8x24xbf16>
    %16 = vector.shape_cast %15 : vector<1x8x24xbf16> to vector<8x24xbf16>
    %cst_20 = arith.constant dense<0.000000e+00> : vector<8x384xf32>
    %17 = tpu.matmul %16, %14, %cst_20 {dimension_numbers = #tpu.dot_dimension_numbers<[1], [0], [0], [1], [0, 0, 1, 1], [], []>} : vector<8x24xbf16>, vector<24x384xbf16>, vector<8x384xf32> -> vector<8x384xf32>
    %18 = arith.addf %12, %17 : vector<8x384xf32>
    %c0_21 = arith.constant 0 : index
    %c0_22 = arith.constant 0 : index
    %c0_23 = arith.constant 0 : index
    %c18 = arith.constant 18 : index
    %19 = vector.load %arg2[%c0_21, %c0_22, %c0_23, %c18] : memref<1x1x24x512xbf16, #tpu.memory_space<vmem>>, vector<1x1x24x384xbf16>
    %20 = vector.shape_cast %19 : vector<1x1x24x384xbf16> to vector<24x384xbf16>
    %c3 = arith.constant 3 : index
    %c0_24 = arith.constant 0 : index
    %c0_25 = arith.constant 0 : index
    %21 = vector.load %arg3[%c3, %c0_24, %c0_25] : memref<9x8x24xbf16, #tpu.memory_space<vmem>>, vector<1x8x24xbf16>
    %22 = vector.shape_cast %21 : vector<1x8x24xbf16> to vector<8x24xbf16>
    %cst_26 = arith.constant dense<0.000000e+00> : vector<8x384xf32>
    %23 = tpu.matmul %22, %20, %cst_26 {dimension_numbers = #tpu.dot_dimension_numbers<[1], [0], [0], [1], [0, 0, 1, 1], [], []>} : vector<8x24xbf16>, vector<24x384xbf16>, vector<8x384xf32> -> vector<8x384xf32>
    %24 = arith.addf %18, %23 : vector<8x384xf32>
    %c0_27 = arith.constant 0 : index
    %c0_28 = arith.constant 0 : index
    %c0_29 = arith.constant 0 : index
    %c19 = arith.constant 19 : index
    %25 = vector.load %arg2[%c0_27, %c0_28, %c0_29, %c19] : memref<1x1x24x512xbf16, #tpu.memory_space<vmem>>, vector<1x1x24x384xbf16>
    %26 = vector.shape_cast %25 : vector<1x1x24x384xbf16> to vector<24x384xbf16>
    %c4 = arith.constant 4 : index
    %c0_30 = arith.constant 0 : index
    %c0_31 = arith.constant 0 : index
    %27 = vector.load %arg3[%c4, %c0_30, %c0_31] : memref<9x8x24xbf16, #tpu.memory_space<vmem>>, vector<1x8x24xbf16>
    %28 = vector.shape_cast %27 : vector<1x8x24xbf16> to vector<8x24xbf16>
    %cst_32 = arith.constant dense<0.000000e+00> : vector<8x384xf32>
    %29 = tpu.matmul %28, %26, %cst_32 {dimension_numbers = #tpu.dot_dimension_numbers<[1], [0], [0], [1], [0, 0, 1, 1], [], []>} : vector<8x24xbf16>, vector<24x384xbf16>, vector<8x384xf32> -> vector<8x384xf32>
    %30 = arith.addf %24, %29 : vector<8x384xf32>
    %c0_33 = arith.constant 0 : index
    %c0_34 = arith.constant 0 : index
    %c0_35 = arith.constant 0 : index
    %c20 = arith.constant 20 : index
    %31 = vector.load %arg2[%c0_33, %c0_34, %c0_35, %c20] : memref<1x1x24x512xbf16, #tpu.memory_space<vmem>>, vector<1x1x24x384xbf16>
    %32 = vector.shape_cast %31 : vector<1x1x24x384xbf16> to vector<24x384xbf16>
    %c5 = arith.constant 5 : index
    %c0_36 = arith.constant 0 : index
    %c0_37 = arith.constant 0 : index
    %33 = vector.load %arg3[%c5, %c0_36, %c0_37] : memref<9x8x24xbf16, #tpu.memory_space<vmem>>, vector<1x8x24xbf16>
    %34 = vector.shape_cast %33 : vector<1x8x24xbf16> to vector<8x24xbf16>
    %cst_38 = arith.constant dense<0.000000e+00> : vector<8x384xf32>
    %35 = tpu.matmul %34, %32, %cst_38 {dimension_numbers = #tpu.dot_dimension_numbers<[1], [0], [0], [1], [0, 0, 1, 1], [], []>} : vector<8x24xbf16>, vector<24x384xbf16>, vector<8x384xf32> -> vector<8x384xf32>
    %36 = arith.addf %30, %35 : vector<8x384xf32>
    %c0_39 = arith.constant 0 : index
    %c0_40 = arith.constant 0 : index
    %c0_41 = arith.constant 0 : index
    %c36 = arith.constant 36 : index
    %37 = vector.load %arg2[%c0_39, %c0_40, %c0_41, %c36] : memref<1x1x24x512xbf16, #tpu.memory_space<vmem>>, vector<1x1x24x384xbf16>
    %38 = vector.shape_cast %37 : vector<1x1x24x384xbf16> to vector<24x384xbf16>
    %c6 = arith.constant 6 : index
    %c0_42 = arith.constant 0 : index
    %c0_43 = arith.constant 0 : index
    %39 = vector.load %arg3[%c6, %c0_42, %c0_43] : memref<9x8x24xbf16, #tpu.memory_space<vmem>>, vector<1x8x24xbf16>
    %40 = vector.shape_cast %39 : vector<1x8x24xbf16> to vector<8x24xbf16>
    %cst_44 = arith.constant dense<0.000000e+00> : vector<8x384xf32>
    %41 = tpu.matmul %40, %38, %cst_44 {dimension_numbers = #tpu.dot_dimension_numbers<[1], [0], [0], [1], [0, 0, 1, 1], [], []>} : vector<8x24xbf16>, vector<24x384xbf16>, vector<8x384xf32> -> vector<8x384xf32>
    %42 = arith.addf %36, %41 : vector<8x384xf32>
    %c0_45 = arith.constant 0 : index
    %c0_46 = arith.constant 0 : index
    %c0_47 = arith.constant 0 : index
    %c37 = arith.constant 37 : index
    %43 = vector.load %arg2[%c0_45, %c0_46, %c0_47, %c37] : memref<1x1x24x512xbf16, #tpu.memory_space<vmem>>, vector<1x1x24x384xbf16>
    %44 = vector.shape_cast %43 : vector<1x1x24x384xbf16> to vector<24x384xbf16>
    %c7 = arith.constant 7 : index
    %c0_48 = arith.constant 0 : index
    %c0_49 = arith.constant 0 : index
    %45 = vector.load %arg3[%c7, %c0_48, %c0_49] : memref<9x8x24xbf16, #tpu.memory_space<vmem>>, vector<1x8x24xbf16>
    %46 = vector.shape_cast %45 : vector<1x8x24xbf16> to vector<8x24xbf16>
    %cst_50 = arith.constant dense<0.000000e+00> : vector<8x384xf32>
    %47 = tpu.matmul %46, %44, %cst_50 {dimension_numbers = #tpu.dot_dimension_numbers<[1], [0], [0], [1], [0, 0, 1, 1], [], []>} : vector<8x24xbf16>, vector<24x384xbf16>, vector<8x384xf32> -> vector<8x384xf32>
    %48 = arith.addf %42, %47 : vector<8x384xf32>
    %c0_51 = arith.constant 0 : index
    %c0_52 = arith.constant 0 : index
    %c0_53 = arith.constant 0 : index
    %c38 = arith.constant 38 : index
    %49 = vector.load %arg2[%c0_51, %c0_52, %c0_53, %c38] : memref<1x1x24x512xbf16, #tpu.memory_space<vmem>>, vector<1x1x24x384xbf16>
    %50 = vector.shape_cast %49 : vector<1x1x24x384xbf16> to vector<24x384xbf16>
    %c8 = arith.constant 8 : index
    %c0_54 = arith.constant 0 : index
    %c0_55 = arith.constant 0 : index
    %51 = vector.load %arg3[%c8, %c0_54, %c0_55] : memref<9x8x24xbf16, #tpu.memory_space<vmem>>, vector<1x8x24xbf16>
    %52 = vector.shape_cast %51 : vector<1x8x24xbf16> to vector<8x24xbf16>
    %cst_56 = arith.constant dense<0.000000e+00> : vector<8x384xf32>
    %53 = tpu.matmul %52, %50, %cst_56 {dimension_numbers = #tpu.dot_dimension_numbers<[1], [0], [0], [1], [0, 0, 1, 1], [], []>} : vector<8x24xbf16>, vector<24x384xbf16>, vector<8x384xf32> -> vector<8x384xf32>
    %54 = arith.addf %48, %53 : vector<8x384xf32>
    %c0_57 = arith.constant 0 : index
    %c0_58 = arith.constant 0 : index
    %55 = vector.load %arg4[%c0_57, %c0_58] : memref<8x1xf32, #tpu.memory_space<vmem>>, vector<8x1xf32>
    %56 = vector.broadcast %55 : vector<8x1xf32> to vector<8x384xf32>
    %57 = arith.addf %54, %56 : vector<8x384xf32>
    %cst_59 = arith.constant 0.000000e+00 : f32
    %58 = vector.broadcast %cst_59 : f32 to vector<8x384xf32>
    %59 = arith.maximumf %57, %58 : vector<8x384xf32>
    %c0_60 = arith.constant 0 : index
    %c0_61 = arith.constant 0 : index
    %c0_62 = arith.constant 0 : index
    %c0_63 = arith.constant 0 : index
    %60 = vector.load %arg5[%c0_60, %c0_61, %c0_62, %c0_63] : memref<1x1x8x384xf32, #tpu.memory_space<vmem>>, vector<1x1x8x384xf32>
    %61 = vector.shape_cast %60 : vector<1x1x8x384xf32> to vector<8x384xf32>
    %62 = vector.shape_cast %59 : vector<8x384xf32> to vector<1x1x8x384xf32>
    tpu.vector_store %arg5[%c0_60, %c0_61, %c0_62, %c0_63], %62 {strides = array<i32>} : memref<1x1x8x384xf32, #tpu.memory_space<vmem>>, vector<1x1x8x384xf32>,
    return
  }
  func.func @transform_0(%arg0: i32, %arg1: i32) -> (i32, i32, i32, i32) {
    %c0_i32 = arith.constant 0 : i32
    %c0_i32_0 = arith.constant 0 : i32
    %c0_i32_1 = arith.constant 0 : i32
    return %arg0, %arg1, %c0_i32, %c0_i32_0 : i32, i32, i32, i32
  }
  func.func @transform_1(%arg0: i32, %arg1: i32) -> (i32, i32, i32) {
    %c0_i32 = arith.constant 0 : i32
    %c0_i32_0 = arith.constant 0 : i32
    %c0_i32_1 = arith.constant 0 : i32
    %c0_i32_2 = arith.constant 0 : i32
    return %c0_i32, %c0_i32_0, %c0_i32_1 : i32, i32, i32
  }
  func.func @transform_2(%arg0: i32, %arg1: i32) -> (i32, i32) {
    %c0_i32 = arith.constant 0 : i32
    %c0_i32_0 = arith.constant 0 : i32
    %c0_i32_1 = arith.constant 0 : i32
    return %c0_i32, %c0_i32_0 : i32, i32
  }
  func.func @transform_3(%arg0: i32, %arg1: i32) -> (i32, i32, i32, i32) {
    %c0_i32 = arith.constant 0 : i32
    %c0_i32_0 = arith.constant 0 : i32
    %c0_i32_1 = arith.constant 0 : i32
    return %arg0, %arg1, %c0_i32, %c0_i32_0 : i32, i32, i32, i32
  }
}

module attributes {stable_mosaic.version = 11 : i64} {
  func.func @_conv3x3_kernel(%arg0: i32, %arg1: i32, %arg2: memref<1x1x8x512xbf16, #tpu.memory_space<vmem>>, %arg3: memref<9x1x8xbf16, #tpu.memory_space<vmem>>, %arg4: memref<1x1xf32, #tpu.memory_space<vmem>>, %arg5: memref<1x1x1x384xf32, #tpu.memory_space<vmem>>) attributes {dimension_semantics = [#tpu.dimension_semantics<parallel>, #tpu.dimension_semantics<parallel>], iteration_bounds = array<i64: 2, 1>, scalar_prefetch = 0 : i64, scratch_operands = 0 : i64, tpu.core_type = #tpu.core_type<tc>, window_params = [{transform_indices = @transform_0, window_bounds = array<i64: 1, 1, 8, 512>}, {pipeline_mode = #tpu.pipeline_mode<synchronous>, transform_indices = @transform_1, window_bounds = array<i64: 9, 1, 8>}, {pipeline_mode = #tpu.pipeline_mode<synchronous>, transform_indices = @transform_2, window_bounds = array<i64: 1, 1>}, {transform_indices = @transform_3, window_bounds = array<i64: 1, 1, 1, 384>}]} {
    %cst = arith.constant 0.000000e+00 : f32
    %0 = vector.broadcast %cst : f32 to vector<1x384xf32>
    %c0 = arith.constant 0 : index
    %c0_0 = arith.constant 0 : index
    %c0_1 = arith.constant 0 : index
    %c0_2 = arith.constant 0 : index
    %1 = vector.load %arg2[%c0, %c0_0, %c0_1, %c0_2] : memref<1x1x8x512xbf16, #tpu.memory_space<vmem>>, vector<1x1x8x384xbf16>
    %2 = vector.shape_cast %1 : vector<1x1x8x384xbf16> to vector<8x384xbf16>
    %c0_3 = arith.constant 0 : index
    %c0_4 = arith.constant 0 : index
    %c0_5 = arith.constant 0 : index
    %3 = vector.load %arg3[%c0_3, %c0_4, %c0_5] : memref<9x1x8xbf16, #tpu.memory_space<vmem>>, vector<1x1x8xbf16>
    %4 = vector.shape_cast %3 : vector<1x1x8xbf16> to vector<1x8xbf16>
    %cst_6 = arith.constant dense<0.000000e+00> : vector<1x384xf32>
    %5 = tpu.matmul %4, %2, %cst_6 {dimension_numbers = #tpu.dot_dimension_numbers<[1], [0], [0], [1], [0, 0, 1, 1], [], []>} : vector<1x8xbf16>, vector<8x384xbf16>, vector<1x384xf32> -> vector<1x384xf32>
    %6 = arith.addf %0, %5 : vector<1x384xf32>
    %c0_7 = arith.constant 0 : index
    %c0_8 = arith.constant 0 : index
    %c0_9 = arith.constant 0 : index
    %c1 = arith.constant 1 : index
    %7 = vector.load %arg2[%c0_7, %c0_8, %c0_9, %c1] : memref<1x1x8x512xbf16, #tpu.memory_space<vmem>>, vector<1x1x8x384xbf16>
    %8 = vector.shape_cast %7 : vector<1x1x8x384xbf16> to vector<8x384xbf16>
    %c1_10 = arith.constant 1 : index
    %c0_11 = arith.constant 0 : index
    %c0_12 = arith.constant 0 : index
    %9 = vector.load %arg3[%c1_10, %c0_11, %c0_12] : memref<9x1x8xbf16, #tpu.memory_space<vmem>>, vector<1x1x8xbf16>
    %10 = vector.shape_cast %9 : vector<1x1x8xbf16> to vector<1x8xbf16>
    %cst_13 = arith.constant dense<0.000000e+00> : vector<1x384xf32>
    %11 = tpu.matmul %10, %8, %cst_13 {dimension_numbers = #tpu.dot_dimension_numbers<[1], [0], [0], [1], [0, 0, 1, 1], [], []>} : vector<1x8xbf16>, vector<8x384xbf16>, vector<1x384xf32> -> vector<1x384xf32>
    %12 = arith.addf %6, %11 : vector<1x384xf32>
    %c0_14 = arith.constant 0 : index
    %c0_15 = arith.constant 0 : index
    %c0_16 = arith.constant 0 : index
    %c2 = arith.constant 2 : index
    %13 = vector.load %arg2[%c0_14, %c0_15, %c0_16, %c2] : memref<1x1x8x512xbf16, #tpu.memory_space<vmem>>, vector<1x1x8x384xbf16>
    %14 = vector.shape_cast %13 : vector<1x1x8x384xbf16> to vector<8x384xbf16>
    %c2_17 = arith.constant 2 : index
    %c0_18 = arith.constant 0 : index
    %c0_19 = arith.constant 0 : index
    %15 = vector.load %arg3[%c2_17, %c0_18, %c0_19] : memref<9x1x8xbf16, #tpu.memory_space<vmem>>, vector<1x1x8xbf16>
    %16 = vector.shape_cast %15 : vector<1x1x8xbf16> to vector<1x8xbf16>
    %cst_20 = arith.constant dense<0.000000e+00> : vector<1x384xf32>
    %17 = tpu.matmul %16, %14, %cst_20 {dimension_numbers = #tpu.dot_dimension_numbers<[1], [0], [0], [1], [0, 0, 1, 1], [], []>} : vector<1x8xbf16>, vector<8x384xbf16>, vector<1x384xf32> -> vector<1x384xf32>
    %18 = arith.addf %12, %17 : vector<1x384xf32>
    %c0_21 = arith.constant 0 : index
    %c0_22 = arith.constant 0 : index
    %c0_23 = arith.constant 0 : index
    %c18 = arith.constant 18 : index
    %19 = vector.load %arg2[%c0_21, %c0_22, %c0_23, %c18] : memref<1x1x8x512xbf16, #tpu.memory_space<vmem>>, vector<1x1x8x384xbf16>
    %20 = vector.shape_cast %19 : vector<1x1x8x384xbf16> to vector<8x384xbf16>
    %c3 = arith.constant 3 : index
    %c0_24 = arith.constant 0 : index
    %c0_25 = arith.constant 0 : index
    %21 = vector.load %arg3[%c3, %c0_24, %c0_25] : memref<9x1x8xbf16, #tpu.memory_space<vmem>>, vector<1x1x8xbf16>
    %22 = vector.shape_cast %21 : vector<1x1x8xbf16> to vector<1x8xbf16>
    %cst_26 = arith.constant dense<0.000000e+00> : vector<1x384xf32>
    %23 = tpu.matmul %22, %20, %cst_26 {dimension_numbers = #tpu.dot_dimension_numbers<[1], [0], [0], [1], [0, 0, 1, 1], [], []>} : vector<1x8xbf16>, vector<8x384xbf16>, vector<1x384xf32> -> vector<1x384xf32>
    %24 = arith.addf %18, %23 : vector<1x384xf32>
    %c0_27 = arith.constant 0 : index
    %c0_28 = arith.constant 0 : index
    %c0_29 = arith.constant 0 : index
    %c19 = arith.constant 19 : index
    %25 = vector.load %arg2[%c0_27, %c0_28, %c0_29, %c19] : memref<1x1x8x512xbf16, #tpu.memory_space<vmem>>, vector<1x1x8x384xbf16>
    %26 = vector.shape_cast %25 : vector<1x1x8x384xbf16> to vector<8x384xbf16>
    %c4 = arith.constant 4 : index
    %c0_30 = arith.constant 0 : index
    %c0_31 = arith.constant 0 : index
    %27 = vector.load %arg3[%c4, %c0_30, %c0_31] : memref<9x1x8xbf16, #tpu.memory_space<vmem>>, vector<1x1x8xbf16>
    %28 = vector.shape_cast %27 : vector<1x1x8xbf16> to vector<1x8xbf16>
    %cst_32 = arith.constant dense<0.000000e+00> : vector<1x384xf32>
    %29 = tpu.matmul %28, %26, %cst_32 {dimension_numbers = #tpu.dot_dimension_numbers<[1], [0], [0], [1], [0, 0, 1, 1], [], []>} : vector<1x8xbf16>, vector<8x384xbf16>, vector<1x384xf32> -> vector<1x384xf32>
    %30 = arith.addf %24, %29 : vector<1x384xf32>
    %c0_33 = arith.constant 0 : index
    %c0_34 = arith.constant 0 : index
    %c0_35 = arith.constant 0 : index
    %c20 = arith.constant 20 : index
    %31 = vector.load %arg2[%c0_33, %c0_34, %c0_35, %c20] : memref<1x1x8x512xbf16, #tpu.memory_space<vmem>>, vector<1x1x8x384xbf16>
    %32 = vector.shape_cast %31 : vector<1x1x8x384xbf16> to vector<8x384xbf16>
    %c5 = arith.constant 5 : index
    %c0_36 = arith.constant 0 : index
    %c0_37 = arith.constant 0 : index
    %33 = vector.load %arg3[%c5, %c0_36, %c0_37] : memref<9x1x8xbf16, #tpu.memory_space<vmem>>, vector<1x1x8xbf16>
    %34 = vector.shape_cast %33 : vector<1x1x8xbf16> to vector<1x8xbf16>
    %cst_38 = arith.constant dense<0.000000e+00> : vector<1x384xf32>
    %35 = tpu.matmul %34, %32, %cst_38 {dimension_numbers = #tpu.dot_dimension_numbers<[1], [0], [0], [1], [0, 0, 1, 1], [], []>} : vector<1x8xbf16>, vector<8x384xbf16>, vector<1x384xf32> -> vector<1x384xf32>
    %36 = arith.addf %30, %35 : vector<1x384xf32>
    %c0_39 = arith.constant 0 : index
    %c0_40 = arith.constant 0 : index
    %c0_41 = arith.constant 0 : index
    %c36 = arith.constant 36 : index
    %37 = vector.load %arg2[%c0_39, %c0_40, %c0_41, %c36] : memref<1x1x8x512xbf16, #tpu.memory_space<vmem>>, vector<1x1x8x384xbf16>
    %38 = vector.shape_cast %37 : vector<1x1x8x384xbf16> to vector<8x384xbf16>
    %c6 = arith.constant 6 : index
    %c0_42 = arith.constant 0 : index
    %c0_43 = arith.constant 0 : index
    %39 = vector.load %arg3[%c6, %c0_42, %c0_43] : memref<9x1x8xbf16, #tpu.memory_space<vmem>>, vector<1x1x8xbf16>
    %40 = vector.shape_cast %39 : vector<1x1x8xbf16> to vector<1x8xbf16>
    %cst_44 = arith.constant dense<0.000000e+00> : vector<1x384xf32>
    %41 = tpu.matmul %40, %38, %cst_44 {dimension_numbers = #tpu.dot_dimension_numbers<[1], [0], [0], [1], [0, 0, 1, 1], [], []>} : vector<1x8xbf16>, vector<8x384xbf16>, vector<1x384xf32> -> vector<1x384xf32>
    %42 = arith.addf %36, %41 : vector<1x384xf32>
    %c0_45 = arith.constant 0 : index
    %c0_46 = arith.constant 0 : index
    %c0_47 = arith.constant 0 : index
    %c37 = arith.constant 37 : index
    %43 = vector.load %arg2[%c0_45, %c0_46, %c0_47, %c37] : memref<1x1x8x512xbf16, #tpu.memory_space<vmem>>, vector<1x1x8x384xbf16>
    %44 = vector.shape_cast %43 : vector<1x1x8x384xbf16> to vector<8x384xbf16>
    %c7 = arith.constant 7 : index
    %c0_48 = arith.constant 0 : index
    %c0_49 = arith.constant 0 : index
    %45 = vector.load %arg3[%c7, %c0_48, %c0_49] : memref<9x1x8xbf16, #tpu.memory_space<vmem>>, vector<1x1x8xbf16>
    %46 = vector.shape_cast %45 : vector<1x1x8xbf16> to vector<1x8xbf16>
    %cst_50 = arith.constant dense<0.000000e+00> : vector<1x384xf32>
    %47 = tpu.matmul %46, %44, %cst_50 {dimension_numbers = #tpu.dot_dimension_numbers<[1], [0], [0], [1], [0, 0, 1, 1], [], []>} : vector<1x8xbf16>, vector<8x384xbf16>, vector<1x384xf32> -> vector<1x384xf32>
    %48 = arith.addf %42, %47 : vector<1x384xf32>
    %c0_51 = arith.constant 0 : index
    %c0_52 = arith.constant 0 : index
    %c0_53 = arith.constant 0 : index
    %c38 = arith.constant 38 : index
    %49 = vector.load %arg2[%c0_51, %c0_52, %c0_53, %c38] : memref<1x1x8x512xbf16, #tpu.memory_space<vmem>>, vector<1x1x8x384xbf16>
    %50 = vector.shape_cast %49 : vector<1x1x8x384xbf16> to vector<8x384xbf16>
    %c8 = arith.constant 8 : index
    %c0_54 = arith.constant 0 : index
    %c0_55 = arith.constant 0 : index
    %51 = vector.load %arg3[%c8, %c0_54, %c0_55] : memref<9x1x8xbf16, #tpu.memory_space<vmem>>, vector<1x1x8xbf16>
    %52 = vector.shape_cast %51 : vector<1x1x8xbf16> to vector<1x8xbf16>
    %cst_56 = arith.constant dense<0.000000e+00> : vector<1x384xf32>
    %53 = tpu.matmul %52, %50, %cst_56 {dimension_numbers = #tpu.dot_dimension_numbers<[1], [0], [0], [1], [0, 0, 1, 1], [], []>} : vector<1x8xbf16>, vector<8x384xbf16>, vector<1x384xf32> -> vector<1x384xf32>
    %54 = arith.addf %48, %53 : vector<1x384xf32>
    %c0_57 = arith.constant 0 : index
    %c0_58 = arith.constant 0 : index
    %55 = vector.load %arg4[%c0_57, %c0_58] : memref<1x1xf32, #tpu.memory_space<vmem>>, vector<1x1xf32>
    %56 = vector.broadcast %55 : vector<1x1xf32> to vector<1x384xf32>
    %57 = arith.addf %54, %56 : vector<1x384xf32>
    %c0_59 = arith.constant 0 : index
    %c0_60 = arith.constant 0 : index
    %c0_61 = arith.constant 0 : index
    %c0_62 = arith.constant 0 : index
    %58 = vector.load %arg5[%c0_59, %c0_60, %c0_61, %c0_62] : memref<1x1x1x384xf32, #tpu.memory_space<vmem>>, vector<1x1x1x384xf32>
    %59 = vector.shape_cast %58 : vector<1x1x1x384xf32> to vector<1x384xf32>
    %60 = vector.shape_cast %57 : vector<1x384xf32> to vector<1x1x1x384xf32>
    tpu.vector_store %arg5[%c0_59, %c0_60, %c0_61, %c0_62], %60 {strides = array<i32>} : memref<1x1x1x384xf32, #tpu.memory_space<vmem>>, vector<1x1x1x384xf32>,
    return
  }
  func.func @transform_0(%arg0: i32, %arg1: i32) -> (i32, i32, i32, i32) {
    %c0_i32 = arith.constant 0 : i32
    %c0_i32_0 = arith.constant 0 : i32
    %c0_i32_1 = arith.constant 0 : i32
    return %arg0, %arg1, %c0_i32, %c0_i32_0 : i32, i32, i32, i32
  }
  func.func @transform_1(%arg0: i32, %arg1: i32) -> (i32, i32, i32) {
    %c0_i32 = arith.constant 0 : i32
    %c0_i32_0 = arith.constant 0 : i32
    %c0_i32_1 = arith.constant 0 : i32
    %c0_i32_2 = arith.constant 0 : i32
    return %c0_i32, %c0_i32_0, %c0_i32_1 : i32, i32, i32
  }
  func.func @transform_2(%arg0: i32, %arg1: i32) -> (i32, i32) {
    %c0_i32 = arith.constant 0 : i32
    %c0_i32_0 = arith.constant 0 : i32
    %c0_i32_1 = arith.constant 0 : i32
    return %c0_i32, %c0_i32_0 : i32, i32
  }
  func.func @transform_3(%arg0: i32, %arg1: i32) -> (i32, i32, i32, i32) {
    %c0_i32 = arith.constant 0 : i32
    %c0_i32_0 = arith.constant 0 : i32
    %c0_i32_1 = arith.constant 0 : i32
    return %arg0, %arg1, %c0_i32, %c0_i32_0 : i32, i32, i32, i32
  }
}

module attributes {stable_mosaic.version = 11 : i64} {
  func.func @_a_update_kernel(%arg0: i32, %arg1: i32, %arg2: memref<1x3x2x128xf32, #tpu.memory_space<vmem>>, %arg3: memref<1x1x2x128xf32, #tpu.memory_space<vmem>>, %arg4: memref<1x1x2x128xf32, #tpu.memory_space<vmem>>, %arg5: memref<1x3x2x128xf32, #tpu.memory_space<vmem>>, %arg6: memref<1x1x2x128xf32, #tpu.memory_space<vmem>>, %arg7: memref<1x1x2x128xf32, #tpu.memory_space<vmem>>) attributes {dimension_semantics = [#tpu.dimension_semantics<parallel>, #tpu.dimension_semantics<parallel>], iteration_bounds = array<i64: 2, 1>, scalar_prefetch = 0 : i64, scratch_operands = 0 : i64, tpu.core_type = #tpu.core_type<tc>, window_params = [{transform_indices = @transform_0, window_bounds = array<i64: 1, 3, 2, 128>}, {transform_indices = @transform_1, window_bounds = array<i64: 1, 1, 2, 128>}, {transform_indices = @transform_2, window_bounds = array<i64: 1, 1, 2, 128>}, {transform_indices = @transform_3, window_bounds = array<i64: 1, 3, 2, 128>}, {transform_indices = @transform_4, window_bounds = array<i64: 1, 1, 2, 128>}, {transform_indices = @transform_5, window_bounds = array<i64: 1, 1, 2, 128>}]} {
    %c0 = arith.constant 0 : index
    %c0_0 = arith.constant 0 : index
    %c0_1 = arith.constant 0 : index
    %c0_2 = arith.constant 0 : index
    %0 = vector.load %arg3[%c0, %c0_0, %c0_1, %c0_2] : memref<1x1x2x128xf32, #tpu.memory_space<vmem>>, vector<1x1x2x128xf32>
    %1 = vector.shape_cast %0 : vector<1x1x2x128xf32> to vector<2x128xf32>
    %c0_3 = arith.constant 0 : index
    %c0_4 = arith.constant 0 : index
    %c0_5 = arith.constant 0 : index
    %c0_6 = arith.constant 0 : index
    %2 = vector.load %arg4[%c0_3, %c0_4, %c0_5, %c0_6] : memref<1x1x2x128xf32, #tpu.memory_space<vmem>>, vector<1x1x2x128xf32>
    %3 = vector.shape_cast %2 : vector<1x1x2x128xf32> to vector<2x128xf32>
    %c0_7 = arith.constant 0 : index
    %c0_8 = arith.constant 0 : index
    %c0_9 = arith.constant 0 : index
    %c0_10 = arith.constant 0 : index
    %4 = vector.load %arg6[%c0_7, %c0_8, %c0_9, %c0_10] : memref<1x1x2x128xf32, #tpu.memory_space<vmem>>, vector<1x1x2x128xf32>
    %5 = vector.shape_cast %4 : vector<1x1x2x128xf32> to vector<2x128xf32>
    %cst = arith.constant 5.000000e-02 : f32
    %6 = vector.broadcast %cst : f32 to vector<2x128xf32>
    %7 = arith.maximumf %3, %6 : vector<2x128xf32>
    %8 = tpu.reciprocal %7 {approx = true} : vector<2x128xf32> -> vector<2x128xf32>
    %cst_11 = arith.constant 1.000000e+00 : f32
    %9 = vector.broadcast %cst_11 : f32 to vector<2x128xf32>
    %10 = arith.subf %9, %3 : vector<2x128xf32>
    %cst_12 = arith.constant 1.000000e+00 : f32
    %11 = vector.broadcast %cst_12 : f32 to vector<2x128xf32>
    %12 = arith.subf %11, %8 : vector<2x128xf32>
    %cst_13 = arith.constant 0.000000e+00 : f32
    %13 = vector.broadcast %cst_13 : f32 to vector<2x128xf32>
    %c0_14 = arith.constant 0 : index
    %c0_15 = arith.constant 0 : index
    %c0_16 = arith.constant 0 : index
    %c0_17 = arith.constant 0 : index
    %14 = vector.load %arg2[%c0_14, %c0_15, %c0_16, %c0_17] : memref<1x3x2x128xf32, #tpu.memory_space<vmem>>, vector<1x1x2x128xf32>
    %15 = vector.shape_cast %14 : vector<1x1x2x128xf32> to vector<2x128xf32>
    %c0_18 = arith.constant 0 : index
    %c0_19 = arith.constant 0 : index
    %c0_20 = arith.constant 0 : index
    %c0_21 = arith.constant 0 : index
    %16 = vector.load %arg5[%c0_18, %c0_19, %c0_20, %c0_21] : memref<1x3x2x128xf32, #tpu.memory_space<vmem>>, vector<1x1x2x128xf32>
    %17 = vector.shape_cast %16 : vector<1x1x2x128xf32> to vector<2x128xf32>
    %18 = arith.mulf %17, %3 : vector<2x128xf32>
    %19 = arith.mulf %1, %10 : vector<2x128xf32>
    %20 = arith.addf %18, %19 : vector<2x128xf32>
    %21 = arith.subf %20, %15 : vector<2x128xf32>
    %22 = arith.mulf %21, %10 : vector<2x128xf32>
    %23 = arith.subf %15, %1 : vector<2x128xf32>
    %24 = arith.mulf %23, %8 : vector<2x128xf32>
    %25 = arith.addf %24, %1 : vector<2x128xf32>
    %26 = arith.subf %25, %17 : vector<2x128xf32>
    %27 = arith.mulf %26, %12 : vector<2x128xf32>
    %28 = arith.addf %22, %27 : vector<2x128xf32>
    %29 = arith.addf %13, %28 : vector<2x128xf32>
    %c0_22 = arith.constant 0 : index
    %c1 = arith.constant 1 : index
    %c0_23 = arith.constant 0 : index
    %c0_24 = arith.constant 0 : index
    %30 = vector.load %arg2[%c0_22, %c1, %c0_23, %c0_24] : memref<1x3x2x128xf32, #tpu.memory_space<vmem>>, vector<1x1x2x128xf32>
    %31 = vector.shape_cast %30 : vector<1x1x2x128xf32> to vector<2x128xf32>
    %c0_25 = arith.constant 0 : index
    %c1_26 = arith.constant 1 : index
    %c0_27 = arith.constant 0 : index
    %c0_28 = arith.constant 0 : index
    %32 = vector.load %arg5[%c0_25, %c1_26, %c0_27, %c0_28] : memref<1x3x2x128xf32, #tpu.memory_space<vmem>>, vector<1x1x2x128xf32>
    %33 = vector.shape_cast %32 : vector<1x1x2x128xf32> to vector<2x128xf32>
    %34 = arith.mulf %33, %3 : vector<2x128xf32>
    %35 = arith.mulf %1, %10 : vector<2x128xf32>
    %36 = arith.addf %34, %35 : vector<2x128xf32>
    %37 = arith.subf %36, %31 : vector<2x128xf32>
    %38 = arith.mulf %37, %10 : vector<2x128xf32>
    %39 = arith.subf %31, %1 : vector<2x128xf32>
    %40 = arith.mulf %39, %8 : vector<2x128xf32>
    %41 = arith.addf %40, %1 : vector<2x128xf32>
    %42 = arith.subf %41, %33 : vector<2x128xf32>
    %43 = arith.mulf %42, %12 : vector<2x128xf32>
    %44 = arith.addf %38, %43 : vector<2x128xf32>
    %45 = arith.addf %29, %44 : vector<2x128xf32>
    %c0_29 = arith.constant 0 : index
    %c2 = arith.constant 2 : index
    %c0_30 = arith.constant 0 : index
    %c0_31 = arith.constant 0 : index
    %46 = vector.load %arg2[%c0_29, %c2, %c0_30, %c0_31] : memref<1x3x2x128xf32, #tpu.memory_space<vmem>>, vector<1x1x2x128xf32>
    %47 = vector.shape_cast %46 : vector<1x1x2x128xf32> to vector<2x128xf32>
    %c0_32 = arith.constant 0 : index
    %c2_33 = arith.constant 2 : index
    %c0_34 = arith.constant 0 : index
    %c0_35 = arith.constant 0 : index
    %48 = vector.load %arg5[%c0_32, %c2_33, %c0_34, %c0_35] : memref<1x3x2x128xf32, #tpu.memory_space<vmem>>, vector<1x1x2x128xf32>
    %49 = vector.shape_cast %48 : vector<1x1x2x128xf32> to vector<2x128xf32>
    %50 = arith.mulf %49, %3 : vector<2x128xf32>
    %51 = arith.mulf %1, %10 : vector<2x128xf32>
    %52 = arith.addf %50, %51 : vector<2x128xf32>
    %53 = arith.subf %52, %47 : vector<2x128xf32>
    %54 = arith.mulf %53, %10 : vector<2x128xf32>
    %55 = arith.subf %47, %1 : vector<2x128xf32>
    %56 = arith.mulf %55, %8 : vector<2x128xf32>
    %57 = arith.addf %56, %1 : vector<2x128xf32>
    %58 = arith.subf %57, %49 : vector<2x128xf32>
    %59 = arith.mulf %58, %12 : vector<2x128xf32>
    %60 = arith.addf %54, %59 : vector<2x128xf32>
    %61 = arith.addf %45, %60 : vector<2x128xf32>
    %cst_36 = arith.constant 0.333333343 : f32
    %62 = vector.broadcast %cst_36 : f32 to vector<2x128xf32>
    %63 = arith.mulf %61, %62 : vector<2x128xf32>
    %64 = arith.addf %63, %5 : vector<2x128xf32>
    %cst_37 = arith.constant 0.00999999977 : f32
    %65 = vector.broadcast %cst_37 : f32 to vector<2x128xf32>
    %66 = arith.mulf %65, %64 : vector<2x128xf32>
    %67 = arith.subf %1, %66 : vector<2x128xf32>
    %c0_38 = arith.constant 0 : index
    %c0_39 = arith.constant 0 : index
    %c0_40 = arith.constant 0 : index
    %c0_41 = arith.constant 0 : index
    %68 = vector.load %arg7[%c0_38, %c0_39, %c0_40, %c0_41] : memref<1x1x2x128xf32, #tpu.memory_space<vmem>>, vector<1x1x2x128xf32>
    %69 = vector.shape_cast %68 : vector<1x1x2x128xf32> to vector<2x128xf32>
    %70 = vector.shape_cast %67 : vector<2x128xf32> to vector<1x1x2x128xf32>
    tpu.vector_store %arg7[%c0_38, %c0_39, %c0_40, %c0_41], %70 {strides = array<i32>} : memref<1x1x2x128xf32, #tpu.memory_space<vmem>>, vector<1x1x2x128xf32>,
    return
  }
  func.func @transform_0(%arg0: i32, %arg1: i32) -> (i32, i32, i32, i32) {
    %c0_i32 = arith.constant 0 : i32
    %c0_i32_0 = arith.constant 0 : i32
    %c0_i32_1 = arith.constant 0 : i32
    return %arg0, %c0_i32, %arg1, %c0_i32_0 : i32, i32, i32, i32
  }
  func.func @transform_1(%arg0: i32, %arg1: i32) -> (i32, i32, i32, i32) {
    %c0_i32 = arith.constant 0 : i32
    %c0_i32_0 = arith.constant 0 : i32
    %c0_i32_1 = arith.constant 0 : i32
    return %arg0, %c0_i32, %arg1, %c0_i32_0 : i32, i32, i32, i32
  }
  func.func @transform_2(%arg0: i32, %arg1: i32) -> (i32, i32, i32, i32) {
    %c0_i32 = arith.constant 0 : i32
    %c0_i32_0 = arith.constant 0 : i32
    %c0_i32_1 = arith.constant 0 : i32
    return %arg0, %c0_i32, %arg1, %c0_i32_0 : i32, i32, i32, i32
  }
  func.func @transform_3(%arg0: i32, %arg1: i32) -> (i32, i32, i32, i32) {
    %c0_i32 = arith.constant 0 : i32
    %c0_i32_0 = arith.constant 0 : i32
    %c0_i32_1 = arith.constant 0 : i32
    return %arg0, %c0_i32, %arg1, %c0_i32_0 : i32, i32, i32, i32
  }
  func.func @transform_4(%arg0: i32, %arg1: i32) -> (i32, i32, i32, i32) {
    %c0_i32 = arith.constant 0 : i32
    %c0_i32_0 = arith.constant 0 : i32
    %c0_i32_1 = arith.constant 0 : i32
    return %arg0, %c0_i32, %arg1, %c0_i32_0 : i32, i32, i32, i32
  }
  func.func @transform_5(%arg0: i32, %arg1: i32) -> (i32, i32, i32, i32) {
    %c0_i32 = arith.constant 0 : i32
    %c0_i32_0 = arith.constant 0 : i32
    %c0_i32_1 = arith.constant 0 : i32
    return %arg0, %c0_i32, %arg1, %c0_i32_0 : i32, i32, i32, i32
  }
}

</mosaic_0001>

<bundles_post_ra>
// kernel: a_net_forward.5
= control target key start
LH: loop header
LB: loop body
LE: loop exit
PB: predicated region body
PF: predicated region fallthrough
CT: control target
= control target key end

     0   :  { %s747_s12 = smov 0   ;;  %s749_s13 = smov 0   ;;  %s855_s0 = inlined_call_operand.vmem [shape: bf16[2,1,1,512], index: 0, kind: input, shape index: {}]   ;;  %s856_s1 = inlined_call_operand.vmem [shape: bf16[9,8,1], index: 1, kind: input, shape index: {}]   ;;  %s857_s2 = inlined_call_operand.vmem [shape: f32[8,1], index: 2, kind: input, shape index: {}]   ;;  %s858_s3 = inlined_call_operand.vmem [shape: f32[2,1,8,384], index: 3, kind: output, shape index: {}]  }
   0x1   :  { %s751_s14 = smov 0  }
   0x2 LB: > { %s25_s15 = sadd.s32 1, %s712_s13  ;;  %p624_p0 = scmp.ge.s32.totalorder %s716_s14, 1  ;;  %s716_s14 = sphi %s751_s14, %s13_s14   ;;  %s712_s13 = sphi %s749_s13, %s860_s13   ;;  %s708_s12 = sphi %s747_s12, %s859_s12  }
   0x3   : > { %p27_p1 = scmp.ge.s32.totalorder %s25_s15, 2  ;;  %p156_p2 = scmp.lt.s32.totalorder %s716_s14, 3 }
   0x5   : > { %s862_s15 = smov (%p27_p1, %s25_s15), 0  ;;  %p157_p3 = pnand %p624_p0, %p156_p2 }
   0x6   : > { %p187_p4 = scmp.lt.s32.totalorder (!%p157_p3), %s708_s12, 1  ;;  %s719_s30 = smov (!%p157_p3), 127  }
   0x7   : > { %160 = sbr.rel (%p157_p3) target bundleno = 346 (0x15a), region = 32  ;;  %s720_s4 = smov (!%p157_p3), 126  }
   0x8   : > { %s721_s5 = smov (!%p157_p3), 110   ;;  %s722_s6 = smov (!%p157_p3), 109  }
   0x9   : > { %s723_s7 = smov (!%p157_p3), 108   ;;  %s724_s8 = smov (!%p157_p3), 92  }
   0xa   : > { %s725_s9 = smov (!%p157_p3), 91   ;;  %s726_s10 = smov (!%p157_p3), 90  }
   0xc   : > { %v205_v0 = vld [vmem:[%s856_s1] sm:$0xff]   ;;  %v628_v1 = vld [vmem:[%s856_s1 + $0x8] sm:$0xff]   ;;  %v718_v2 = vmov 0   ;;  %v632_v6 = vld [vmem:[%s856_s1 + $0x18] sm:$0xff]   ;;  %s864_s12 = smov (!%p187_p4, %s708_s12), 1  ;;  %vm268_vm0 = vcmask 1039360  }
   0xd   : > { %671 = vset.pattern.permute.xlu0 %v718_v2  ;;  %v206_v3 = vunpack.c.l.bf16 %v205_v0  ;;  %v232_v4 = vunpack.c.h.bf16 %v205_v0  ;;  %677 = vset.pattern.permute.xlu2 %v718_v2  ;;  %v634_v5 = vld [vmem:[%s856_s1 + $0x20] sm:$0xf]  ;;  %v280_v7 = vunpack.c.l.bf16 %v628_v1  ;;  %v314_v8 = vunpack.c.h.bf16 %v628_v1  ;;  %v630_v10 = vld [vmem:[%s856_s1 + $0x10] sm:$0xff]   ;;  %s625_s26 = sshll.u32 %s864_s12, 2  ;;  %s637_s17 = smul.u32 24, %s864_s12 }
   0xe   : > { %693 = vset.pattern.permute.xlu1 %v718_v2  ;;  %v484_v11 = vunpack.c.l.bf16 %v634_v5  ;;  %v416_v13 = vunpack.c.l.bf16 %v632_v6  ;;  %v450_v14 = vunpack.c.h.bf16 %v632_v6  ;;  %v348_v15 = vunpack.c.l.bf16 %v630_v10  ;;  %s194_s29 = scalar_lea.vmem %s855_s0, %s625_s26 }
   0xf   : > { %v672_v9 = vpack.i.bf16 %v232_v4, %v206_v3  ;;  %v678_v12 = vpack.i.bf16 %v314_v8, %v280_v7  ;;  %v382_v16 = vunpack.c.h.bf16 %v630_v10  ;;  %v229_v19 = vld [vmem:[%s194_s29] sm:$0xf]  ;;  %vm302_vm1 = vcmask 1031168   ;;  %s203_s20 = scalar_lea.vmem %s858_s3, %s637_s17 }
  0x10   : > { %487 = vperm.xlu1 %693, %v484_v11   ;;  %v688_v17 = vpack.i.bf16 %v450_v14, %v416_v13  ;;  %v204_v20 = vld [vmem:[%s194_s29] sm:$0x7]  ;;  %v233_v21 = vunpack.c.l.bf16 %v229_v19  ;;  %vm336_vm2 = vcmask 900096   ;;  %vm370_vm3 = vcmask 891904  }
  0x11   : > { %673 = vperm.xlu0 %671, %v672_v9   ;;  %679 = vperm.xlu2 %677, %v678_v12   ;;  %v683_v18 = vpack.i.bf16 %v382_v16, %v348_v15  ;;  %v207_v22 = vunpack.c.l.bf16 %v204_v20  ;;  %vm404_vm4 = vcmask 883712   ;;  %vm438_vm5 = vcmask 752640  }
  0x12   : > { %v243_v23 = vperm.slane %v233_v21, 6  ;;  %v241_v24 = vperm.slane %v233_v21, 2  ;;  %v240_v25 = vperm.slane %v233_v21, 0  ;;  %v242_v41 = vperm.slane %v233_v21, 4  ;;  %v516_v21 = vld [vmem:[%s857_s2] sm:$0xff] }
  0x13   : > { %v214_v26 = vperm.slane %v207_v22, 0  ;;  %v215_v27 = vperm.slane %v207_v22, 2  ;;  %v216_v28 = vperm.slane %v207_v22, 4  ;;  %vm472_vm6 = vcmask 744448  }
  0x14   : > { %v790_v29 = vperm.slane %v243_v23, 0  ;;  %v792_v30 = vperm.slane %v241_v24, 0  ;;  %v794_v31 = vperm.slane %v240_v25, 0  ;;  %v805_v47 = vperm.slane %v242_v41, 0 }
  0x15   : > { %v220_v33 = vperm.slane %v214_v26, 0  ;;  %v221_v34 = vperm.slane %v215_v27, 0  ;;  %v222_v35 = vperm.slane %v216_v28, 0  ;;  %vm506_vm7 = vcmask 736256  }
  0x19   : > { %689 = vperm.xlu0 %671, %v688_v17   ;;  %684 = vperm.xlu2 %677, %v683_v18  }
  0x6b   : > { %v680_v42 = vpop.permute.xlu2 %679 }
  0x6c   : > { %v681_v46 = vunpack.i.l.bf16 %v680_v42  ;;  %v682_v51 = vunpack.i.h.bf16 %v680_v42 }
  0x6e   : > { %v288_v48 = vmul.f32 %v681_v46, %v805_v47  ;;  %v286_v49 = vmul.f32 %v681_v46, %v794_v31  ;;  %v321_v52 = vmul.f32 %v682_v51, %v792_v30  ;;  %v287_v53 = vmul.f32 %v681_v46, %v792_v30 }
  0x6f   : > { %v289_v55 = vmul.f32 %v681_v46, %v790_v29  ;;  %v320_v58 = vmul.f32 %v682_v51, %v794_v31  ;;  %v322_v59 = vmul.f32 %v682_v51, %v805_v47  ;;  %v323_v61 = vmul.f32 %v682_v51, %v790_v29 }
  0x73   : > { %v685_v54 = vpop.permute.xlu2 %684 }
  0x74   : > { %v686_v56 = vunpack.i.l.bf16 %v685_v54  ;;  %v687_v63 = vunpack.i.h.bf16 %v685_v54 }
  0x76   : > { %v354_v57 = vmul.f32 %v686_v56, %v794_v31  ;;  %v357_v60 = vmul.f32 %v686_v56, %v790_v29  ;;  %v355_v62 = vmul.f32 %v686_v56, %v792_v30  ;;  %v390_v0 = vmul.f32 %v687_v63, %v805_v47 }
  0x77   : > { %v356_v1 = vmul.f32 %v686_v56, %v805_v47  ;;  %v388_v3 = vmul.f32 %v687_v63, %v794_v31  ;;  %v389_v6 = vmul.f32 %v687_v63, %v792_v30  ;;  %v391_v7 = vmul.f32 %v687_v63, %v790_v29 }
  0x82   : > { %v488_v15 = vpop.permute.xlu1 %487 }
  0x83   : > { %v674_v32 = vpop.permute.xlu0 %673  ;;  %v492_v16 = vmul.f32 %v488_v15, %v805_v47  ;;  %v490_v17 = vmul.f32 %v488_v15, %v794_v31  ;;  %v491_v19 = vmul.f32 %v488_v15, %v792_v30  ;;  %v493_v20 = vmul.f32 %v488_v15, %v790_v29 }
  0x84   : > { %v676_v36 = vunpack.i.h.bf16 %v674_v32  ;;  %v675_v37 = vunpack.i.l.bf16 %v674_v32 }
  0x86   : > { %v255_v38 = vmul.f32 %v676_v36, %v790_v29  ;;  %v253_v39 = vmul.f32 %v676_v36, %v792_v30  ;;  %v252_v40 = vmul.f32 %v676_v36, %v794_v31  ;;  %v799_v43 = vmul.f32 %v675_v37, %v220_v33 }
  0x87   : > { %v801_v44 = vmul.f32 %v675_v37, %v221_v34  ;;  %v803_v45 = vmul.f32 %v675_v37, %v222_v35  ;;  %v254_v50 = vmul.f32 %v676_v36, %v805_v47 }
  0x88   : > { %266 = vrot.lane.b32.xlu2 %v255_v38, %s719_s30  ;;  %262 = vrot.lane.b32.xlu1 %v253_v39, %s719_s30 }
  0x89   : > { %260 = vrot.lane.b32.xlu0 %v252_v40, %s719_s30 }
  0x8b   : > { %v690_v2 = vpop.permute.xlu0 %689 }
  0x8c   : > { %v691_v4 = vunpack.i.l.bf16 %v690_v2  ;;  %v692_v8 = vunpack.i.h.bf16 %v690_v2 }
  0x8e   : > { %v423_v5 = vmul.f32 %v691_v4, %v792_v30  ;;  %v456_v9 = vmul.f32 %v692_v8, %v794_v31  ;;  %v422_v10 = vmul.f32 %v691_v4, %v794_v31  ;;  %v424_v11 = vmul.f32 %v691_v4, %v805_v47 }
  0x8f   : > { %v459_v12 = vmul.f32 %v692_v8, %v790_v29  ;;  %v425_v13 = vmul.f32 %v691_v4, %v790_v29  ;;  %v457_v14 = vmul.f32 %v692_v8, %v792_v30  ;;  %v458_v18 = vmul.f32 %v692_v8, %v805_v47 }
  0x90   : > { %298 = vrot.lane.b32.xlu2 %v288_v48, %s720_s4  ;;  %264 = vrot.lane.b32.xlu1 %v254_v50, %s719_s30 }
  0x91   : > { %294 = vrot.lane.b32.xlu0 %v286_v49, %s720_s4 }
  0x98   : > { %330 = vrot.lane.b32.xlu2 %v321_v52, %s721_s5  ;;  %296 = vrot.lane.b32.xlu1 %v287_v53, %s720_s4 }
  0x99   : > { %300 = vrot.lane.b32.xlu0 %v289_v55, %s720_s4 }
  0xa0   : > { %362 = vrot.lane.b32.xlu2 %v354_v57, %s722_s6  ;;  %328 = vrot.lane.b32.xlu1 %v320_v58, %s721_s5 }
  0xa1   : > { %332 = vrot.lane.b32.xlu0 %v322_v59, %s721_s5 }
  0xa8   : > { %368 = vrot.lane.b32.xlu2 %v357_v60, %s722_s6  ;;  %334 = vrot.lane.b32.xlu1 %v323_v61, %s721_s5 }
  0xa9   : > { %364 = vrot.lane.b32.xlu0 %v355_v62, %s722_s6 }
  0xb0   : > { %400 = vrot.lane.b32.xlu2 %v390_v0, %s723_s7  ;;  %366 = vrot.lane.b32.xlu1 %v356_v1, %s722_s6 }
  0xb1   : > { %396 = vrot.lane.b32.xlu0 %v388_v3, %s723_s7 }
  0xb8   : > { %432 = vrot.lane.b32.xlu2 %v423_v5, %s724_s8  ;;  %398 = vrot.lane.b32.xlu1 %v389_v6, %s723_s7 }
  0xb9   : > { %402 = vrot.lane.b32.xlu0 %v391_v7, %s723_s7 }
  0xc0   : > { %464 = vrot.lane.b32.xlu2 %v456_v9, %s725_s9  ;;  %430 = vrot.lane.b32.xlu1 %v422_v10, %s724_s8 }
  0xc1   : > { %434 = vrot.lane.b32.xlu0 %v424_v11, %s724_s8 }
  0xc8   : > { %470 = vrot.lane.b32.xlu2 %v459_v12, %s725_s9  ;;  %436 = vrot.lane.b32.xlu1 %v425_v13, %s724_s8 }
  0xc9   : > { %466 = vrot.lane.b32.xlu0 %v457_v14, %s725_s9 }
  0xd0   : > { %468 = vrot.lane.b32.xlu1 %v458_v18, %s725_s9  ;;  %502 = vrot.lane.b32.xlu2 %v492_v16, %s726_s10 }
  0xd1   : > { %498 = vrot.lane.b32.xlu0 %v490_v17, %s726_s10 }
  0xd8   : > { %500 = vrot.lane.b32.xlu1 %v491_v19, %s726_s10 }
  0xd9   : > { %504 = vrot.lane.b32.xlu0 %v493_v20, %s726_s10 }
  0xe0   : > { %519 = vperm.xlu1 %693, %v516_v21  }
  0xe2   : > { %v267_v22 = vpop.permute.xlu2 %266 }
  0xea   : > { %v299_v27 = vpop.permute.xlu2 %298 }
  0xf2   : > { %v331_v34 = vpop.permute.xlu2 %330 }
  0xfa   : > { %v263_v23 = vpop.permute.xlu1 %262  ;;  %v363_v38 = vpop.permute.xlu2 %362 }
  0xfb   : > { %v261_v24 = vpop.permute.xlu0 %260 }
  0xfc   : > { %v269_v25 = vsel %vm268_vm0, %v261_v24, %v263_v23 }
  0xfd   : > { %v275_v26 = vadd.f32 %v269_v25, %v799_v43 }
 0x102   : > { %v265_v28 = vpop.permute.xlu1 %264  ;;  %v369_v42 = vpop.permute.xlu2 %368 }
 0x103   : > { %v270_v31 = vsel %vm268_vm0, %v263_v23, %v265_v28  ;;  %v271_v30 = vsel %vm268_vm0, %v265_v28, %v267_v22  ;;  %v295_v32 = vpop.permute.xlu0 %294 }
 0x104   : > { %v276_v29 = vadd.f32 %v270_v31, %v801_v44  ;;  %v277_v33 = vadd.f32 %v271_v30, %v803_v45 }
 0x10a   : > { %v297_v35 = vpop.permute.xlu1 %296  ;;  %v401_v47 = vpop.permute.xlu2 %400 }
 0x10b   : > { %v301_v36 = vpop.permute.xlu0 %300  ;;  %v303_v54 = vsel %vm302_vm1, %v295_v32, %v297_v35  ;;  %v304_v55 = vsel %vm302_vm1, %v297_v35, %v299_v27 }
 0x10c   : > { %v305_v56 = vsel %vm302_vm1, %v299_v27, %v301_v36  ;;  %v309_v62 = vadd.f32 %v303_v54, %v275_v26  ;;  %v310_v63 = vadd.f32 %v304_v55, %v276_v29 }
 0x10d   : > { %v311_v0 = vadd.f32 %v305_v56, %v277_v33 }
 0x112   : > { %v329_v37 = vpop.permute.xlu1 %328  ;;  %v433_v50 = vpop.permute.xlu2 %432 }
 0x113   : > { %v333_v39 = vpop.permute.xlu0 %332  ;;  %v337_v59 = vsel %vm336_vm2, %v329_v37, %v331_v34 }
 0x114   : > { %v338_v60 = vsel %vm336_vm2, %v331_v34, %v333_v39  ;;  %v343_v5 = vadd.f32 %v337_v59, %v309_v62 }
 0x115   : > { %v344_v6 = vadd.f32 %v338_v60, %v310_v63 }
 0x11a   : > { %v335_v40 = vpop.permute.xlu1 %334  ;;  %v465_v53 = vpop.permute.xlu2 %464 }
 0x11b   : > { %v365_v41 = vpop.permute.xlu0 %364  ;;  %v339_v61 = vsel %vm336_vm2, %v333_v39, %v335_v40 }
 0x11c   : > { %v371_v2 = vsel %vm370_vm3, %v363_v38, %v365_v41  ;;  %v345_v7 = vadd.f32 %v339_v61, %v311_v0 }
 0x11d   : > { %v377_v11 = vadd.f32 %v371_v2, %v343_v5 }
 0x122   : > { %v367_v46 = vpop.permute.xlu1 %366  ;;  %v471_v1 = vpop.permute.xlu2 %470 }
 0x123   : > { %v397_v43 = vpop.permute.xlu0 %396  ;;  %v372_v3 = vsel %vm370_vm3, %v365_v41, %v367_v46  ;;  %v373_v4 = vsel %vm370_vm3, %v367_v46, %v369_v42 }
 0x124   : > { %v378_v12 = vadd.f32 %v372_v3, %v344_v6  ;;  %v379_v13 = vadd.f32 %v373_v4, %v345_v7 }
 0x12a   : > { %v399_v48 = vpop.permute.xlu1 %398  ;;  %v503_v25 = vpop.permute.xlu2 %502 }
 0x12b   : > { %v403_v49 = vpop.permute.xlu0 %402  ;;  %v405_v8 = vsel %vm404_vm4, %v397_v43, %v399_v48  ;;  %v406_v9 = vsel %vm404_vm4, %v399_v48, %v401_v47 }
 0x12c   : > { %v407_v10 = vsel %vm404_vm4, %v401_v47, %v403_v49  ;;  %v411_v18 = vadd.f32 %v405_v8, %v377_v11  ;;  %v412_v19 = vadd.f32 %v406_v9, %v378_v12 }
 0x12d   : > { %v413_v20 = vadd.f32 %v407_v10, %v379_v13 }
 0x132   : > { %v431_v51 = vpop.permute.xlu1 %430 }
 0x133   : > { %v435_v52 = vpop.permute.xlu0 %434  ;;  %v439_v14 = vsel %vm438_vm5, %v431_v51, %v433_v50 }
 0x134   : > { %v440_v15 = vsel %vm438_vm5, %v433_v50, %v435_v52  ;;  %v445_v26 = vadd.f32 %v439_v14, %v411_v18 }
 0x135   : > { %v446_v27 = vadd.f32 %v440_v15, %v412_v19 }
 0x13a   : > { %v437_v44 = vpop.permute.xlu1 %436 }
 0x13b   : > { %v467_v45 = vpop.permute.xlu0 %466  ;;  %v441_v16 = vsel %vm438_vm5, %v435_v52, %v437_v44 }
 0x13c   : > { %v473_v22 = vsel %vm472_vm6, %v465_v53, %v467_v45  ;;  %v447_v28 = vadd.f32 %v441_v16, %v413_v20 }
 0x13d   : > { %v479_v29 = vadd.f32 %v473_v22, %v445_v26 }
 0x142   : > { %v469_v57 = vpop.permute.xlu1 %468 }
 0x143   : > { %v499_v58 = vpop.permute.xlu0 %498  ;;  %v474_v23 = vsel %vm472_vm6, %v467_v45, %v469_v57  ;;  %v475_v24 = vsel %vm472_vm6, %v469_v57, %v471_v1 }
 0x144   : > { %v480_v33 = vadd.f32 %v474_v23, %v446_v27  ;;  %v481_v34 = vadd.f32 %v475_v24, %v447_v28 }
 0x14a   : > { %v501_v17 = vpop.permute.xlu1 %500 }
 0x14b   : > { %v505_v21 = vpop.permute.xlu0 %504  ;;  %v507_v31 = vsel %vm506_vm7, %v499_v58, %v501_v17  ;;  %v508_v30 = vsel %vm506_vm7, %v501_v17, %v503_v25 }
 0x14c   : > { %v509_v32 = vsel %vm506_vm7, %v503_v25, %v505_v21  ;;  %v513_v35 = vadd.f32 %v507_v31, %v479_v29  ;;  %v514_v36 = vadd.f32 %v508_v30, %v480_v33 }
 0x14d   : > { %v515_v37 = vadd.f32 %v509_v32, %v481_v34 }
 0x152   : > { %v520_v38 = vpop.permute.xlu1 %519 }
 0x153   : > { %v522_v39 = vadd.f32 %v520_v38, %v513_v35  ;;  %v523_v40 = vadd.f32 %v520_v38, %v514_v36  ;;  %v524_v41 = vadd.f32 %v520_v38, %v515_v37 }
 0x155   : > { %v525_v42 = vmax.f32 %v522_v39, 0.0  ;;  %v526_v46 = vmax.f32 %v523_v40, 0.0  ;;  %v527_v43 = vmax.f32 %v524_v41, 0.0 }
 0x157   : > { %528 = vst [vmem:[%s203_s20] sm:$0xff] %v525_v42 }
 0x158   : > { %529 = vst [vmem:[%s203_s20 + $0x8] sm:$0xff] %v526_v46 }
 0x159   : > { %530 = vst [vmem:[%s203_s20 + $0x10] sm:$0xff] %v527_v43 }
 0x15a PF: > { %s13_s14 = sadd.s32 1, %s716_s14   ;;  %s859_s12 = smov %s712_s13 }
 0x15b   : > { %p10_p5 = scmp.ge.s32.totalorder %s13_s14, 4   ;;  %s860_s13 = smov %s862_s15 }
 0x15d   :  { %12 = sbr.rel (!%p10_p5) target bundleno = 2 (0x2), region = 70 }

// kernel: a_net_forward.6
= control target key start
LH: loop header
LB: loop body
LE: loop exit
PB: predicated region body
PF: predicated region fallthrough
CT: control target
= control target key end

     0   :  { %s812_s12 = smov 0   ;;  %s814_s13 = smov 0   ;;  %s904_s0 = inlined_call_operand.vmem [shape: bf16[2,1,8,256], index: 0, kind: input, shape index: {}]   ;;  %s905_s1 = inlined_call_operand.vmem [shape: bf16[9,16,8], index: 1, kind: input, shape index: {}]   ;;  %s906_s2 = inlined_call_operand.vmem [shape: f32[16,1], index: 2, kind: input, shape index: {}]   ;;  %s907_s3 = inlined_call_operand.vmem [shape: f32[2,1,16,128], index: 3, kind: output, shape index: {}]  }
   0x1   :  { %s816_s14 = smov 0  }
   0x2 LB: > { %s25_s15 = sadd.s32 1, %s777_s13  ;;  %p644_p0 = scmp.ge.s32.totalorder %s781_s14, 1  ;;  %s781_s14 = sphi %s816_s14, %s13_s14   ;;  %s777_s13 = sphi %s814_s13, %s909_s13   ;;  %s773_s12 = sphi %s812_s12, %s908_s12  }
   0x3   : > { %p27_p1 = scmp.ge.s32.totalorder %s25_s15, 2  ;;  %p157_p2 = scmp.lt.s32.totalorder %s781_s14, 3 }
   0x5   : > { %s911_s15 = smov (%p27_p1, %s25_s15), 0  ;;  %p158_p3 = pnand %p644_p0, %p157_p2 }
   0x6   : > { %p189_p4 = scmp.lt.s32.totalorder (!%p158_p3), %s773_s12, 1  ;;  %s783_s20 = smov (!%p158_p3), 126  }
   0x7   : > { %161 = sbr.rel (%p158_p3) target bundleno = 321 (0x141), region = 32  ;;  %s784_s21 = smov (!%p158_p3), 127  }
   0x8   : > { %s785_s22 = smov (!%p158_p3), 118   ;;  %s786_s23 = smov (!%p158_p3), 117  }
   0x9   : > { %s787_s24 = smov (!%p158_p3), 108   ;;  %s788_s25 = smov (!%p158_p3), 107  }
   0xa   : > { %s789_s26 = smov (!%p158_p3), 116   ;;  %s790_s27 = smov (!%p158_p3), 106  }
   0xc   : > { %s913_s12 = smov (!%p189_p4, %s773_s12), 1  ;;  %vm235_vm0 = vcmask 1043456   ;;  %vm231_vm1 = vcmask 64512   ;;  %v714_v8 = vld [vmem:[%s905_s1] sm:$0xff]  ;;  %vm326_vm2 = vcmask 965632   ;;  %v717_v12 = vld [vmem:[%s905_s1 + $0x18] sm:$0xff] }
   0xd   : > { %s712_s16 = sshll.u32 %s913_s12, 3  ;;  %vm229_vm3 = vcmask 1039360   ;;  %vm290_vm4 = vcmask 1031168   ;;  %v715_v21 = vld [vmem:[%s905_s1 + $0x8] sm:$0xff]  ;;  %v716_v22 = vld [vmem:[%s905_s1 + $0x10] sm:$0xff]  ;;  %vm362_vm5 = vcmask 957440  }
   0xe   : > { %s836_s19 = scalar_lea.vmem %s904_s0, %s712_s16  ;;  %v530_v24 = vld [vmem:[%s906_s2] sm:$0xff]  ;;  %v531_v25 = vld [vmem:[%s906_s2 + $0x8] sm:$0xff]  ;;  %v791_v26 = vmov 0   ;;  %vm434_vm6 = vcmask 883712   ;;  %vm470_vm7 = vcmask 875520   ;;  %v720_v39 = vld [vmem:[%s905_s1 + $0x30] sm:$0xff] }
   0xf   : > { %v211_v0 = vld [vmem:[%s836_s19] sm:$0xff]  ;;  %756 = vset.pattern.permute.xlu1 %v791_v26  ;;  %757 = vset.pattern.permute.xlu2 %v791_v26  ;;  %v721_v40 = vld [vmem:[%s905_s1 + $0x38] sm:$0xff]  ;;  %vm398_vm8 = vcmask 949248   ;;  %v719_v45 = vld [vmem:[%s905_s1 + $0x28] sm:$0xff]  ;;  %vm506_vm9 = vcmask 867328  }
  0x10   : > { %v221_v1 = vunpack.c.l.b16 %v211_v0  ;;  %v222_v3 = vunpack.c.h.b16 %v211_v0  ;;  %v208_v6 = vld [vmem:[%s836_s19] sm:$0xf]  ;;  %758 = vset.pattern.permute.xlu0 %v791_v26 }
  0x11   : > { %v262_v7 = vsel %vm235_vm0, %v208_v6, 0  ;;  %v718_v38 = vld [vmem:[%s905_s1 + $0x20] sm:$0xff] }
  0x12   : > { %v223_v2 = vpack.c.b16 %v221_v1, %v221_v1  ;;  %v224_v4 = vpack.c.b16 %v222_v3, %v222_v3  ;;  %271 = vmatpush.bf16.msra.mxu1 %v262_v7  ;;  %v722_v50 = vld [vmem:[%s905_s1 + $0x40] sm:$0xff] }
  0x14   : > { %286 = vrot.lane.b32.xlu1 %v223_v2, %s783_s20  ;;  %225 = vrot.lane.b32.xlu0 %v223_v2, %s784_s21 }
  0x15   : > { %322 = vrot.lane.b32.xlu2 %v223_v2, %s785_s22  ;;  %660 = vmatmul.msk.bf16.vlgmr.msra.gmra.mxu1 %vm231_vm1, %v714_v8 }
  0x1c   : > { %288 = vrot.lane.b32.xlu1 %v224_v4, %s783_s20  ;;  %227 = vrot.lane.b32.xlu0 %v224_v4, %s784_s21 }
  0x1d   : > { %324 = vrot.lane.b32.xlu2 %v224_v4, %s785_s22 }
  0x24   : > { %360 = vrot.lane.b32.xlu1 %v224_v4, %s786_s23  ;;  %358 = vrot.lane.b32.xlu0 %v223_v2, %s786_s23 }
  0x25   : > { %430 = vrot.lane.b32.xlu2 %v223_v2, %s787_s24 }
  0x2c   : > { %466 = vrot.lane.b32.xlu1 %v223_v2, %s788_s25  ;;  %432 = vrot.lane.b32.xlu0 %v224_v4, %s787_s24 }
  0x2d   : > { %468 = vrot.lane.b32.xlu2 %v224_v4, %s788_s25 }
  0x34   : > { %396 = vrot.lane.b32.xlu1 %v224_v4, %s789_s26  ;;  %394 = vrot.lane.b32.xlu0 %v223_v2, %s789_s26 }
  0x35   : > { %502 = vrot.lane.b32.xlu2 %v223_v2, %s790_s27 }
  0x3c   : > { %504 = vrot.lane.b32.xlu0 %v224_v4, %s790_s27  ;;  %534 = vperm.xlu1 %756, %v530_v24   ;;  %s713_s27 = sshll.u32 %s913_s12, 4 }
  0x3d   : > { %539 = vperm.xlu2 %757, %v531_v25   ;;  %s206_s30 = scalar_lea.vmem %s907_s3, %s713_s27 }
  0x6f   : > { %v323_v5 = vpop.permute.xlu2 %322 }
  0x77   : > { %v325_v9 = vpop.permute.xlu2 %324 }
  0x78   : > { %v327_v10 = vsel %vm326_vm2, %v323_v5, %v325_v9 }
  0x79   : > { %v332_v11 = vsel %vm235_vm0, %v327_v10, 0 }
  0x7a   : > { %341 = vmatpush.bf16.msra.mxu3 %v332_v11 }
  0x7d   : > { %674 = vmatmul.msk.bf16.vlgmr.msra.gmra.mxu3 %vm231_vm1, %v717_v12 }
  0x7f   : > { %v431_v23 = vpop.permute.xlu2 %430 }
  0x86   : > { %v287_v13 = vpop.permute.xlu1 %286  ;;  %v226_v14 = vpop.permute.xlu0 %225 }
  0x87   : > { %v469_v31 = vpop.permute.xlu2 %468 }
  0x8e   : > { %v289_v15 = vpop.permute.xlu1 %288  ;;  %v228_v16 = vpop.permute.xlu0 %227 }
  0x8f   : > { %v230_v17 = vsel %vm229_vm3, %v226_v14, %v228_v16  ;;  %v291_v18 = vsel %vm290_vm4, %v287_v13, %v289_v15  ;;  %v503_v46 = vpop.permute.xlu2 %502 }
  0x90   : > { %v237_v19 = vsel %vm235_vm0, %v230_v17, 0  ;;  %v296_v20 = vsel %vm235_vm0, %v291_v18, 0 }
  0x91   : > { %246 = vmatpush.bf16.msra.mxu0 %v237_v19  ;;  %305 = vmatpush.bf16.msra.mxu2 %v296_v20 }
  0x92   : > { %v273_v52 = vpop.f32.mrf.mxu1 }
  0x94   : > { %655 = vmatmul.msk.bf16.vlgmr.msra.gmra.mxu0 %vm231_vm1, %v715_v21  ;;  %667 = vmatmul.msk.bf16.vlgmr.msra.gmra.mxu2 %vm231_vm1, %v716_v22 }
  0x96   : > { %v361_v27 = vpop.permute.xlu1 %360  ;;  %v359_v28 = vpop.permute.xlu0 %358 }
  0x97   : > { %v363_v29 = vsel %vm362_vm5, %v359_v28, %v361_v27 }
  0x98   : > { %v368_v30 = vsel %vm235_vm0, %v363_v29, 0 }
  0x99   : > { %377 = vmatpush.bf16.msrb.mxu0 %v368_v30 }
  0x9a   : > { %v275_v58 = vpop.f32.mrf.mxu1 }
  0x9e   : > { %v467_v32 = vpop.permute.xlu1 %466  ;;  %v433_v33 = vpop.permute.xlu0 %432 }
  0x9f   : > { %v435_v34 = vsel %vm434_vm6, %v431_v23, %v433_v33  ;;  %v471_v35 = vsel %vm470_vm7, %v467_v32, %v469_v31  ;;  %v540_v23 = vpop.permute.xlu2 %539 }
  0xa0   : > { %v440_v36 = vsel %vm235_vm0, %v435_v34, 0  ;;  %v476_v37 = vsel %vm235_vm0, %v471_v35, 0 }
  0xa1   : > { %449 = vmatpush.bf16.msrb.mxu2 %v440_v36  ;;  %485 = vmatpush.bf16.msrb.mxu3 %v476_v37 }
  0xa4   : > { %681 = vmatmul.msk.bf16.vlgmr.msrb.gmra.mxu0 %vm231_vm1, %v718_v38  ;;  %695 = vmatmul.msk.bf16.vlgmr.msrb.gmra.mxu2 %vm231_vm1, %v720_v39 }
  0xa5   : > { %702 = vmatmul.msk.bf16.vlgmr.msrb.gmra.mxu3 %vm231_vm1, %v721_v40 }
  0xa6   : > { %v397_v41 = vpop.permute.xlu1 %396  ;;  %v395_v42 = vpop.permute.xlu0 %394 }
  0xa7   : > { %v399_v43 = vsel %vm398_vm8, %v395_v42, %v397_v41 }
  0xa8   : > { %v404_v44 = vsel %vm235_vm0, %v399_v43, 0 }
  0xa9   : > { %413 = vmatpush.bf16.msrb.mxu1 %v404_v44 }
  0xac   : > { %688 = vmatmul.msk.bf16.vlgmr.msrb.gmra.mxu1 %vm231_vm1, %v719_v45 }
  0xae   : > { %v505_v47 = vpop.permute.xlu0 %504  ;;  %v535_v11 = vpop.permute.xlu1 %534 }
  0xaf   : > { %v507_v48 = vsel %vm506_vm9, %v503_v46, %v505_v47 }
  0xb0   : > { %v512_v49 = vsel %vm235_vm0, %v507_v48, 0 }
  0xb1   : > { %521 = vmatpush.bf16.msra.mxu0 %v512_v49 }
  0xb4   : > { %709 = vmatmul.msk.bf16.vlgmr.msra.gmra.mxu0 %vm231_vm1, %v722_v50 }
 0x100   : > { %v343_v55 = vpop.f32.mrf.mxu3 }
 0x108   : > { %v345_v61 = vpop.f32.mrf.mxu3 }
 0x111   : > { %v248_v51 = vpop.f32.mrf.mxu0 }
 0x112   : > { %v274_v57 = vadd.f32 %v273_v52, %v248_v51 }
 0x117   : > { %v307_v53 = vpop.f32.mrf.mxu2 }
 0x118   : > { %v312_v60 = vadd.f32 %v307_v53, %v274_v57 }
 0x119   : > { %v250_v54 = vpop.f32.mrf.mxu0 }
 0x11a   : > { %v348_v62 = vadd.f32 %v343_v55, %v312_v60  ;;  %v276_v63 = vadd.f32 %v275_v58, %v250_v54 }
 0x11f   : > { %v309_v56 = vpop.f32.mrf.mxu2 }
 0x120   : > { %v313_v4 = vadd.f32 %v309_v56, %v276_v63 }
 0x121   : > { %v379_v59 = vpop.f32.mrf.mxu0 }
 0x122   : > { %v384_v0 = vadd.f32 %v379_v59, %v348_v62  ;;  %v349_v8 = vadd.f32 %v345_v61, %v313_v4 }
 0x127   : > { %v451_v1 = vpop.f32.mrf.mxu2 }
 0x128   : > { %v487_v7 = vpop.f32.mrf.mxu3 }
 0x129   : > { %v381_v2 = vpop.f32.mrf.mxu0  ;;  %v415_v3 = vpop.f32.mrf.mxu1 }
 0x12a   : > { %v420_v5 = vadd.f32 %v415_v3, %v384_v0  ;;  %v385_v9 = vadd.f32 %v381_v2, %v349_v8 }
 0x12c   : > { %v456_v6 = vadd.f32 %v451_v1, %v420_v5 }
 0x12e   : > { %v492_v10 = vadd.f32 %v487_v7, %v456_v6 }
 0x12f   : > { %v453_v16 = vpop.f32.mrf.mxu2 }
 0x130   : > { %v489_v20 = vpop.f32.mrf.mxu3 }
 0x131   : > { %v417_v12 = vpop.f32.mrf.mxu1  ;;  %v523_v13 = vpop.f32.mrf.mxu0 }
 0x132   : > { %v421_v14 = vadd.f32 %v417_v12, %v385_v9  ;;  %v528_v15 = vadd.f32 %v523_v13, %v492_v10 }
 0x134   : > { %v542_v17 = vadd.f32 %v535_v11, %v528_v15  ;;  %v457_v18 = vadd.f32 %v453_v16, %v421_v14 }
 0x136   : > { %v544_v19 = vmax.f32 %v542_v17, 0.0  ;;  %v493_v21 = vadd.f32 %v489_v20, %v457_v18 }
 0x138   : > { %546 = vst [vmem:[%s206_s30] sm:$0xff] %v544_v19 }
 0x139   : > { %v525_v22 = vpop.f32.mrf.mxu0 }
 0x13a   : > { %v529_v24 = vadd.f32 %v525_v22, %v493_v21 }
 0x13c   : > { %v543_v25 = vadd.f32 %v540_v23, %v529_v24 }
 0x13e   : > { %v545_v26 = vmax.f32 %v543_v25, 0.0 }
 0x140   : > { %547 = vst [vmem:[%s206_s30 + $0x8] sm:$0xff] %v545_v26 }
 0x141 PF: > { %s13_s14 = sadd.s32 1, %s781_s14   ;;  %s908_s12 = smov %s777_s13 }
 0x142   : > { %p10_p5 = scmp.ge.s32.totalorder %s13_s14, 4   ;;  %s909_s13 = smov %s911_s15 }
 0x144   :  { %12 = sbr.rel (!%p10_p5) target bundleno = 2 (0x2), region = 70 }

// kernel: a_net_forward.7
= control target key start
LH: loop header
LB: loop body
LE: loop exit
PB: predicated region body
PF: predicated region fallthrough
CT: control target
= control target key end

     0   :  { %s1253_s12 = smov 0   ;;  %s1255_s13 = smov 0   ;;  %s1562_s0 = inlined_call_operand.vmem [shape: bf16[2,1,24,512], index: 0, kind: input, shape index: {}]   ;;  %s1563_s1 = inlined_call_operand.vmem [shape: bf16[9,8,24], index: 1, kind: input, shape index: {}]   ;;  %s1564_s2 = inlined_call_operand.vmem [shape: f32[8,1], index: 2, kind: input, shape index: {}]   ;;  %s1565_s3 = inlined_call_operand.vmem [shape: f32[2,1,8,384], index: 3, kind: output, shape index: {}]  }
   0x1   :  { %s1257_s14 = smov 0  }
   0x2 LB: > { %s25_s15 = sadd.s32 1, %s1218_s13  ;;  %p1088_p0 = scmp.ge.s32.totalorder %s1222_s14, 1  ;;  %s1222_s14 = sphi %s1257_s14, %s13_s14   ;;  %s1218_s13 = sphi %s1255_s13, %s1567_s13   ;;  %s1214_s12 = sphi %s1253_s12, %s1566_s12  }
   0x3   : > { %p27_p1 = scmp.ge.s32.totalorder %s25_s15, 2  ;;  %p157_p2 = scmp.lt.s32.totalorder %s1222_s14, 3 }
   0x5   : > { %s1569_s15 = smov (%p27_p1, %s25_s15), 0  ;;  %p158_p3 = pnand %p1088_p0, %p157_p2 }
   0x6   : > { %p189_p4 = scmp.lt.s32.totalorder (!%p158_p3), %s1214_s12, 1  ;;  %s1224_s20 = smov (!%p158_p3), 127  }
   0x7   : > { %161 = sbr.rel (%p158_p3) target bundleno = 443 (0x1bb), region = 32  ;;  %s1225_s21 = smov (!%p158_p3), 126  }
   0x8   : > { %s1226_s22 = smov (!%p158_p3), 110   ;;  %s1227_s23 = smov (!%p158_p3), 109  }
   0x9   : > { %s1228_s24 = smov (!%p158_p3), 108   ;;  %s1229_s25 = smov (!%p158_p3), 92  }
   0xa   : > { %s1230_s26 = smov (!%p158_p3), 91   ;;  %s1231_s4 = smov (!%p158_p3), 90  }
   0xc   : > { %s1571_s12 = smov (!%p189_p4, %s1214_s12), 1  ;;  %vm265_vm0 = vcmask 1039360   ;;  %vm279_vm1 = vcmask 1043456   ;;  %vm275_vm2 = vcmask 195584   ;;  %v214_v44 = vld [vmem:[%s1563_s1] sm:$0xf] }
   0xd   : > { %s1163_s16 = smul.u32 48, %s1571_s12  ;;  %v1091_v51 = vld [vmem:[%s1563_s1 + $0x4] sm:$0xf]  ;;  %vm421_vm3 = vcmask 1031168   ;;  %vm503_vm4 = vcmask 900096   ;;  %vm585_vm5 = vcmask 891904  }
   0xe   : > { %vm749_vm6 = vcmask 752640   ;;  %vm667_vm7 = vcmask 883712   ;;  %vm831_vm8 = vcmask 744448   ;;  %vm913_vm9 = vcmask 736256  }
   0xf   : > { %s1277_s19 = scalar_lea.vmem %s1562_s0, %s1163_s16 }
  0x10   : > { %v1102_v0 = vld [vmem:[%s1277_s19 + $0x8] sm:$0xf]  ;;  %v1162_v1 = vld [vmem:[%s1277_s19 + $0x14] sm:$0xf0]  ;;  %v219_v5 = vld [vmem:[%s1277_s19 + $0x20] sm:$0xff] }
  0x11   : > { %v220_v2 = vld [vmem:[%s1277_s19 + $0x28] sm:$0xff]  ;;  %v1282_v3 = vor.u32 %v1162_v1, %v1102_v0  ;;  %v237_v6 = vunpack.c.l.b16 %v219_v5  ;;  %v1104_v9 = vld [vmem:[%s1277_s19 + $0x18] sm:$0xf0]  ;;  %v238_v12 = vunpack.c.h.b16 %v219_v5  ;;  %v1159_v16 = vld [vmem:[%s1277_s19 + $0x4] sm:$0xf] }
  0x12   : > { %v239_v4 = vunpack.c.l.b16 %v220_v2  ;;  %v1160_v8 = vld [vmem:[%s1277_s19 + $0xc] sm:$0xf]  ;;  %v240_v11 = vunpack.c.h.b16 %v220_v2  ;;  %v1096_v17 = vld [vmem:[%s1277_s19 + $0x10] sm:$0xf0]  ;;  %v1094_v18 = vld [vmem:[%s1277_s19] sm:$0xf] }
  0x13   : > { %253 = vrot.lane.b32.xlu1 %v1282_v3, %s1224_s20  ;;  %v1290_v10 = vpack.c.b16 %v237_v6, %v237_v6  ;;  %v1294_v13 = vor.u32 %v1160_v8, %v1104_v9  ;;  %v1298_v15 = vpack.c.b16 %v238_v12, %v238_v12  ;;  %v1161_v19 = vld [vmem:[%s1277_s19 + $0xc] sm:$0xf0]  ;;  %v1307_v20 = vor.u32 %v1159_v16, %v1096_v17  ;;  %v1113_v29 = vld [vmem:[%s1277_s19] sm:$0xf]  ;;  %v213_v37 = vld [vmem:[%s1277_s19 + $0x28] sm:$0xf] }
  0x14   : > { %v1286_v7 = vpack.c.b16 %v239_v4, %v239_v4  ;;  %v1296_v14 = vpack.c.b16 %v240_v11, %v240_v11  ;;  %v1309_v21 = vor.u32 %v1161_v19, %v1094_v18  ;;  %v1157_v30 = vld [vmem:[%s1277_s19 + $0xc] sm:$0xf0]  ;;  %v342_v38 = vunpack.c.l.b16 %v213_v37  ;;  %v1121_v48 = vld [vmem:[%s1277_s19 + $0x8] sm:$0xf]  ;;  %v1158_v49 = vld [vmem:[%s1277_s19 + $0x14] sm:$0xf0] }
  0x15   : > { %257 = vrot.lane.b32.xlu2 %v1290_v10, %s1224_s20  ;;  %v356_v27 = vsel %vm279_vm1, %v1290_v10, 0  ;;  %v1114_v32 = vor.u32 %v1157_v30, %v1113_v29  ;;  %v359_v53 = vsel %vm279_vm1, %v1298_v15, 0  ;;  %v1156_v54 = vld [vmem:[%s1277_s19 + $0x4] sm:$0xf]  ;;  %v1115_v55 = vld [vmem:[%s1277_s19 + $0x10] sm:$0xf0]  ;;  %v1122_v58 = vor.u32 %v1158_v49, %v1121_v48 }
  0x16   : > { %261 = vrot.lane.b32.xlu0 %v1286_v7, %s1224_s20  ;;  %370 = vmatpush.bf16.msra.mxu3 %v356_v27  ;;  %v348_v43 = vpack.c.b16 %v342_v38, %v342_v38  ;;  %v1118_v59 = vor.u32 %v1156_v54, %v1115_v55  ;;  %v1126_v5 = vld [vmem:[%s1563_s1 + $0x8] sm:$0xf] }
  0x18   : > { %v362_v47 = vsel %vm279_vm1, %v348_v43, 0 }
  0x1a   : > { %371 = vmatpush.bf16.msra.mxu3 %v1114_v32 }
  0x1b   : > { %255 = vrot.lane.b32.xlu1 %v1294_v13, %s1224_s20 }
  0x1d   : > { %259 = vrot.lane.b32.xlu2 %v1298_v15, %s1224_s20  ;;  %1123 = vmatmul.msk.bf16.vlgmr.msra.gmra.mxu3 %vm275_vm2, %v214_v44 }
  0x1e   : > { %263 = vrot.lane.b32.xlu0 %v1296_v14, %s1224_s20 }
  0x23   : > { %251 = vrot.lane.b32.xlu1 %v1307_v20, %s1224_s20 }
  0x25   : > { %413 = vrot.lane.b32.xlu2 %v1290_v10, %s1225_s21 }
  0x26   : > { %249 = vrot.lane.b32.xlu0 %v1309_v21, %s1224_s20 }
  0x2b   : > { %405 = vrot.lane.b32.xlu1 %v1309_v21, %s1225_s21 }
  0x2d   : > { %407 = vrot.lane.b32.xlu2 %v1307_v20, %s1225_s21 }
  0x2e   : > { %415 = vrot.lane.b32.xlu0 %v1298_v15, %s1225_s21 }
  0x33   : > { %497 = vrot.lane.b32.xlu1 %v1298_v15, %s1226_s22 }
  0x35   : > { %499 = vrot.lane.b32.xlu2 %v1286_v7, %s1226_s22 }
  0x36   : > { %417 = vrot.lane.b32.xlu0 %v1286_v7, %s1225_s21 }
  0x3b   : > { %489 = vrot.lane.b32.xlu1 %v1307_v20, %s1226_s22 }
  0x3d   : > { %491 = vrot.lane.b32.xlu2 %v1282_v3, %s1226_s22 }
  0x3e   : > { %409 = vrot.lane.b32.xlu0 %v1282_v3, %s1225_s21 }
  0x43   : > { %495 = vrot.lane.b32.xlu1 %v1290_v10, %s1226_s22 }
  0x45   : > { %411 = vrot.lane.b32.xlu2 %v1294_v13, %s1225_s21 }
  0x46   : > { %419 = vrot.lane.b32.xlu0 %v1296_v14, %s1225_s21 }
  0x4b   : > { %501 = vrot.lane.b32.xlu1 %v1296_v14, %s1226_s22 }
  0x4d   : > { %581 = vrot.lane.b32.xlu2 %v1286_v7, %s1227_s23 }
  0x4e   : > { %487 = vrot.lane.b32.xlu0 %v1309_v21, %s1226_s22 }
  0x53   : > { %493 = vrot.lane.b32.xlu1 %v1294_v13, %s1226_s22 }
  0x55   : > { %573 = vrot.lane.b32.xlu2 %v1282_v3, %s1227_s23 }
  0x56   : > { %583 = vrot.lane.b32.xlu0 %v1296_v14, %s1227_s23 }
  0x5b   : > { %577 = vrot.lane.b32.xlu1 %v1290_v10, %s1227_s23 }
  0x5d   : > { %579 = vrot.lane.b32.xlu2 %v1298_v15, %s1227_s23 }
  0x5e   : > { %575 = vrot.lane.b32.xlu0 %v1294_v13, %s1227_s23 }
  0x63   : > { %571 = vrot.lane.b32.xlu1 %v1307_v20, %s1227_s23 }
  0x65   : > { %659 = vrot.lane.b32.xlu2 %v1290_v10, %s1228_s24 }
  0x66   : > { %569 = vrot.lane.b32.xlu0 %v1309_v21, %s1227_s23 }
  0x6b   : > { %741 = vrot.lane.b32.xlu1 %v1290_v10, %s1229_s25 }
  0x6d   : > { %743 = vrot.lane.b32.xlu2 %v1298_v15, %s1229_s25 }
  0x6e   : > { %661 = vrot.lane.b32.xlu0 %v1298_v15, %s1228_s24 }
  0x6f   : > { %v258_v22 = vpop.permute.xlu2 %257 }
  0x73   : > { %653 = vrot.lane.b32.xlu1 %v1307_v20, %s1228_s24 }
  0x75   : > { %733 = vrot.lane.b32.xlu2 %v1309_v21, %s1229_s25 }
  0x76   : > { %651 = vrot.lane.b32.xlu0 %v1309_v21, %s1228_s24 }
  0x77   : > { %v260_v23 = vpop.permute.xlu2 %259 }
  0x78   : > { %v269_v24 = vsel %vm265_vm0, %v258_v22, %v260_v23 }
  0x79   : > { %v281_v25 = vsel %vm279_vm1, %v269_v24, 0 }
  0x7a   : > { %295 = vmatpush.bf16.msra.mxu0 %v281_v25 }
  0x7b   : > { %663 = vrot.lane.b32.xlu1 %v1286_v7, %s1228_s24 }
  0x7d   : > { %665 = vrot.lane.b32.xlu2 %v1296_v14, %s1228_s24 }
  0x7e   : > { %735 = vrot.lane.b32.xlu0 %v1307_v20, %s1229_s25 }
  0x7f   : > { %v1353_v26 = vpop.permute.xlu2 %413 }
  0x83   : > { %657 = vrot.lane.b32.xlu1 %v1294_v13, %s1228_s24 }
  0x85   : > { %v254_v28 = vpop.permute.xlu1 %253  ;;  %745 = vrot.lane.b32.xlu2 %v1286_v7, %s1229_s25 }
  0x86   : > { %655 = vrot.lane.b32.xlu0 %v1282_v3, %s1228_s24 }
  0x87   : > { %v1364_v34 = vpop.permute.xlu2 %407 }
  0x88   : > { %v262_v31 = vpop.permute.xlu0 %261 }
  0x89   : > { %v270_v33 = vsel %vm265_vm0, %v260_v23, %v262_v31 }
  0x8a   : > { %v284_v35 = vsel %vm279_vm1, %v270_v33, 0 }
  0x8b   : > { %308 = vmatpush.bf16.msra.mxu1 %v284_v35  ;;  %827 = vrot.lane.b32.xlu1 %v1286_v7, %s1230_s26 }
  0x8d   : > { %v256_v36 = vpop.permute.xlu1 %255  ;;  %737 = vrot.lane.b32.xlu2 %v1282_v3, %s1229_s25 }
  0x8e   : > { %825 = vrot.lane.b32.xlu0 %v1298_v15, %s1230_s26  ;;  %v268_v46 = vsel %vm265_vm0, %v254_v28, %v256_v36 }
  0x8f   : > { %v1375_v41 = vpop.permute.xlu2 %499 }
  0x90   : > { %v264_v39 = vpop.permute.xlu0 %263 }
  0x91   : > { %v271_v40 = vsel %vm265_vm0, %v262_v31, %v264_v39 }
  0x92   : > { %v287_v42 = vsel %vm279_vm1, %v271_v40, 0 }
  0x93   : > { %321 = vmatpush.bf16.msra.mxu2 %v287_v42  ;;  %819 = vrot.lane.b32.xlu1 %v1282_v3, %s1230_s26 }
  0x95   : > { %v252_v45 = vpop.permute.xlu1 %251  ;;  %747 = vrot.lane.b32.xlu2 %v1296_v14, %s1229_s25 }
  0x96   : > { %817 = vrot.lane.b32.xlu0 %v1307_v20, %s1230_s26  ;;  %v267_v50 = vsel %vm265_vm0, %v252_v45, %v254_v28 }
  0x97   : > { %322 = vmatpush.bf16.msra.mxu2 %v268_v46  ;;  %309 = vmatpush.bf16.msra.mxu1 %v267_v50  ;;  %v1401_v57 = vpop.permute.xlu2 %491 }
  0x98   : > { %v250_v52 = vpop.permute.xlu0 %249 }
  0x99   : > { %v266_v56 = vsel %vm265_vm0, %v250_v52, %v252_v45 }
  0x9a   : > { %296 = vmatpush.bf16.msra.mxu0 %v266_v56  ;;  %1110 = vmatmul.msk.bf16.vlgmr.msra.gmra.mxu2 %vm275_vm2, %v1091_v51 }
  0x9b   : > { %396 = vmatpush.bf16.msrb.mxu1 %v362_v47  ;;  %739 = vrot.lane.b32.xlu1 %v1294_v13, %s1229_s25  ;;  %s1164_s25 = smul.u32 24, %s1571_s12 }
  0x9c   : > { %1109 = vmatmul.msk.bf16.vlgmr.msra.gmra.mxu1 %vm275_vm2, %v1091_v51 }
  0x9d   : > { %1108 = vmatmul.msk.bf16.vlgmr.msra.gmra.mxu0 %vm275_vm2, %v1091_v51  ;;  %v406_v60 = vpop.permute.xlu1 %405  ;;  %815 = vrot.lane.b32.xlu2 %v1309_v21, %s1230_s26  ;;  %s206_s28 = scalar_lea.vmem %s1565_s3, %s1164_s25 }
  0x9e   : > { %383 = vmatpush.bf16.msrb.mxu0 %v359_v53  ;;  %823 = vrot.lane.b32.xlu0 %v1290_v10, %s1230_s26  ;;  %v422_v2 = vsel %vm421_vm3, %v406_v60, %v1364_v34 }
  0x9f   : > { %397 = vmatpush.bf16.msrb.mxu1 %v1122_v58  ;;  %v412_v63 = vpop.permute.xlu2 %411 }
  0xa0   : > { %v416_v61 = vpop.permute.xlu0 %415 }
  0xa1   : > { %v425_v62 = vsel %vm421_vm3, %v1353_v26, %v416_v61 }
  0xa2   : > { %384 = vmatpush.bf16.msrb.mxu0 %v1118_v59  ;;  %v435_v0 = vsel %vm279_vm1, %v425_v62, 0  ;;  %v1138_v62 = vld [vmem:[%s1563_s1 + $0x14] sm:$0xf] }
  0xa3   : > { %449 = vmatpush.bf16.msrb.mxu2 %v435_v0  ;;  %909 = vrot.lane.b32.xlu1 %v1286_v7, %s1231_s4 }
  0xa5   : > { %v498_v1 = vpop.permute.xlu1 %497  ;;  %911 = vrot.lane.b32.xlu2 %v1296_v14, %s1231_s4 }
  0xa6   : > { %829 = vrot.lane.b32.xlu0 %v1296_v14, %s1230_s26  ;;  %v508_v4 = vsel %vm503_vm4, %v498_v1, %v1375_v41 }
  0xa7   : > { %450 = vmatpush.bf16.msrb.mxu2 %v422_v2  ;;  %v520_v6 = vsel %vm279_vm1, %v508_v4, 0  ;;  %v582_v9 = vpop.permute.xlu2 %581 }
  0xa8   : > { %v418_v7 = vpop.permute.xlu0 %417 }
  0xa9   : > { %v426_v8 = vsel %vm421_vm3, %v416_v61, %v418_v7 }
  0xaa   : > { %v438_v11 = vsel %vm279_vm1, %v426_v8, 0  ;;  %1127 = vmatmul.msk.bf16.vlgmr.msrb.gmra.mxu2 %vm275_vm2, %v1126_v5 }
  0xab   : > { %544 = vmatpush.bf16.msra.mxu2 %v520_v6  ;;  %462 = vmatpush.bf16.msrb.mxu3 %v438_v11 }
  0xac   : > { %1125 = vmatmul.msk.bf16.vlgmr.msrb.gmra.mxu1 %vm275_vm2, %v214_v44  ;;  %901 = vrot.lane.b32.xlu1 %v1282_v3, %s1231_s4 }
  0xad   : > { %1124 = vmatmul.msk.bf16.vlgmr.msrb.gmra.mxu0 %vm275_vm2, %v214_v44  ;;  %v490_v12 = vpop.permute.xlu1 %489  ;;  %903 = vrot.lane.b32.xlu2 %v1294_v13, %s1231_s4  ;;  %v1134_v44 = vld [vmem:[%s1563_s1 + $0x10] sm:$0xf] }
  0xae   : > { %821 = vrot.lane.b32.xlu0 %v1294_v13, %s1230_s26  ;;  %v505_v14 = vsel %vm503_vm4, %v490_v12, %v1401_v57  ;;  %v1130_v13 = vld [vmem:[%s1563_s1 + $0xc] sm:$0xf] }
  0xaf   : > { %545 = vmatpush.bf16.msra.mxu2 %v505_v14  ;;  %v574_v18 = vpop.permute.xlu2 %573 }
  0xb0   : > { %v410_v16 = vpop.permute.xlu0 %409 }
  0xb1   : > { %v423_v17 = vsel %vm421_vm3, %v1364_v34, %v410_v16 }
  0xb2   : > { %463 = vmatpush.bf16.msrb.mxu3 %v423_v17 }
  0xb4   : > { %907 = vrot.lane.b32.xlu1 %v1298_v15, %s1231_s4 }
  0xb5   : > { %1128 = vmatmul.msk.bf16.vlgmr.msrb.gmra.mxu3 %vm275_vm2, %v1126_v5  ;;  %v496_v3 = vpop.permute.xlu1 %495  ;;  %897 = vrot.lane.b32.xlu2 %v1309_v21, %s1231_s4  ;;  %v424_v21 = vsel %vm421_vm3, %v410_v16, %v412_v63 }
  0xb6   : > { %905 = vrot.lane.b32.xlu0 %v1290_v10, %s1231_s4  ;;  %v507_v19 = vsel %vm503_vm4, %v496_v3, %v498_v1 }
  0xb7   : > { %v517_v22 = vsel %vm279_vm1, %v507_v19, 0  ;;  %v580_v24 = vpop.permute.xlu2 %579 }
  0xb8   : > { %v420_v23 = vpop.permute.xlu0 %419  ;;  %531 = vmatpush.bf16.msra.mxu1 %v517_v22  ;;  %v590_v10 = vsel %vm585_vm5, %v580_v24, %v582_v9 }
  0xb9   : > { %v427_v15 = vsel %vm421_vm3, %v418_v7, %v420_v23  ;;  %v602_v30 = vsel %vm279_vm1, %v590_v10, 0 }
  0xba   : > { %v441_v25 = vsel %vm279_vm1, %v427_v15, 0  ;;  %1132 = vmatmul.msk.bf16.vlgmr.msra.gmra.mxu2 %vm275_vm2, %v1130_v13 }
  0xbb   : > { %475 = vmatpush.bf16.msra.mxu0 %v441_v25 }
  0xbd   : > { %v502_v26 = vpop.permute.xlu1 %501 }
  0xbe   : > { %899 = vrot.lane.b32.xlu0 %v1307_v20, %s1231_s4  ;;  %v509_v27 = vsel %vm503_vm4, %v1375_v41, %v502_v26  ;;  %v1146_v26 = vld [vmem:[%s1563_s1 + $0x1c] sm:$0xf] }
  0xbf   : > { %476 = vmatpush.bf16.msra.mxu0 %v424_v21  ;;  %v523_v28 = vsel %vm279_vm1, %v509_v27, 0  ;;  %v660_v32 = vpop.permute.xlu2 %659 }
  0xc0   : > { %v488_v29 = vpop.permute.xlu0 %487  ;;  %557 = vmatpush.bf16.msra.mxu3 %v523_v28 }
  0xc1   : > { %v504_v31 = vsel %vm503_vm4, %v488_v29, %v490_v12 }
  0xc2   : > { %532 = vmatpush.bf16.msra.mxu1 %v504_v31  ;;  %1129 = vmatmul.msk.bf16.vlgmr.msra.gmra.mxu0 %vm275_vm2, %v1126_v5 }
  0xc5   : > { %1131 = vmatmul.msk.bf16.vlgmr.msra.gmra.mxu1 %vm275_vm2, %v1130_v13  ;;  %v494_v20 = vpop.permute.xlu1 %493 }
  0xc6   : > { %626 = vmatpush.bf16.msrb.mxu1 %v602_v30  ;;  %v506_v33 = vsel %vm503_vm4, %v1401_v57, %v494_v20 }
  0xc7   : > { %558 = vmatpush.bf16.msra.mxu3 %v506_v33  ;;  %v744_v36 = vpop.permute.xlu2 %743 }
  0xc8   : > { %v584_v34 = vpop.permute.xlu0 %583 }
  0xc9   : > { %v591_v35 = vsel %vm585_vm5, %v582_v9, %v584_v34  ;;  %v1142_v9 = vld [vmem:[%s1563_s1 + $0x18] sm:$0xf]  ;;  %v1232_v34 = vmov 0  }
  0xca   : > { %v605_v37 = vsel %vm279_vm1, %v591_v35, 0  ;;  %1133 = vmatmul.msk.bf16.vlgmr.msra.gmra.mxu3 %vm275_vm2, %v1130_v13  ;;  %1198 = vset.pattern.permute.xlu1 %v1232_v34  ;;  %v373_v35 = vpop.f32.mrf.mxu3 }
  0xcb   : > { %639 = vmatpush.bf16.msrb.mxu2 %v605_v37  ;;  %1199 = vset.pattern.permute.xlu0 %v1232_v34 }
  0xcd   : > { %v578_v38 = vpop.permute.xlu1 %577 }
  0xce   : > { %v589_v39 = vsel %vm585_vm5, %v578_v38, %v580_v24 }
  0xcf   : > { %v599_v40 = vsel %vm279_vm1, %v589_v39, 0  ;;  %v734_v43 = vpop.permute.xlu2 %733 }
  0xd0   : > { %v576_v41 = vpop.permute.xlu0 %575  ;;  %613 = vmatpush.bf16.msrb.mxu0 %v599_v40 }
  0xd1   : > { %v588_v42 = vsel %vm585_vm5, %v574_v18, %v576_v41 }
  0xd2   : > { %640 = vmatpush.bf16.msrb.mxu2 %v588_v42 }
  0xd5   : > { %1137 = vmatmul.msk.bf16.vlgmr.msrb.gmra.mxu2 %vm275_vm2, %v1134_v44  ;;  %v572_v45 = vpop.permute.xlu1 %571 }
  0xd6   : > { %v587_v46 = vsel %vm585_vm5, %v572_v45, %v574_v18 }
  0xd7   : > { %627 = vmatpush.bf16.msrb.mxu1 %v587_v46  ;;  %v666_v49 = vpop.permute.xlu2 %665 }
  0xd8   : > { %v570_v47 = vpop.permute.xlu0 %569 }
  0xd9   : > { %v586_v48 = vsel %vm585_vm5, %v570_v47, %v572_v45  ;;  %v375_v47 = vpop.f32.mrf.mxu3 }
  0xda   : > { %614 = vmatpush.bf16.msrb.mxu0 %v586_v48  ;;  %1136 = vmatmul.msk.bf16.vlgmr.msrb.gmra.mxu1 %vm275_vm2, %v1134_v44 }
  0xdd   : > { %1135 = vmatmul.msk.bf16.vlgmr.msrb.gmra.mxu0 %vm275_vm2, %v1134_v44  ;;  %v742_v50 = vpop.permute.xlu1 %741 }
  0xde   : > { %v753_v51 = vsel %vm749_vm6, %v742_v50, %v744_v36  ;;  %v1150_v50 = vld [vmem:[%s1563_s1 + $0x20] sm:$0xf] }
  0xdf   : > { %v763_v52 = vsel %vm279_vm1, %v753_v51, 0  ;;  %v746_v55 = vpop.permute.xlu2 %745 }
  0xe0   : > { %v662_v53 = vpop.permute.xlu0 %661  ;;  %777 = vmatpush.bf16.msra.mxu2 %v763_v52  ;;  %v754_v57 = vsel %vm749_vm6, %v744_v36, %v746_v55 }
  0xe1   : > { %v671_v54 = vsel %vm667_vm7, %v660_v32, %v662_v53  ;;  %v766_v60 = vsel %vm279_vm1, %v754_v57, 0  ;;  %v977_v32 = vld [vmem:[%s1564_s2] sm:$0xff] }
  0xe2   : > { %v681_v56 = vsel %vm279_vm1, %v671_v54, 0  ;;  %980 = vperm.xlu1 %1198, %v977_v32  }
  0xe3   : > { %695 = vmatpush.bf16.msrb.mxu3 %v681_v56 }
  0xe5   : > { %v654_v58 = vpop.permute.xlu1 %653 }
  0xe7   : > { %v738_v63 = vpop.permute.xlu2 %737 }
  0xe8   : > { %v652_v59 = vpop.permute.xlu0 %651 }
  0xe9   : > { %v668_v61 = vsel %vm667_vm7, %v652_v59, %v654_v58 }
  0xea   : > { %696 = vmatpush.bf16.msrb.mxu3 %v668_v61 }
  0xed   : > { %1139 = vmatmul.msk.bf16.vlgmr.msrb.gmra.mxu3 %vm275_vm2, %v1138_v62  ;;  %v664_v0 = vpop.permute.xlu1 %663 }
  0xee   : > { %790 = vmatpush.bf16.msra.mxu3 %v766_v60  ;;  %v672_v1 = vsel %vm667_vm7, %v662_v53, %v664_v0  ;;  %v673_v2 = vsel %vm667_vm7, %v664_v0, %v666_v49 }
  0xef   : > { %v684_v4 = vsel %vm279_vm1, %v672_v1, 0  ;;  %v687_v5 = vsel %vm279_vm1, %v673_v2, 0  ;;  %v748_v11 = vpop.permute.xlu2 %747 }
  0xf0   : > { %v736_v6 = vpop.permute.xlu0 %735  ;;  %708 = vmatpush.bf16.msra.mxu0 %v684_v4  ;;  %721 = vmatpush.bf16.msra.mxu1 %v687_v5  ;;  %v755_v12 = vsel %vm749_vm6, %v746_v55, %v748_v11 }
  0xf1   : > { %v750_v7 = vsel %vm749_vm6, %v734_v43, %v736_v6  ;;  %v751_v8 = vsel %vm749_vm6, %v736_v6, %v738_v63  ;;  %v769_v17 = vsel %vm279_vm1, %v755_v12, 0 }
  0xf2   : > { %778 = vmatpush.bf16.msra.mxu2 %v750_v7  ;;  %791 = vmatpush.bf16.msra.mxu3 %v751_v8 }
  0xf5   : > { %1143 = vmatmul.msk.bf16.vlgmr.msra.gmra.mxu2 %vm275_vm2, %v1142_v9  ;;  %v658_v14 = vpop.permute.xlu1 %657 }
  0xf7   : > { %v816_v10 = vpop.permute.xlu2 %815 }
  0xf8   : > { %v656_v16 = vpop.permute.xlu0 %655 }
  0xf9   : > { %v669_v18 = vsel %vm667_vm7, %v654_v58, %v656_v16  ;;  %v670_v3 = vsel %vm667_vm7, %v656_v16, %v658_v14 }
  0xfa   : > { %709 = vmatpush.bf16.msra.mxu0 %v669_v18  ;;  %722 = vmatpush.bf16.msra.mxu1 %v670_v3 }
  0xfd   : > { %1140 = vmatmul.msk.bf16.vlgmr.msra.gmra.mxu0 %vm275_vm2, %v1138_v62  ;;  %1141 = vmatmul.msk.bf16.vlgmr.msra.gmra.mxu1 %vm275_vm2, %v1138_v62  ;;  %v828_v19 = vpop.permute.xlu1 %827 }
  0xfe   : > { %803 = vmatpush.bf16.msrb.mxu0 %v769_v17  ;;  %1144 = vmatmul.msk.bf16.vlgmr.msra.gmra.mxu3 %vm275_vm2, %v1142_v9 }
  0xff   : > { %v912_v31 = vpop.permute.xlu2 %911 }
 0x100   : > { %v826_v13 = vpop.permute.xlu0 %825 }
 0x101   : > { %v836_v22 = vsel %vm831_vm8, %v826_v13, %v828_v19 }
 0x102   : > { %v848_v23 = vsel %vm279_vm1, %v836_v22, 0 }
 0x103   : > { %872 = vmatpush.bf16.msrb.mxu2 %v848_v23 }
 0x105   : > { %v820_v15 = vpop.permute.xlu1 %819 }
 0x107   : > { %v904_v44 = vpop.permute.xlu2 %903 }
 0x108   : > { %v818_v24 = vpop.permute.xlu0 %817 }
 0x109   : > { %v833_v25 = vsel %vm831_vm8, %v818_v24, %v820_v15  ;;  %v832_v33 = vsel %vm831_vm8, %v816_v10, %v818_v24 }
 0x10a   : > { %873 = vmatpush.bf16.msrb.mxu2 %v833_v25 }
 0x10d   : > { %1148 = vmatmul.msk.bf16.vlgmr.msrb.gmra.mxu2 %vm275_vm2, %v1146_v26  ;;  %v740_v21 = vpop.permute.xlu1 %739 }
 0x10e   : > { %v752_v27 = vsel %vm749_vm6, %v738_v63, %v740_v21 }
 0x10f   : > { %804 = vmatpush.bf16.msrb.mxu0 %v752_v27  ;;  %v898_v2 = vpop.permute.xlu2 %897 }
 0x110   : > { %v824_v28 = vpop.permute.xlu0 %823 }
 0x111   : > { %v835_v29 = vsel %vm831_vm8, %v824_v28, %v826_v13 }
 0x112   : > { %v845_v30 = vsel %vm279_vm1, %v835_v29, 0  ;;  %1145 = vmatmul.msk.bf16.vlgmr.msrb.gmra.mxu0 %vm275_vm2, %v1142_v9 }
 0x113   : > { %859 = vmatpush.bf16.msrb.mxu1 %v845_v30 }
 0x115   : > { %v910_v20 = vpop.permute.xlu1 %909 }
 0x116   : > { %v919_v36 = vsel %vm913_vm9, %v910_v20, %v912_v31 }
 0x117   : > { %860 = vmatpush.bf16.msrb.mxu1 %v832_v33  ;;  %v933_v38 = vsel %vm279_vm1, %v919_v36, 0 }
 0x118   : > { %v830_v37 = vpop.permute.xlu0 %829  ;;  %967 = vmatpush.bf16.msra.mxu2 %v933_v38 }
 0x119   : > { %v311_v39 = vpop.f32.mrf.mxu1  ;;  %v837_v40 = vsel %vm831_vm8, %v828_v19, %v830_v37 }
 0x11a   : > { %v851_v41 = vsel %vm279_vm1, %v837_v40, 0  ;;  %1147 = vmatmul.msk.bf16.vlgmr.msrb.gmra.mxu1 %vm275_vm2, %v1146_v26  ;;  %v298_v42 = vpop.f32.mrf.mxu0 }
 0x11b   : > { %885 = vmatpush.bf16.msrb.mxu3 %v851_v41  ;;  %v374_v43 = vadd.f32 %v373_v35, %v298_v42 }
 0x11d   : > { %v324_v45 = vpop.f32.mrf.mxu2 }
 0x11e   : > { %v902_v46 = vpop.permute.xlu1 %901 }
 0x11f   : > { %v916_v48 = vsel %vm913_vm9, %v902_v46, %v904_v44 }
 0x120   : > { %v822_v49 = vpop.permute.xlu0 %821  ;;  %968 = vmatpush.bf16.msra.mxu2 %v916_v48 }
 0x121   : > { %v313_v51 = vpop.f32.mrf.mxu1  ;;  %v834_v52 = vsel %vm831_vm8, %v820_v15, %v822_v49 }
 0x122   : > { %886 = vmatpush.bf16.msrb.mxu3 %v834_v52  ;;  %v300_v53 = vpop.f32.mrf.mxu0 }
 0x123   : > { %1153 = vmatmul.msk.bf16.vlgmr.msra.gmra.mxu2 %vm275_vm2, %v1150_v50 }
 0x125   : > { %1149 = vmatmul.msk.bf16.vlgmr.msrb.gmra.mxu3 %vm275_vm2, %v1146_v26  ;;  %v326_v54 = vpop.f32.mrf.mxu2 }
 0x126   : > { %v908_v55 = vpop.permute.xlu1 %907 }
 0x127   : > { %v918_v56 = vsel %vm913_vm9, %v908_v55, %v910_v20 }
 0x128   : > { %v930_v57 = vsel %vm279_vm1, %v918_v56, 0  ;;  %v906_v58 = vpop.permute.xlu0 %905 }
 0x129   : > { %v399_v59 = vpop.f32.mrf.mxu1  ;;  %v917_v60 = vsel %vm913_vm9, %v906_v58, %v908_v55  ;;  %954 = vmatpush.bf16.msra.mxu1 %v930_v57 }
 0x12a   : > { %v400_v61 = vadd.f32 %v399_v59, %v324_v45  ;;  %v927_v62 = vsel %vm279_vm1, %v917_v60, 0  ;;  %v386_v63 = vpop.f32.mrf.mxu0 }
 0x12b   : > { %941 = vmatpush.bf16.msra.mxu0 %v927_v62  ;;  %v387_v0 = vadd.f32 %v386_v63, %v311_v39 }
 0x12d   : > { %v452_v1 = vpop.f32.mrf.mxu2 }
 0x12e   : > { %v482_v4 = vadd.f32 %v452_v1, %v374_v43 }
 0x130   : > { %v900_v5 = vpop.permute.xlu0 %899 }
 0x131   : > { %v401_v6 = vpop.f32.mrf.mxu1  ;;  %v914_v7 = vsel %vm913_vm9, %v898_v2, %v900_v5  ;;  %v915_v8 = vsel %vm913_vm9, %v900_v5, %v902_v46 }
 0x132   : > { %942 = vmatpush.bf16.msra.mxu0 %v914_v7  ;;  %955 = vmatpush.bf16.msra.mxu1 %v915_v8  ;;  %v388_v9 = vpop.f32.mrf.mxu0 }
 0x135   : > { %1151 = vmatmul.msk.bf16.vlgmr.msra.gmra.mxu0 %vm275_vm2, %v1150_v50  ;;  %1152 = vmatmul.msk.bf16.vlgmr.msra.gmra.mxu1 %vm275_vm2, %v1150_v50  ;;  %v454_v11 = vpop.f32.mrf.mxu2 }
 0x138   : > { %v465_v12 = vpop.f32.mrf.mxu3 }
 0x139   : > { %v483_v14 = vadd.f32 %v465_v12, %v387_v0 }
 0x13d   : > { %v547_v16 = vpop.f32.mrf.mxu2 }
 0x13e   : > { %v565_v17 = vadd.f32 %v547_v16, %v483_v14 }
 0x13f   : > { %v478_v18 = vpop.f32.mrf.mxu0 }
 0x140   : > { %v484_v3 = vadd.f32 %v478_v18, %v400_v61  ;;  %v467_v19 = vpop.f32.mrf.mxu3 }
 0x142   : > { %v534_v13 = vpop.f32.mrf.mxu1 }
 0x143   : > { %v564_v22 = vadd.f32 %v534_v13, %v482_v4 }
 0x145   : > { %v549_v23 = vpop.f32.mrf.mxu2 }
 0x147   : > { %v480_v15 = vpop.f32.mrf.mxu0 }
 0x14a   : > { %v536_v24 = vpop.f32.mrf.mxu1 }
 0x14d   : > { %v560_v25 = vpop.f32.mrf.mxu3 }
 0x14e   : > { %v566_v10 = vadd.f32 %v560_v25, %v484_v3 }
 0x154   : > { %v981_v55 = vpop.permute.xlu1 %980 }
 0x155   : > { %v562_v26 = vpop.f32.mrf.mxu3 }
 0x157   : > { %v629_v21 = vpop.f32.mrf.mxu1 }
 0x158   : > { %v642_v27 = vpop.f32.mrf.mxu2  ;;  %v647_v28 = vadd.f32 %v629_v21, %v565_v17 }
 0x159   : > { %v648_v29 = vadd.f32 %v642_v27, %v566_v10 }
 0x15a   : > { %v616_v30 = vpop.f32.mrf.mxu0 }
 0x15b   : > { %v646_v31 = vadd.f32 %v616_v30, %v564_v22 }
 0x15f   : > { %v631_v20 = vpop.f32.mrf.mxu1 }
 0x160   : > { %v644_v32 = vpop.f32.mrf.mxu2 }
 0x162   : > { %v618_v33 = vpop.f32.mrf.mxu0 }
 0x170   : > { %v698_v34 = vpop.f32.mrf.mxu3 }
 0x171   : > { %v728_v57 = vadd.f32 %v698_v34, %v646_v31 }
 0x178   : > { %v700_v35 = vpop.f32.mrf.mxu3  ;;  %v780_v36 = vpop.f32.mrf.mxu2 }
 0x179   : > { %v810_v61 = vadd.f32 %v780_v36, %v728_v57 }
 0x17a   : > { %v711_v37 = vpop.f32.mrf.mxu0  ;;  %v724_v38 = vpop.f32.mrf.mxu1 }
 0x17b   : > { %v730_v50 = vadd.f32 %v724_v38, %v648_v29  ;;  %v729_v58 = vadd.f32 %v711_v37, %v647_v28 }
 0x180   : > { %v782_v39 = vpop.f32.mrf.mxu2 }
 0x181   : > { %v793_v40 = vpop.f32.mrf.mxu3 }
 0x182   : > { %v713_v41 = vpop.f32.mrf.mxu0  ;;  %v726_v42 = vpop.f32.mrf.mxu1  ;;  %v811_v62 = vadd.f32 %v793_v40, %v729_v58 }
 0x189   : > { %v795_v43 = vpop.f32.mrf.mxu3 }
 0x18f   : > { %v806_v44 = vpop.f32.mrf.mxu0 }
 0x190   : > { %v875_v45 = vpop.f32.mrf.mxu2  ;;  %v812_v52 = vadd.f32 %v806_v44, %v730_v50 }
 0x191   : > { %v893_v1 = vadd.f32 %v875_v45, %v811_v62 }
 0x197   : > { %v862_v46 = vpop.f32.mrf.mxu1  ;;  %v808_v48 = vpop.f32.mrf.mxu0 }
 0x198   : > { %v877_v47 = vpop.f32.mrf.mxu2  ;;  %v892_v2 = vadd.f32 %v862_v46, %v810_v61 }
 0x19f   : > { %v864_v49 = vpop.f32.mrf.mxu1 }
 0x1a6   : > { %v970_v51 = vpop.f32.mrf.mxu2 }
 0x1a8   : > { %v888_v53 = vpop.f32.mrf.mxu3 }
 0x1a9   : > { %v894_v54 = vadd.f32 %v888_v53, %v812_v52 }
 0x1ab   : > { %v976_v56 = vadd.f32 %v970_v51, %v894_v54 }
 0x1ad   : > { %v985_v59 = vadd.f32 %v981_v55, %v976_v56 }
 0x1ae   : > { %v972_v60 = vpop.f32.mrf.mxu2 }
 0x1af   : > { %v988_v63 = vmax.f32 %v985_v59, 0.0 }
 0x1b0   : > { %v890_v0 = vpop.f32.mrf.mxu3 }
 0x1b1   : > { %991 = vst [vmem:[%s206_s28 + $0x10] sm:$0xff] %v988_v63 }
 0x1b2   : > { %v944_v4 = vpop.f32.mrf.mxu0  ;;  %v957_v5 = vpop.f32.mrf.mxu1 }
 0x1b3   : > { %v974_v6 = vadd.f32 %v944_v4, %v892_v2  ;;  %v975_v7 = vadd.f32 %v957_v5, %v893_v1 }
 0x1b5   : > { %v983_v8 = vadd.f32 %v981_v55, %v974_v6  ;;  %v984_v9 = vadd.f32 %v981_v55, %v975_v7 }
 0x1b7   : > { %v986_v11 = vmax.f32 %v983_v8, 0.0  ;;  %v987_v12 = vmax.f32 %v984_v9, 0.0 }
 0x1b9   : > { %989 = vst [vmem:[%s206_s28] sm:$0xff] %v986_v11 }
 0x1ba   : > { %990 = vst [vmem:[%s206_s28 + $0x8] sm:$0xff] %v987_v12  ;;  %v946_v14 = vpop.f32.mrf.mxu0  ;;  %v959_v16 = vpop.f32.mrf.mxu1 }
 0x1bb PF: > { %s13_s14 = sadd.s32 1, %s1222_s14   ;;  %s1566_s12 = smov %s1218_s13 }
 0x1bc   : > { %p10_p5 = scmp.ge.s32.totalorder %s13_s14, 4   ;;  %s1567_s13 = smov %s1569_s15 }
 0x1be   :  { %12 = sbr.rel (!%p10_p5) target bundleno = 2 (0x2), region = 70 }

// kernel: a_net_forward.9
= control target key start
LH: loop header
LB: loop body
LE: loop exit
PB: predicated region body
PF: predicated region fallthrough
CT: control target
= control target key end

     0   :  { %s663_s18 = smov 0   ;;  %s665_s19 = smov 0   ;;  %s714_s0 = inlined_call_operand.vmem [shape: f32[2,3,2,128], index: 0, kind: input, shape index: {}]   ;;  %s715_s1 = inlined_call_operand.vmem [shape: f32[2,1,2,128], index: 1, kind: input, shape index: {}]   ;;  %s716_s2 = inlined_call_operand.vmem [shape: f32[2,1,2,128], index: 2, kind: input, shape index: {}]   ;;  %s717_s3 = inlined_call_operand.vmem [shape: f32[2,3,2,128], index: 3, kind: input, shape index: {}]   ;;  %s718_s4 = inlined_call_operand.vmem [shape: f32[2,1,2,128], index: 4, kind: input, shape index: {}]   ;;  %s719_s5 = inlined_call_operand.vmem [shape: f32[2,1,2,128], index: 5, kind: output, shape index: {}]  }
   0x1   :  { %s667_s20 = smov 0  }
   0x2 LB: > { %s27_s21 = sadd.s32 1, %s627_s19  ;;  %p569_p0 = scmp.ge.s32.totalorder %s631_s20, 1  ;;  %s631_s20 = sphi %s667_s20, %s15_s20   ;;  %s627_s19 = sphi %s665_s19, %s721_s19   ;;  %s623_s18 = sphi %s663_s18, %s720_s18  }
   0x3   : > { %p29_p1 = scmp.ge.s32.totalorder %s27_s21, 2  ;;  %p263_p2 = scmp.lt.s32.totalorder %s631_s20, 3 }
   0x5   : > { %s723_s21 = smov (%p29_p1, %s27_s21), 0  ;;  %p264_p3 = pnand %p569_p0, %p263_p2 }
   0x6   : > { %p325_p4 = scmp.lt.s32.totalorder (!%p264_p3), %s623_s18, 1 }
   0x7   : > { %267 = sbr.rel (%p264_p3) target bundleno = 48 (0x30), region = 40 }
   0xc   : > { %s725_s18 = smov (!%p325_p4, %s623_s18), 1 }
   0xd   : > { %s582_s22 = smul.u32 6, %s725_s18  ;;  %s681_s23 = sshll.u32 %s725_s18, 1 }
   0xe   : > { %s339_s26 = scalar_lea.vmem %s715_s1, %s681_s23  ;;  %s346_s29 = scalar_lea.vmem %s716_s2, %s681_s23 }
   0xf   : > { %s332_s7 = scalar_lea.vmem %s714_s0, %s582_s22  ;;  %s354_s10 = scalar_lea.vmem %s717_s3, %s582_s22  ;;  %v370_v0 = vld [vmem:[%s346_s29] sm:$0x3] }
  0x10   : > { %v372_v1 = vmax.f32 %v370_v0, 0.05  ;;  %v374_v2 = vsub.f32 1.0, %v370_v0  ;;  %v369_v3 = vld [vmem:[%s339_s26] sm:$0x3]  ;;  %s361_s13 = scalar_lea.vmem %s718_s4, %s681_s23  ;;  %s368_s16 = scalar_lea.vmem %s719_s5, %s681_s23 }
  0x11   : > { %v376_v4 = vld [vmem:[%s332_s7] sm:$0x3]  ;;  %v576_v8 = vld [vmem:[%s332_s7 + $0x2] sm:$0x3]  ;;  %v579_v10 = vld [vmem:[%s354_s10 + $0x4] sm:$0x3] }
  0x12   : > { %v377_v5 = vld [vmem:[%s354_s10] sm:$0x3]  ;;  %607 = vrcp.f32 %v372_v1  ;;  %v379_v7 = vmul.f32 %v374_v2, %v369_v3  ;;  %v577_v9 = vld [vmem:[%s354_s10 + $0x2] sm:$0x3]  ;;  %v578_v12 = vld [vmem:[%s332_s7 + $0x4] sm:$0x3]  ;;  %v409_v13 = vmul.f32 %v579_v10, %v370_v0  ;;  %v383_v15 = vsub.f32 %v376_v4, %v369_v3 }
  0x13   : > { %v378_v6 = vmul.f32 %v377_v5, %v370_v0  ;;  %v394_v11 = vmul.f32 %v577_v9, %v370_v0  ;;  %v398_v17 = vsub.f32 %v576_v8, %v369_v3  ;;  %v413_v19 = vsub.f32 %v578_v12, %v369_v3  ;;  %v371_v45 = vld [vmem:[%s361_s13] sm:$0x3] }
  0x14   : > { %v410_v18 = vadd.f32 %v409_v13, %v379_v7 }
  0x15   : > { %v380_v14 = vadd.f32 %v379_v7, %v378_v6  ;;  %v395_v16 = vadd.f32 %v394_v11, %v379_v7 }
  0x16   : > { %v411_v25 = vsub.f32 %v410_v18, %v578_v12 }
  0x17   : > { %v381_v21 = vsub.f32 %v380_v14, %v376_v4  ;;  %v396_v23 = vsub.f32 %v395_v16, %v576_v8 }
  0x18   : > { %v608_v20 = vpop.eup %607  ;;  %v412_v35 = vmul.f32 %v411_v25, %v374_v2 }
  0x19   : > { %v384_v22 = vmul.f32 %v608_v20, %v383_v15  ;;  %v399_v24 = vmul.f32 %v608_v20, %v398_v17  ;;  %v414_v26 = vmul.f32 %v608_v20, %v413_v19  ;;  %v375_v27 = vsub.f32 1.0, %v608_v20 }
  0x1a   : > { %v382_v31 = vmul.f32 %v381_v21, %v374_v2  ;;  %v397_v33 = vmul.f32 %v396_v23, %v374_v2 }
  0x1b   : > { %v385_v28 = vadd.f32 %v384_v22, %v369_v3  ;;  %v400_v29 = vadd.f32 %v399_v24, %v369_v3  ;;  %v415_v30 = vadd.f32 %v414_v26, %v369_v3 }
  0x1d   : > { %v386_v32 = vsub.f32 %v385_v28, %v377_v5  ;;  %v401_v34 = vsub.f32 %v400_v29, %v577_v9  ;;  %v416_v36 = vsub.f32 %v415_v30, %v579_v10 }
  0x1f   : > { %v387_v37 = vmul.f32 %v386_v32, %v375_v27  ;;  %v402_v38 = vmul.f32 %v401_v34, %v375_v27  ;;  %v417_v39 = vmul.f32 %v416_v36, %v375_v27 }
  0x21   : > { %v388_v40 = vadd.f32 %v387_v37, %v382_v31  ;;  %v403_v41 = vadd.f32 %v402_v38, %v397_v33  ;;  %v418_v42 = vadd.f32 %v417_v39, %v412_v35 }
  0x23   : > { %v404_v43 = vadd.f32 %v403_v41, %v388_v40 }
  0x25   : > { %v419_v44 = vadd.f32 %v418_v42, %v404_v43 }
  0x27   : > { %v420_v46 = vmul.f32 0.33333334, %v419_v44 }
  0x29   : > { %v421_v47 = vadd.f32 %v420_v46, %v371_v45 }
  0x2b   : > { %v422_v48 = vmul.f32 0.01, %v421_v47 }
  0x2d   : > { %v423_v49 = vsub.f32 %v369_v3, %v422_v48 }
  0x2f   : > { %424 = vst [vmem:[%s368_s16] sm:$0x3] %v423_v49 }
  0x30 PF: > { %s15_s20 = sadd.s32 1, %s631_s20   ;;  %s720_s18 = smov %s627_s19 }
  0x31   : > { %p12_p5 = scmp.ge.s32.totalorder %s15_s20, 4   ;;  %s721_s19 = smov %s723_s21 }
  0x33   :  { %14 = sbr.rel (!%p12_p5) target bundleno = 2 (0x2), region = 86 }

// kernel: a_net_forward.8
= control target key start
LH: loop header
LB: loop body
LE: loop exit
PB: predicated region body
PF: predicated region fallthrough
CT: control target
= control target key end

     0   :  { %s1073_s14 = smov 0   ;;  %s1075_s15 = smov 0   ;;  %s1228_s0 = inlined_call_operand.vmem [shape: bf16[2,1,8,512], index: 0, kind: input, shape index: {}]   ;;  %s1229_s1 = inlined_call_operand.vmem [shape: bf16[9,1,8], index: 1, kind: input, shape index: {}]   ;;  %s1230_s2 = inlined_call_operand.<no memory space> [shape: f32[1,1], index: 2, kind: input, shape index: {}]   ;;  %s1231_s3 = inlined_call_operand.vmem [shape: f32[2,1,1,384], index: 3, kind: output, shape index: {}]  }
   0x1   :  { %v8_v0 = vstv %s1230_s2  ;;  %s1077_s16 = smov 0  }
   0x2   :  { %9 = vst [vmem:[#allocation2] sm:$0x1] %v8_v0 }
   0x3 LB: > { %s27_s2 = sadd.s32 1, %s1035_s15  ;;  %p940_p0 = scmp.ge.s32.totalorder %s1039_s16, 1  ;;  %s1039_s16 = sphi %s1077_s16, %s15_s16   ;;  %s1035_s15 = sphi %s1075_s15, %s1233_s15   ;;  %s1031_s14 = sphi %s1073_s14, %s1232_s14  }
   0x4   : > { %p29_p1 = scmp.ge.s32.totalorder %s27_s2, 2  ;;  %p159_p2 = scmp.lt.s32.totalorder %s1039_s16, 3 }
   0x6   : > { %s1235_s2 = smov (%p29_p1, %s27_s2), 0  ;;  %p160_p3 = pnand %p940_p0, %p159_p2 }
   0x7   : > { %p190_p4 = scmp.lt.s32.totalorder (!%p160_p3), %s1031_s14, 1  ;;  %s1041_s21 = smov (!%p160_p3), 127  }
   0x8   : > { %163 = sbr.rel (%p160_p3) target bundleno = 385 (0x181), region = 32  ;;  %s1042_s22 = smov (!%p160_p3), 126  }
   0x9   : > { %s1043_s23 = smov (!%p160_p3), 110   ;;  %s1044_s24 = smov (!%p160_p3), 109  }
   0xa   : > { %s1045_s25 = smov (!%p160_p3), 108   ;;  %s1046_s26 = smov (!%p160_p3), 92  }
   0xb   : > { %s1047_s27 = smov (!%p160_p3), 91   ;;  %s1048_s28 = smov (!%p160_p3), 90  }
   0xd   : > { %s1237_s14 = smov (!%p190_p4, %s1031_s14), 1  ;;  %vm241_vm0 = vcmask 1043456   ;;  %v210_v12 = vld [vmem:[%s1229_s1] sm:$0x1]  ;;  %vm237_vm1 = vcmask 64512   ;;  %vm233_vm2 = vcmask 1039360  }
   0xe   : > { %s980_s17 = sshll.u32 %s1237_s14, 4  ;;  %v943_v24 = vld [vmem:[%s1229_s1 + $0x1] sm:$0x1]  ;;  %vm359_vm3 = vcmask 1031168   ;;  %vm427_vm4 = vcmask 900096   ;;  %vm495_vm5 = vcmask 891904  }
   0xf   : > { %s1097_s20 = scalar_lea.vmem %s1228_s0, %s980_s17  ;;  %v950_v44 = vld [vmem:[%s1229_s1 + $0x2] sm:$0x1]  ;;  %v954_v58 = vld [vmem:[%s1229_s1 + $0x3] sm:$0x1]  ;;  %vm563_vm6 = vcmask 883712   ;;  %vm631_vm7 = vcmask 752640  }
  0x10   : > { %v212_v1 = vld [vmem:[%s1097_s20 + $0x8] sm:$0xff]  ;;  %v211_v2 = vld [vmem:[%s1097_s20] sm:$0xff]  ;;  %vm699_vm8 = vcmask 744448   ;;  %vm767_vm9 = vcmask 736256   ;;  %vm840_vm10 = vcmask 1040384   ;;  %vm842_vm11 = vcmask 1041408  }
  0x11   : > { %v219_v3 = vunpack.c.l.b16 %v212_v1  ;;  %v218_v4 = vunpack.c.h.b16 %v211_v2  ;;  %v217_v5 = vunpack.c.l.b16 %v211_v2  ;;  %v220_v9 = vunpack.c.h.b16 %v212_v1  ;;  %v209_v15 = vld [vmem:[%s1097_s20 + $0x8] sm:$0xf] }
  0x12   : > { %v294_v16 = vunpack.c.l.b16 %v209_v15 }
  0x13   : > { %v223_v6 = vpack.c.b16 %v219_v3, %v219_v3  ;;  %v1101_v7 = vpack.c.b16 %v218_v4, %v218_v4  ;;  %v221_v8 = vpack.c.b16 %v217_v5, %v217_v5  ;;  %v224_v10 = vpack.c.b16 %v220_v9, %v220_v9  ;;  %v958_v9 = vld [vmem:[%s1229_s1 + $0x4] sm:$0x1] }
  0x14   : > { %v297_v18 = vpack.c.b16 %v294_v16, %v294_v16 }
  0x15   : > { %229 = vrot.lane.b32.xlu0 %v223_v6, %s1041_s21  ;;  %227 = vrot.lane.b32.xlu1 %v1101_v7, %s1041_s21  ;;  %v302_v11 = vsel %vm241_vm0, %v221_v8, 0  ;;  %v305_v32 = vsel %vm241_vm0, %v1101_v7, 0 }
  0x16   : > { %351 = vrot.lane.b32.xlu2 %v221_v8, %s1042_s22  ;;  %317 = vmatpush.bf16.msra.mxu3 %v302_v11  ;;  %v308_v22 = vsel %vm241_vm0, %v297_v18, 0 }
  0x19   : > { %947 = vmatmul.msk.bf16.vlgmr.msra.gmra.mxu3 %vm237_vm1, %v210_v12 }
  0x1d   : > { %231 = vrot.lane.b32.xlu0 %v224_v10, %s1041_s21  ;;  %225 = vrot.lane.b32.xlu1 %v221_v8, %s1041_s21 }
  0x1e   : > { %353 = vrot.lane.b32.xlu2 %v1101_v7, %s1042_s22 }
  0x25   : > { %355 = vrot.lane.b32.xlu0 %v223_v6, %s1042_s22  ;;  %421 = vrot.lane.b32.xlu1 %v1101_v7, %s1043_s23 }
  0x26   : > { %423 = vrot.lane.b32.xlu2 %v223_v6, %s1043_s23 }
  0x2d   : > { %357 = vrot.lane.b32.xlu1 %v224_v10, %s1042_s22  ;;  %419 = vrot.lane.b32.xlu0 %v221_v8, %s1043_s23 }
  0x2e   : > { %425 = vrot.lane.b32.xlu2 %v224_v10, %s1043_s23  ;;  %s981_s23 = smul.u32 3, %s1237_s14 }
  0x35   : > { %491 = vrot.lane.b32.xlu0 %v223_v6, %s1044_s24  ;;  %493 = vrot.lane.b32.xlu1 %v224_v10, %s1044_s24 }
  0x36   : > { %489 = vrot.lane.b32.xlu2 %v1101_v7, %s1044_s24 }
  0x3d   : > { %487 = vrot.lane.b32.xlu0 %v221_v8, %s1044_s24  ;;  %555 = vrot.lane.b32.xlu1 %v221_v8, %s1045_s25 }
  0x3e   : > { %557 = vrot.lane.b32.xlu2 %v1101_v7, %s1045_s25 }
  0x45   : > { %623 = vrot.lane.b32.xlu0 %v221_v8, %s1046_s26  ;;  %625 = vrot.lane.b32.xlu1 %v1101_v7, %s1046_s26 }
  0x46   : > { %559 = vrot.lane.b32.xlu2 %v223_v6, %s1045_s25 }
  0x4d   : > { %561 = vrot.lane.b32.xlu0 %v224_v10, %s1045_s25  ;;  %627 = vrot.lane.b32.xlu1 %v223_v6, %s1046_s26 }
  0x4e   : > { %693 = vrot.lane.b32.xlu2 %v1101_v7, %s1047_s27 }
  0x55   : > { %695 = vrot.lane.b32.xlu0 %v223_v6, %s1047_s27  ;;  %691 = vrot.lane.b32.xlu1 %v221_v8, %s1047_s27 }
  0x56   : > { %629 = vrot.lane.b32.xlu2 %v224_v10, %s1046_s26  ;;  %s206_s26 = scalar_lea.vmem %s1231_s3, %s981_s23 }
  0x5d   : > { %697 = vrot.lane.b32.xlu0 %v224_v10, %s1047_s27  ;;  %763 = vrot.lane.b32.xlu1 %v223_v6, %s1048_s28 }
  0x5e   : > { %765 = vrot.lane.b32.xlu2 %v224_v10, %s1048_s28  ;;  %v962_v10 = vld [vmem:[%s1229_s1 + $0x5] sm:$0x1] }
  0x65   : > { %761 = vrot.lane.b32.xlu0 %v1101_v7, %s1048_s28  ;;  %759 = vrot.lane.b32.xlu1 %v221_v8, %s1048_s28 }
  0x70   : > { %v352_v13 = vpop.permute.xlu2 %351 }
  0x78   : > { %v354_v14 = vpop.permute.xlu2 %353 }
  0x79   : > { %v360_v25 = vsel %vm359_vm3, %v352_v13, %v354_v14 }
  0x7a   : > { %v367_v31 = vsel %vm241_vm0, %v360_v25, 0 }
  0x80   : > { %v424_v17 = vpop.permute.xlu2 %423 }
  0x87   : > { %v230_v19 = vpop.permute.xlu0 %229  ;;  %v228_v20 = vpop.permute.xlu1 %227 }
  0x88   : > { %v235_v21 = vsel %vm233_vm2, %v228_v20, %v230_v19  ;;  %v426_v26 = vpop.permute.xlu2 %425 }
  0x89   : > { %v246_v23 = vsel %vm241_vm0, %v235_v21, 0  ;;  %v430_v35 = vsel %vm427_vm4, %v424_v17, %v426_v26  ;;  %v966_v26 = vld [vmem:[%s1229_s1 + $0x6] sm:$0x1] }
  0x8a   : > { %271 = vmatpush.bf16.msra.mxu1 %v246_v23  ;;  %v441_v40 = vsel %vm241_vm0, %v430_v35, 0 }
  0x8d   : > { %945 = vmatmul.msk.bf16.vlgmr.msra.gmra.mxu1 %vm237_vm1, %v943_v24 }
  0x8e   : > { %343 = vmatpush.bf16.msrb.mxu1 %v308_v22 }
  0x8f   : > { %v232_v27 = vpop.permute.xlu0 %231  ;;  %v226_v28 = vpop.permute.xlu1 %225 }
  0x90   : > { %v234_v29 = vsel %vm233_vm2, %v226_v28, %v228_v20  ;;  %v236_v30 = vsel %vm233_vm2, %v230_v19, %v232_v27  ;;  %v490_v43 = vpop.permute.xlu2 %489 }
  0x91   : > { %v243_v33 = vsel %vm241_vm0, %v234_v29, 0  ;;  %v249_v34 = vsel %vm241_vm0, %v236_v30, 0 }
  0x92   : > { %258 = vmatpush.bf16.msra.mxu0 %v243_v33  ;;  %284 = vmatpush.bf16.msra.mxu2 %v249_v34 }
  0x95   : > { %944 = vmatmul.msk.bf16.vlgmr.msra.gmra.mxu0 %vm237_vm1, %v943_v24  ;;  %946 = vmatmul.msk.bf16.vlgmr.msra.gmra.mxu2 %vm237_vm1, %v943_v24 }
  0x96   : > { %382 = vmatpush.bf16.msrb.mxu2 %v367_v31  ;;  %330 = vmatpush.bf16.msrb.mxu0 %v305_v32 }
  0x97   : > { %v356_v36 = vpop.permute.xlu0 %355  ;;  %v422_v37 = vpop.permute.xlu1 %421 }
  0x98   : > { %v429_v38 = vsel %vm427_vm4, %v422_v37, %v424_v17  ;;  %v361_v39 = vsel %vm359_vm3, %v354_v14, %v356_v36  ;;  %v558_v51 = vpop.permute.xlu2 %557 }
  0x99   : > { %v438_v41 = vsel %vm241_vm0, %v429_v38, 0  ;;  %v370_v42 = vsel %vm241_vm0, %v361_v39, 0 }
  0x9a   : > { %395 = vmatpush.bf16.msrb.mxu3 %v370_v42  ;;  %463 = vmatpush.bf16.msra.mxu2 %v438_v41  ;;  %v974_v41 = vld [vmem:[%s1229_s1 + $0x8] sm:$0x1]  ;;  %v825_v42 = vld [vmem:[#allocation2] sm:$0x1] }
  0x9d   : > { %949 = vmatmul.msk.bf16.vlgmr.msrb.gmra.mxu1 %vm237_vm1, %v210_v12  ;;  %952 = vmatmul.msk.bf16.vlgmr.msrb.gmra.mxu3 %vm237_vm1, %v950_v44 }
  0x9e   : > { %476 = vmatpush.bf16.msra.mxu3 %v441_v40  ;;  %v970_v40 = vld [vmem:[%s1229_s1 + $0x7] sm:$0x1] }
  0x9f   : > { %v358_v45 = vpop.permute.xlu1 %357  ;;  %v420_v46 = vpop.permute.xlu0 %419 }
  0xa0   : > { %v362_v47 = vsel %vm359_vm3, %v356_v36, %v358_v45  ;;  %v428_v48 = vsel %vm427_vm4, %v420_v46, %v422_v37  ;;  %v560_v59 = vpop.permute.xlu2 %559 }
  0xa1   : > { %v373_v49 = vsel %vm241_vm0, %v362_v47, 0  ;;  %v435_v50 = vsel %vm241_vm0, %v428_v48, 0  ;;  %v565_v0 = vsel %vm563_vm6, %v558_v51, %v560_v59 }
  0xa2   : > { %408 = vmatpush.bf16.msra.mxu0 %v373_v49  ;;  %450 = vmatpush.bf16.msra.mxu1 %v435_v50  ;;  %v574_v3 = vsel %vm241_vm0, %v565_v0, 0 }
  0xa5   : > { %948 = vmatmul.msk.bf16.vlgmr.msrb.gmra.mxu0 %vm237_vm1, %v210_v12  ;;  %951 = vmatmul.msk.bf16.vlgmr.msrb.gmra.mxu2 %vm237_vm1, %v950_v44 }
  0xa7   : > { %v492_v52 = vpop.permute.xlu0 %491  ;;  %v494_v53 = vpop.permute.xlu1 %493 }
  0xa8   : > { %v498_v54 = vsel %vm495_vm5, %v492_v52, %v494_v53  ;;  %v497_v55 = vsel %vm495_vm5, %v490_v43, %v492_v52  ;;  %v694_v4 = vpop.permute.xlu2 %693 }
  0xa9   : > { %v509_v56 = vsel %vm241_vm0, %v498_v54, 0  ;;  %v506_v57 = vsel %vm241_vm0, %v497_v55, 0 }
  0xaa   : > { %544 = vmatpush.bf16.msrb.mxu2 %v509_v56  ;;  %531 = vmatpush.bf16.msrb.mxu1 %v506_v57 }
  0xad   : > { %955 = vmatmul.msk.bf16.vlgmr.msra.gmra.mxu1 %vm237_vm1, %v954_v58  ;;  %957 = vmatmul.msk.bf16.vlgmr.msra.gmra.mxu3 %vm237_vm1, %v954_v58 }
  0xaf   : > { %v488_v60 = vpop.permute.xlu0 %487  ;;  %v556_v61 = vpop.permute.xlu1 %555 }
  0xb0   : > { %v496_v62 = vsel %vm495_vm5, %v488_v60, %v490_v43  ;;  %v564_v63 = vsel %vm563_vm6, %v556_v61, %v558_v51  ;;  %v630_v11 = vpop.permute.xlu2 %629  ;;  %v1049_v43 = vmov 0  }
  0xb1   : > { %v503_v1 = vsel %vm241_vm0, %v496_v62, 0  ;;  %v571_v2 = vsel %vm241_vm0, %v564_v63, 0  ;;  %1015 = vset.pattern.permute.xlu2 %v1049_v43  ;;  %1016 = vset.pattern.permute.xlu0 %v1049_v43 }
  0xb2   : > { %518 = vmatpush.bf16.msrb.mxu0 %v503_v1  ;;  %586 = vmatpush.bf16.msrb.mxu3 %v571_v2 }
  0xb3   : > { %828 = vperm.xlu2 %1015, %v825_v42  }
  0xb5   : > { %953 = vmatmul.msk.bf16.vlgmr.msra.gmra.mxu0 %vm237_vm1, %v950_v44  ;;  %956 = vmatmul.msk.bf16.vlgmr.msra.gmra.mxu2 %vm237_vm1, %v954_v58  ;;  %v319_v44 = vpop.f32.mrf.mxu3 }
  0xb6   : > { %599 = vmatpush.bf16.msra.mxu0 %v574_v3 }
  0xb7   : > { %v624_v5 = vpop.permute.xlu0 %623  ;;  %v626_v6 = vpop.permute.xlu1 %625 }
  0xb8   : > { %v632_v7 = vsel %vm631_vm7, %v624_v5, %v626_v6  ;;  %v766_v27 = vpop.permute.xlu2 %765 }
  0xb9   : > { %v639_v8 = vsel %vm241_vm0, %v632_v7, 0 }
  0xba   : > { %654 = vmatpush.bf16.msra.mxu2 %v639_v8 }
  0xbd   : > { %960 = vmatmul.msk.bf16.vlgmr.msrb.gmra.mxu1 %vm237_vm1, %v958_v9  ;;  %963 = vmatmul.msk.bf16.vlgmr.msrb.gmra.mxu3 %vm237_vm1, %v962_v10  ;;  %v321_v45 = vpop.f32.mrf.mxu3 }
  0xbf   : > { %v562_v12 = vpop.permute.xlu0 %561  ;;  %v628_v13 = vpop.permute.xlu1 %627 }
  0xc0   : > { %v566_v14 = vsel %vm563_vm6, %v560_v59, %v562_v12  ;;  %v633_v15 = vsel %vm631_vm7, %v626_v6, %v628_v13  ;;  %v634_v16 = vsel %vm631_vm7, %v628_v13, %v630_v11 }
  0xc1   : > { %v577_v17 = vsel %vm241_vm0, %v566_v14, 0  ;;  %v642_v18 = vsel %vm241_vm0, %v633_v15, 0  ;;  %v645_v19 = vsel %vm241_vm0, %v634_v16, 0 }
  0xc2   : > { %667 = vmatpush.bf16.msra.mxu3 %v642_v18  ;;  %612 = vmatpush.bf16.msra.mxu1 %v577_v17 }
  0xc5   : > { %959 = vmatmul.msk.bf16.vlgmr.msrb.gmra.mxu0 %vm237_vm1, %v958_v9  ;;  %961 = vmatmul.msk.bf16.vlgmr.msrb.gmra.mxu2 %vm237_vm1, %v958_v9 }
  0xc6   : > { %680 = vmatpush.bf16.msrb.mxu0 %v645_v19 }
  0xc7   : > { %v696_v20 = vpop.permute.xlu0 %695  ;;  %v692_v21 = vpop.permute.xlu1 %691 }
  0xc8   : > { %v701_v22 = vsel %vm699_vm8, %v694_v4, %v696_v20  ;;  %v700_v23 = vsel %vm699_vm8, %v692_v21, %v694_v4 }
  0xc9   : > { %v710_v24 = vsel %vm241_vm0, %v701_v22, 0  ;;  %v707_v25 = vsel %vm241_vm0, %v700_v23, 0 }
  0xca   : > { %722 = vmatpush.bf16.msrb.mxu1 %v707_v25  ;;  %735 = vmatpush.bf16.msrb.mxu2 %v710_v24 }
  0xcd   : > { %965 = vmatmul.msk.bf16.vlgmr.msra.gmra.mxu1 %vm237_vm1, %v962_v10  ;;  %968 = vmatmul.msk.bf16.vlgmr.msra.gmra.mxu3 %vm237_vm1, %v966_v26 }
  0xcf   : > { %v698_v28 = vpop.permute.xlu0 %697  ;;  %v764_v29 = vpop.permute.xlu1 %763 }
  0xd0   : > { %v702_v30 = vsel %vm699_vm8, %v696_v20, %v698_v28  ;;  %v770_v31 = vsel %vm767_vm9, %v764_v29, %v766_v27 }
  0xd1   : > { %v713_v32 = vsel %vm241_vm0, %v702_v30, 0  ;;  %v781_v33 = vsel %vm241_vm0, %v770_v31, 0 }
  0xd2   : > { %748 = vmatpush.bf16.msrb.mxu3 %v713_v32 }
  0xd5   : > { %964 = vmatmul.msk.bf16.vlgmr.msra.gmra.mxu0 %vm237_vm1, %v962_v10  ;;  %967 = vmatmul.msk.bf16.vlgmr.msra.gmra.mxu2 %vm237_vm1, %v966_v26 }
  0xd6   : > { %816 = vmatpush.bf16.msra.mxu2 %v781_v33 }
  0xd7   : > { %v762_v34 = vpop.permute.xlu0 %761  ;;  %v760_v35 = vpop.permute.xlu1 %759 }
  0xd8   : > { %v769_v36 = vsel %vm767_vm9, %v762_v34, %v764_v29  ;;  %v768_v37 = vsel %vm767_vm9, %v760_v35, %v762_v34 }
  0xd9   : > { %v778_v38 = vsel %vm241_vm0, %v769_v36, 0  ;;  %v775_v39 = vsel %vm241_vm0, %v768_v37, 0 }
  0xda   : > { %803 = vmatpush.bf16.msra.mxu1 %v778_v38  ;;  %790 = vmatpush.bf16.msra.mxu0 %v775_v39 }
  0xdd   : > { %971 = vmatmul.msk.bf16.vlgmr.msrb.gmra.mxu1 %vm237_vm1, %v970_v40  ;;  %973 = vmatmul.msk.bf16.vlgmr.msrb.gmra.mxu3 %vm237_vm1, %v970_v40 }
  0xe5   : > { %969 = vmatmul.msk.bf16.vlgmr.msrb.gmra.mxu0 %vm237_vm1, %v966_v26  ;;  %972 = vmatmul.msk.bf16.vlgmr.msrb.gmra.mxu2 %vm237_vm1, %v970_v40 }
  0xed   : > { %976 = vmatmul.msk.bf16.vlgmr.msra.gmra.mxu1 %vm237_vm1, %v974_v41 }
  0xf5   : > { %975 = vmatmul.msk.bf16.vlgmr.msra.gmra.mxu0 %vm237_vm1, %v974_v41  ;;  %977 = vmatmul.msk.bf16.vlgmr.msra.gmra.mxu2 %vm237_vm1, %v974_v41 }
 0x10a   : > { %v273_v46 = vpop.f32.mrf.mxu1 }
 0x10d   : > { %v829_v39 = vpop.permute.xlu2 %828 }
 0x112   : > { %v260_v47 = vpop.f32.mrf.mxu0  ;;  %v275_v48 = vpop.f32.mrf.mxu1 }
 0x113   : > { %v320_v49 = vadd.f32 %v319_v44, %v260_v47 }
 0x118   : > { %v286_v50 = vpop.f32.mrf.mxu2 }
 0x11a   : > { %v262_v51 = vpop.f32.mrf.mxu0  ;;  %v345_v52 = vpop.f32.mrf.mxu1 }
 0x11b   : > { %v346_v53 = vadd.f32 %v345_v52, %v286_v50 }
 0x120   : > { %v288_v54 = vpop.f32.mrf.mxu2  ;;  %v397_v55 = vpop.f32.mrf.mxu3 }
 0x122   : > { %v332_v56 = vpop.f32.mrf.mxu0  ;;  %v347_v57 = vpop.f32.mrf.mxu1 }
 0x123   : > { %v333_v58 = vadd.f32 %v332_v56, %v273_v46  ;;  %v831_v46 = vperm.slane %v829_v39, 0 }
 0x125   : > { %v415_v59 = vadd.f32 %v397_v55, %v333_v58 }
 0x128   : > { %v384_v60 = vpop.f32.mrf.mxu2  ;;  %v399_v61 = vpop.f32.mrf.mxu3 }
 0x129   : > { %v414_v62 = vadd.f32 %v384_v60, %v320_v49 }
 0x12a   : > { %v334_v63 = vpop.f32.mrf.mxu0  ;;  %v452_v0 = vpop.f32.mrf.mxu1 }
 0x12b   : > { %v482_v1 = vadd.f32 %v452_v0, %v414_v62  ;;  %v845_v62 = vlaneseq }
 0x12d   : > { %vm847_vm12 = vcmp.lt.s32.totalorder %v845_v62, 384 }
 0x130   : > { %v386_v2 = vpop.f32.mrf.mxu2  ;;  %v478_v3 = vpop.f32.mrf.mxu3 }
 0x132   : > { %v410_v4 = vpop.f32.mrf.mxu0  ;;  %v454_v5 = vpop.f32.mrf.mxu1 }
 0x133   : > { %v416_v33 = vadd.f32 %v410_v4, %v346_v53 }
 0x135   : > { %v484_v42 = vadd.f32 %v478_v3, %v416_v33 }
 0x138   : > { %v465_v6 = vpop.f32.mrf.mxu2  ;;  %v480_v7 = vpop.f32.mrf.mxu3 }
 0x139   : > { %v483_v26 = vadd.f32 %v465_v6, %v415_v59 }
 0x13a   : > { %v412_v8 = vpop.f32.mrf.mxu0  ;;  %v533_v9 = vpop.f32.mrf.mxu1 }
 0x13b   : > { %v551_v29 = vadd.f32 %v533_v9, %v483_v26 }
 0x140   : > { %v467_v10 = vpop.f32.mrf.mxu2  ;;  %v588_v11 = vpop.f32.mrf.mxu3 }
 0x142   : > { %v520_v12 = vpop.f32.mrf.mxu0  ;;  %v535_v13 = vpop.f32.mrf.mxu1 }
 0x143   : > { %v550_v34 = vadd.f32 %v520_v12, %v482_v1 }
 0x145   : > { %v618_v43 = vadd.f32 %v588_v11, %v550_v34 }
 0x148   : > { %v546_v14 = vpop.f32.mrf.mxu2  ;;  %v590_v15 = vpop.f32.mrf.mxu3 }
 0x149   : > { %v552_v44 = vadd.f32 %v546_v14, %v484_v42 }
 0x14a   : > { %v522_v16 = vpop.f32.mrf.mxu0  ;;  %v614_v17 = vpop.f32.mrf.mxu1 }
 0x14b   : > { %v620_v49 = vadd.f32 %v614_v17, %v552_v44 }
 0x150   : > { %v548_v18 = vpop.f32.mrf.mxu2  ;;  %v669_v19 = vpop.f32.mrf.mxu3 }
 0x152   : > { %v601_v20 = vpop.f32.mrf.mxu0  ;;  %v616_v21 = vpop.f32.mrf.mxu1 }
 0x153   : > { %v619_v32 = vadd.f32 %v601_v20, %v551_v29 }
 0x155   : > { %v687_v35 = vadd.f32 %v669_v19, %v619_v32 }
 0x158   : > { %v656_v22 = vpop.f32.mrf.mxu2  ;;  %v671_v23 = vpop.f32.mrf.mxu3 }
 0x159   : > { %v686_v45 = vadd.f32 %v656_v22, %v618_v43 }
 0x15a   : > { %v603_v24 = vpop.f32.mrf.mxu0  ;;  %v724_v25 = vpop.f32.mrf.mxu1 }
 0x15b   : > { %v754_v50 = vadd.f32 %v724_v25, %v686_v45 }
 0x160   : > { %v658_v27 = vpop.f32.mrf.mxu2  ;;  %v750_v28 = vpop.f32.mrf.mxu3 }
 0x162   : > { %v682_v30 = vpop.f32.mrf.mxu0  ;;  %v726_v31 = vpop.f32.mrf.mxu1 }
 0x163   : > { %v688_v54 = vadd.f32 %v682_v30, %v620_v49 }
 0x165   : > { %v756_v58 = vadd.f32 %v750_v28, %v688_v54 }
 0x168   : > { %v737_v36 = vpop.f32.mrf.mxu2  ;;  %v752_v37 = vpop.f32.mrf.mxu3 }
 0x169   : > { %v755_v38 = vadd.f32 %v737_v36, %v687_v35 }
 0x16a   : > { %v684_v40 = vpop.f32.mrf.mxu0  ;;  %v805_v41 = vpop.f32.mrf.mxu1 }
 0x16b   : > { %v823_v47 = vadd.f32 %v805_v41, %v755_v38 }
 0x16d   : > { %v833_v51 = vadd.f32 %v831_v46, %v823_v47 }
 0x16f   : > { %v838_v56 = vrot.slane %v833_v51, 7 }
 0x170   : > { %v739_v48 = vpop.f32.mrf.mxu2 }
 0x172   : > { %v792_v52 = vpop.f32.mrf.mxu0  ;;  %v807_v53 = vpop.f32.mrf.mxu1 }
 0x173   : > { %v822_v55 = vadd.f32 %v792_v52, %v754_v50 }
 0x175   : > { %v832_v57 = vadd.f32 %v831_v46, %v822_v55 }
 0x177   : > { %v841_v59 = vsel %vm840_vm10, %v832_v57, %v838_v56 }
 0x178   : > { %v818_v60 = vpop.f32.mrf.mxu2 }
 0x179   : > { %v824_v61 = vadd.f32 %v818_v60, %v756_v58 }
 0x17a   : > { %v794_v63 = vpop.f32.mrf.mxu0 }
 0x17b   : > { %v834_v0 = vadd.f32 %v831_v46, %v824_v61 }
 0x17d   : > { %v839_v1 = vrot.slane %v834_v0, 6 }
 0x17f   : > { %v843_v2 = vsel %vm842_vm11, %v841_v59, %v839_v1 }
 0x180   : > { %849 = vst.msk [vmem:[%s206_s26] sm:$0x7] %vm847_vm12, %v843_v2  ;;  %v820_v3 = vpop.f32.mrf.mxu2 }
 0x181 PF: > { %s15_s16 = sadd.s32 1, %s1039_s16   ;;  %s1232_s14 = smov %s1035_s15 }
 0x182   : > { %p12_p5 = scmp.ge.s32.totalorder %s15_s16, 4   ;;  %s1233_s15 = smov %s1235_s2 }
 0x184   :  { %14 = sbr.rel (!%p12_p5) target bundleno = 3 (0x3), region = 70 }

</bundles_post_ra>
